<compile_context>
chip_gen: v5e
topology: v5e:2x2
jax: 0.10.0
libtpu: 0.0.40
codegen_flags: <defaults>
</compile_context>

<pallas_src>
import functools
import math

import jax
import jax.numpy as jnp
from jax.experimental import pallas as pl
from jax.experimental.pallas import tpu as pltpu

_MXU_DTYPE = jnp.bfloat16   # MXU operand dtype; accumulation stays f32.

_LAYER_KEYS = ("ln1_g", "ln1_b", "wq", "bq", "wk", "bk", "wv", "bv", "wo", "bo",
               "ln2_g", "ln2_b", "conv_w", "conv_b", "ln3_g", "ln3_b",
               "w1", "b1", "w2", "b2")
_FIXED_KEYS = ("lnf_g", "lnf_b", "head_w", "head_b")


# ------------------------------ in-kernel helpers --------------------------- #

def _ln(x, g_ref, b_ref, eps=1e-5):
    mu = jnp.mean(x, axis=-1, keepdims=True)
    var = jnp.mean((x - mu) ** 2, axis=-1, keepdims=True)
    return (x - mu) * jax.lax.rsqrt(var + eps) * g_ref[...] + b_ref[...]


def _cumsum_last(x):
    """Inclusive prefix-sum over the last (lane) axis via log-step shifted adds."""
    n = x.shape[-1]
    s = 1
    while s < n:
        pad = jnp.zeros(x.shape[:-1] + (s,), x.dtype)
        x = x + jnp.concatenate([pad, x[..., :-s]], axis=-1)
        s *= 2
    return x


# --------------------------- fused conformer stack -------------------------- #

def _stack_kernel(x_ref, emb_w, emb_b,
                  ln1_g, ln1_b, wq, bq, wk, bk, wv, bv, wo, bo,
                  ln2_g, ln2_b, conv_w, conv_b,
                  ln3_g, ln3_b, w1, b1, w2, b2,
                  lnf_g, lnf_b, head_w, head_b,
                  logit_ref, haz_ref, surv_ref,
                  h_sc, *, num_heads, bblk, seq_len):
    layer = pl.program_id(1)
    n_layers = pl.num_programs(1)
    N = seq_len
    R = bblk * N
    D = h_sc.shape[-1]
    dh = D // num_heads
    scale = 1.0 / math.sqrt(dh)

    # ---- fused embed: run once per batch tile at the first depth step.
    @pl.when(layer == 0)
    def _():
        xf = x_ref[...].reshape(R, x_ref.shape[-1]).astype(_MXU_DTYPE)
        h_sc[...] = (jnp.dot(xf, emb_w[...], preferred_element_type=jnp.float32)
                     + emb_b[...])

    h = h_sc[...]                                             # (R, D) f32, resident

    # ---- multi-head self-attention (LN fused, residual fused).
    y = _ln(h, ln1_g, ln1_b).astype(_MXU_DTYPE)
    q = (jnp.dot(y, wq[...], preferred_element_type=jnp.float32) + bq[...]).astype(_MXU_DTYPE)
    k = (jnp.dot(y, wk[...], preferred_element_type=jnp.float32) + bk[...]).astype(_MXU_DTYPE)
    v = (jnp.dot(y, wv[...], preferred_element_type=jnp.float32) + bv[...]).astype(_MXU_DTYPE)

    def to_heads(t):                                          # (R, H*dh) -> (bblk*H, N, dh)
        parts = []
        for bi in range(bblk):
            for hh in range(num_heads):
                parts.append(t[bi * N:(bi + 1) * N, hh * dh:(hh + 1) * dh])
        return jnp.stack(parts, axis=0)

    q3, k3, v3 = to_heads(q), to_heads(k), to_heads(v)
    s = jnp.einsum("bqd,bkd->bqk", q3, k3,
                   preferred_element_type=jnp.float32) * scale
    s = s - jnp.max(s, axis=-1, keepdims=True)
    p = jnp.exp(s)
    p = p * pl.reciprocal(jnp.sum(p, axis=-1, keepdims=True), approx=True)
    o3 = jnp.einsum("bqk,bkd->bqd", p.astype(_MXU_DTYPE), v3,
                    preferred_element_type=jnp.float32)       # (bblk*H, N, dh)
    attn = jnp.concatenate(
        [jnp.concatenate([o3[bi * num_heads + hh] for hh in range(num_heads)], axis=-1)
         for bi in range(bblk)], axis=0)                      # (R, D) lane-dense
    h = h + jnp.dot(attn.astype(_MXU_DTYPE), wo[...],
                    preferred_element_type=jnp.float32) + bo[...]

    # ---- depthwise conv (kernel 3, zero 'same' pad per sequence), GELU, residual.
    y = _ln(h, ln2_g, ln2_b)
    cw = conv_w[...]                                          # (3, D): taps [-1, 0, +1]
    pos1 = jax.lax.broadcasted_iota(jnp.int32, (N, 1), 0)
    pos = jnp.concatenate([pos1] * bblk, axis=0)              # (R, 1) position-in-sequence
    y_prev = jnp.where(pos > 0, pltpu.roll(y, shift=1, axis=0), 0.0)
    y_next = jnp.where(pos < N - 1, pltpu.roll(y, shift=R - 1, axis=0), 0.0)
    c = y_prev * cw[0:1, :] + y * cw[1:2, :] + y_next * cw[2:3, :] + conv_b[...]
    # TODO(synk): PyTorch nn.GELU default is the exact erf form; tanh approx used here.
    h = h + jax.nn.gelu(c)

    # ---- MLP (LN fused, GELU, residual fused).
    y = _ln(h, ln3_g, ln3_b).astype(_MXU_DTYPE)
    y = jax.nn.gelu(jnp.dot(y, w1[...], preferred_element_type=jnp.float32) + b1[...])
    h = h + jnp.dot(y.astype(_MXU_DTYPE), w2[...],
                    preferred_element_type=jnp.float32) + b2[...]

    h_sc[...] = h                                             # carry to next layer

    # ---- fused tail: final LN + mean-pool + head + sigmoid + survival.
    @pl.when(layer == n_layers - 1)
    def _():
        yf = _ln(h, lnf_g, lnf_b)
        inv_n = 1.0 / float(N)
        pooled = jnp.concatenate(
            [jnp.sum(yf[bi * N:(bi + 1) * N, :], axis=0, keepdims=True) * inv_n
             for bi in range(bblk)], axis=0)                  # (bblk, D)
        logits = (jnp.dot(pooled.astype(_MXU_DTYPE), head_w[...],
                          preferred_element_type=jnp.float32) + head_b[...])
        logit_ref[...] = logits.astype(logit_ref.dtype)
        haz = 1.0 / (1.0 + jnp.exp(-logits))                  # sigmoid
        haz_ref[...] = haz.astype(haz_ref.dtype)
        # survival = cumprod(1 - sigmoid(x)) via log(1-sigmoid(x)) = -softplus(x)
        log1m = -(jnp.maximum(logits, 0.0) + jnp.log(1.0 + jnp.exp(-jnp.abs(logits))))
        surv_ref[...] = jnp.exp(_cumsum_last(log1m)).astype(surv_ref.dtype)


def _pick_bblk(batch, seq):
    """Batch elements per grid step: aim for >=128 sublane rows of work per step."""
    target = max(1, 128 // max(seq, 1))
    bblk = max(1, min(batch, target))
    while batch % bblk:
        bblk -= 1
    return bblk


def conv_attn_forward(params, x, *, num_heads):
    # x: [B, N, input_dim]
    B, N, Cin = x.shape
    D = params["embed_w"].shape[1]
    T = params["head_w"].shape[1]
    depth = params["wq"].shape[0]
    bblk = _pick_bblk(B, N)
    n_bt = B // bblk

    layer_ws = [params[k] for k in _LAYER_KEYS]
    fixed_ws = [params[k] for k in _FIXED_KEYS]

    in_specs = (
        [pl.BlockSpec((bblk, N, Cin), lambda b, l: (b, 0, 0)),
         pl.BlockSpec(params["embed_w"].shape, lambda b, l: (0, 0)),
         pl.BlockSpec(params["embed_b"].shape, lambda b, l: (0, 0))]
        + [pl.BlockSpec((None,) + w.shape[1:], lambda b, l: (l, 0, 0)) for w in layer_ws]
        + [pl.BlockSpec(w.shape, lambda b, l: (0, 0)) for w in fixed_ws])
    out_specs = (pl.BlockSpec((bblk, T), lambda b, l: (b, 0)),
                 pl.BlockSpec((bblk, T), lambda b, l: (b, 0)),
                 pl.BlockSpec((bblk, T), lambda b, l: (b, 0)))

    # Explicit VMEM budget: per-step blocks (double-buffered) + resident activation.
    blk_bytes = (int(x.nbytes) // max(n_bt, 1)
                 + sum(int(w.nbytes) for w in
                       (params["embed_w"], params["embed_b"], *fixed_ws))
                 + sum(int(w.nbytes) // depth for w in layer_ws)
                 + 3 * bblk * T * 4)
    est = 2 * blk_bytes + bblk * N * D * 4
    vmem_limit = int(min(64 << 20, max(2 * est + (4 << 20), 16 << 20)))

    kernel = functools.partial(_stack_kernel, num_heads=num_heads,
                               bblk=bblk, seq_len=N)
    t_logits, hazards, survival = pl.pallas_call(
        kernel,
        out_shape=(jax.ShapeDtypeStruct((B, T), jnp.float32),
                   jax.ShapeDtypeStruct((B, T), jnp.float32),
                   jax.ShapeDtypeStruct((B, T), jnp.float32)),
        grid=(n_bt, depth),
        in_specs=in_specs,
        out_specs=out_specs,
        scratch_shapes=[pltpu.VMEM((bblk * N, D), jnp.float32)],
        compiler_params=pltpu.CompilerParams(
            dimension_semantics=("parallel", "arbitrary"),
            vmem_limit_bytes=vmem_limit),
    )(x, params["embed_w"], params["embed_b"], *layer_ws, *fixed_ws)
    return {"t_logits": t_logits, "hazards": hazards, "survival": survival}


# ------------------------- parameter initialization ------------------------- #

def _trunc_normal(key, shape, std=0.02):
    return std * jax.random.truncated_normal(key, -2.0, 2.0, shape, jnp.float32)


def init_params(key, input_dim, out_dim, attn_dim, num_heads, depth):
    """Per-layer weights are stacked on a leading layer axis; matmul weights in bf16."""
    mlp_dim = int(4 * attn_dim)
    dim_head = attn_dim // num_heads
    inner = num_heads * dim_head
    ks = iter(jax.random.split(key, 16))
    L, D, M = depth, attn_dim, mlp_dim
    ones = lambda s: jnp.ones(s, jnp.float32)
    zeros = lambda s: jnp.zeros(s, jnp.float32)

    p = {}
    p["embed_w"] = _trunc_normal(next(ks), (input_dim, D)).astype(_MXU_DTYPE)
    p["embed_b"] = zeros((1, D))
    p["ln1_g"], p["ln1_b"] = ones((L, 1, D)), zeros((L, 1, D))
    p["wq"] = _trunc_normal(next(ks), (L, D, inner)).astype(_MXU_DTYPE)
    p["bq"] = zeros((L, 1, inner))
    p["wk"] = _trunc_normal(next(ks), (L, D, inner)).astype(_MXU_DTYPE)
    p["bk"] = zeros((L, 1, inner))
    p["wv"] = _trunc_normal(next(ks), (L, D, inner)).astype(_MXU_DTYPE)
    p["bv"] = zeros((L, 1, inner))
    p["wo"] = _trunc_normal(next(ks), (L, inner, D)).astype(_MXU_DTYPE)
    p["bo"] = zeros((L, 1, D))
    p["ln2_g"], p["ln2_b"] = ones((L, 1, D)), zeros((L, 1, D))
    p["conv_w"] = _trunc_normal(next(ks), (L, 3, D))
    p["conv_b"] = zeros((L, 1, D))
    p["ln3_g"], p["ln3_b"] = ones((L, 1, D)), zeros((L, 1, D))
    p["w1"] = _trunc_normal(next(ks), (L, D, M)).astype(_MXU_DTYPE)
    p["b1"] = zeros((L, 1, M))
    p["w2"] = _trunc_normal(next(ks), (L, M, D)).astype(_MXU_DTYPE)
    p["b2"] = zeros((L, 1, D))
    p["lnf_g"], p["lnf_b"] = ones((1, D)), zeros((1, D))
    p["head_w"] = _trunc_normal(next(ks), (D, out_dim)).astype(_MXU_DTYPE)
    p["head_b"] = zeros((1, out_dim))
    return p


# ------------------------------------ main ----------------------------------- #

if __name__ == "__main__":
    INPUT_DIM, OUT_DIM, ATTN_DIM, NUM_HEADS, DEPTH = 32, 4, 32, 4, 2
    B, N = 2, 8

    key = jax.random.PRNGKey(0)
    k_param, k_x = jax.random.split(key)
    params = init_params(k_param, INPUT_DIM, OUT_DIM, ATTN_DIM, NUM_HEADS, DEPTH)
    x = jax.random.normal(k_x, (B, N, INPUT_DIM), jnp.float32)

    out = conv_attn_forward(params, x, num_heads=NUM_HEADS)
    for v in out.values():
        jax.block_until_ready(v)

    assert out["t_logits"].shape == (B, OUT_DIM)
    assert out["hazards"].shape == (B, OUT_DIM)
    assert out["survival"].shape == (B, OUT_DIM)
    assert all(bool(jnp.all(jnp.isfinite(v))) for v in out.values())
    # self-consistency of the survival head against plain-JAX math on the kernel logits
    ref_haz = 1.0 / (1.0 + jnp.exp(-out["t_logits"]))
    ref_surv = jnp.cumprod(1.0 - ref_haz, axis=1)
    assert bool(jnp.allclose(out["hazards"], ref_haz, atol=1e-5, rtol=1e-5))
    assert bool(jnp.allclose(out["survival"], ref_surv, atol=1e-5, rtol=1e-5))
    print("KERNEL_OK")
</pallas_src>

<mosaic_0001>
module attributes {stable_mosaic.version = 11 : i64} {
  func.func @_stack_kernel(%arg0: i32, %arg1: i32, %arg2: memref<2x8x32xf32, #tpu.memory_space<vmem>>, %arg3: memref<32x32xbf16, #tpu.memory_space<vmem>>, %arg4: memref<1x32xf32, #tpu.memory_space<vmem>>, %arg5: memref<1x1x32xf32, #tpu.memory_space<vmem>>, %arg6: memref<1x1x32xf32, #tpu.memory_space<vmem>>, %arg7: memref<1x32x32xbf16, #tpu.memory_space<vmem>>, %arg8: memref<1x1x32xf32, #tpu.memory_space<vmem>>, %arg9: memref<1x32x32xbf16, #tpu.memory_space<vmem>>, %arg10: memref<1x1x32xf32, #tpu.memory_space<vmem>>, %arg11: memref<1x32x32xbf16, #tpu.memory_space<vmem>>, %arg12: memref<1x1x32xf32, #tpu.memory_space<vmem>>, %arg13: memref<1x32x32xbf16, #tpu.memory_space<vmem>>, %arg14: memref<1x1x32xf32, #tpu.memory_space<vmem>>, %arg15: memref<1x1x32xf32, #tpu.memory_space<vmem>>, %arg16: memref<1x1x32xf32, #tpu.memory_space<vmem>>, %arg17: memref<1x3x32xf32, #tpu.memory_space<vmem>>, %arg18: memref<1x1x32xf32, #tpu.memory_space<vmem>>, %arg19: memref<1x1x32xf32, #tpu.memory_space<vmem>>, %arg20: memref<1x1x32xf32, #tpu.memory_space<vmem>>, %arg21: memref<1x32x128xbf16, #tpu.memory_space<vmem>>, %arg22: memref<1x1x128xf32, #tpu.memory_space<vmem>>, %arg23: memref<1x128x32xbf16, #tpu.memory_space<vmem>>, %arg24: memref<1x1x32xf32, #tpu.memory_space<vmem>>, %arg25: memref<1x32xf32, #tpu.memory_space<vmem>>, %arg26: memref<1x32xf32, #tpu.memory_space<vmem>>, %arg27: memref<32x4xbf16, #tpu.memory_space<vmem>>, %arg28: memref<1x4xf32, #tpu.memory_space<vmem>>, %arg29: memref<2x4xf32, #tpu.memory_space<vmem>>, %arg30: memref<2x4xf32, #tpu.memory_space<vmem>>, %arg31: memref<2x4xf32, #tpu.memory_space<vmem>>, %arg32: memref<16x32xf32, #tpu.memory_space<vmem>>) attributes {dimension_semantics = [#tpu.dimension_semantics<parallel>, #tpu.dimension_semantics<arbitrary>], iteration_bounds = array<i64: 1, 2>, scalar_prefetch = 0 : i64, scratch_operands = 1 : i64, tpu.core_type = #tpu.core_type<tc>, window_params = [{transform_indices = @transform_0, window_bounds = array<i64: 2, 8, 32>}, {pipeline_mode = #tpu.pipeline_mode<synchronous>, transform_indices = @transform_1, window_bounds = array<i64: 32, 32>}, {pipeline_mode = #tpu.pipeline_mode<synchronous>, transform_indices = @transform_2, window_bounds = array<i64: 1, 32>}, {transform_indices = @transform_3, window_bounds = array<i64: 1, 1, 32>}, {transform_indices = @transform_4, window_bounds = array<i64: 1, 1, 32>}, {transform_indices = @transform_5, window_bounds = array<i64: 1, 32, 32>}, {transform_indices = @transform_6, window_bounds = array<i64: 1, 1, 32>}, {transform_indices = @transform_7, window_bounds = array<i64: 1, 32, 32>}, {transform_indices = @transform_8, window_bounds = array<i64: 1, 1, 32>}, {transform_indices = @transform_9, window_bounds = array<i64: 1, 32, 32>}, {transform_indices = @transform_10, window_bounds = array<i64: 1, 1, 32>}, {transform_indices = @transform_11, window_bounds = array<i64: 1, 32, 32>}, {transform_indices = @transform_12, window_bounds = array<i64: 1, 1, 32>}, {transform_indices = @transform_13, window_bounds = array<i64: 1, 1, 32>}, {transform_indices = @transform_14, window_bounds = array<i64: 1, 1, 32>}, {transform_indices = @transform_15, window_bounds = array<i64: 1, 3, 32>}, {transform_indices = @transform_16, window_bounds = array<i64: 1, 1, 32>}, {transform_indices = @transform_17, window_bounds = array<i64: 1, 1, 32>}, {transform_indices = @transform_18, window_bounds = array<i64: 1, 1, 32>}, {transform_indices = @transform_19, window_bounds = array<i64: 1, 32, 128>}, {transform_indices = @transform_20, window_bounds = array<i64: 1, 1, 128>}, {transform_indices = @transform_21, window_bounds = array<i64: 1, 128, 32>}, {transform_indices = @transform_22, window_bounds = array<i64: 1, 1, 32>}, {pipeline_mode = #tpu.pipeline_mode<synchronous>, transform_indices = @transform_23, window_bounds = array<i64: 1, 32>}, {pipeline_mode = #tpu.pipeline_mode<synchronous>, transform_indices = @transform_24, window_bounds = array<i64: 1, 32>}, {pipeline_mode = #tpu.pipeline_mode<synchronous>, transform_indices = @transform_25, window_bounds = array<i64: 32, 4>}, {pipeline_mode = #tpu.pipeline_mode<synchronous>, transform_indices = @transform_26, window_bounds = array<i64: 1, 4>}, {transform_indices = @transform_27, window_bounds = array<i64: 2, 4>}, {transform_indices = @transform_28, window_bounds = array<i64: 2, 4>}, {transform_indices = @transform_29, window_bounds = array<i64: 2, 4>}]} {
    %c0_i32 = arith.constant 0 : i32
    %0 = arith.cmpi eq, %arg1, %c0_i32 : i32
    %1 = arith.extui %0 : i1 to i32
    %c0_i32_0 = arith.constant 0 : i32
    %2 = arith.cmpi ne, %1, %c0_i32_0 : i32
    scf.if %2 {
      %c0_102 = arith.constant 0 : index
      %c0_103 = arith.constant 0 : index
      %c0_104 = arith.constant 0 : index
      %282 = vector.load %arg2[%c0_102, %c0_103, %c0_104] : memref<2x8x32xf32, #tpu.memory_space<vmem>>, vector<2x8x32xf32>
      %283 = vector.shape_cast %282 : vector<2x8x32xf32> to vector<16x32xf32>
      %284 = arith.truncf %283 : vector<16x32xf32> to vector<16x32xbf16>
      %c0_105 = arith.constant 0 : index
      %c0_106 = arith.constant 0 : index
      %285 = vector.load %arg3[%c0_105, %c0_106] : memref<32x32xbf16, #tpu.memory_space<vmem>>, vector<32x32xbf16>
      %cst_107 = arith.constant dense<0.000000e+00> : vector<16x32xf32>
      %286 = tpu.matmul %284, %285, %cst_107 {dimension_numbers = #tpu.dot_dimension_numbers<[1], [0], [0], [1], [0, 0, 1, 1], [], []>} : vector<16x32xbf16>, vector<32x32xbf16>, vector<16x32xf32> -> vector<16x32xf32>
      %c0_108 = arith.constant 0 : index
      %c0_109 = arith.constant 0 : index
      %287 = vector.load %arg4[%c0_108, %c0_109] : memref<1x32xf32, #tpu.memory_space<vmem>>, vector<1x32xf32>
      %288 = vector.broadcast %287 : vector<1x32xf32> to vector<16x32xf32>
      %289 = arith.addf %286, %288 : vector<16x32xf32>
      %c0_110 = arith.constant 0 : index
      %c0_111 = arith.constant 0 : index
      %290 = vector.load %arg32[%c0_110, %c0_111] : memref<16x32xf32, #tpu.memory_space<vmem>>, vector<16x32xf32>
      tpu.vector_store %arg32[%c0_110, %c0_111], %289 {strides = array<i32>} : memref<16x32xf32, #tpu.memory_space<vmem>>, vector<16x32xf32>,
    } else {
    }
    %c0 = arith.constant 0 : index
    %c0_1 = arith.constant 0 : index
    %3 = vector.load %arg32[%c0, %c0_1] : memref<16x32xf32, #tpu.memory_space<vmem>>, vector<16x32xf32>
    %cst = arith.constant dense<0.000000e+00> : vector<16xf32>
    %4 = vector.multi_reduction <add>, %3, %cst [1] : vector<16x32xf32> to vector<16xf32>
    %5 = vector.shape_cast %4 : vector<16xf32> to vector<16x1xf32>
    %cst_2 = arith.constant 3.200000e+01 : f32
    %6 = vector.broadcast %cst_2 : f32 to vector<16x1xf32>
    %7 = arith.divf %5, %6 : vector<16x1xf32>
    %8 = vector.broadcast %7 : vector<16x1xf32> to vector<16x32xf32>
    %9 = arith.subf %3, %8 : vector<16x32xf32>
    %10 = arith.mulf %9, %9 : vector<16x32xf32>
    %cst_3 = arith.constant dense<0.000000e+00> : vector<16xf32>
    %11 = vector.multi_reduction <add>, %10, %cst_3 [1] : vector<16x32xf32> to vector<16xf32>
    %12 = vector.shape_cast %11 : vector<16xf32> to vector<16x1xf32>
    %cst_4 = arith.constant 3.200000e+01 : f32
    %13 = vector.broadcast %cst_4 : f32 to vector<16x1xf32>
    %14 = arith.divf %12, %13 : vector<16x1xf32>
    %15 = vector.broadcast %7 : vector<16x1xf32> to vector<16x32xf32>
    %16 = arith.subf %3, %15 : vector<16x32xf32>
    %cst_5 = arith.constant 9.99999974E-6 : f32
    %17 = vector.broadcast %cst_5 : f32 to vector<16x1xf32>
    %18 = arith.addf %14, %17 : vector<16x1xf32>
    %19 = math.rsqrt %18 : vector<16x1xf32>
    %20 = vector.broadcast %19 : vector<16x1xf32> to vector<16x32xf32>
    %21 = arith.mulf %16, %20 : vector<16x32xf32>
    %c0_6 = arith.constant 0 : index
    %c0_7 = arith.constant 0 : index
    %c0_8 = arith.constant 0 : index
    %22 = vector.load %arg5[%c0_6, %c0_7, %c0_8] : memref<1x1x32xf32, #tpu.memory_space<vmem>>, vector<1x1x32xf32>
    %23 = vector.shape_cast %22 : vector<1x1x32xf32> to vector<1x32xf32>
    %24 = vector.broadcast %23 : vector<1x32xf32> to vector<16x32xf32>
    %25 = arith.mulf %21, %24 : vector<16x32xf32>
    %c0_9 = arith.constant 0 : index
    %c0_10 = arith.constant 0 : index
    %c0_11 = arith.constant 0 : index
    %26 = vector.load %arg6[%c0_9, %c0_10, %c0_11] : memref<1x1x32xf32, #tpu.memory_space<vmem>>, vector<1x1x32xf32>
    %27 = vector.shape_cast %26 : vector<1x1x32xf32> to vector<1x32xf32>
    %28 = vector.broadcast %27 : vector<1x32xf32> to vector<16x32xf32>
    %29 = arith.addf %25, %28 : vector<16x32xf32>
    %30 = arith.truncf %29 : vector<16x32xf32> to vector<16x32xbf16>
    %c0_12 = arith.constant 0 : index
    %c0_13 = arith.constant 0 : index
    %c0_14 = arith.constant 0 : index
    %31 = vector.load %arg7[%c0_12, %c0_13, %c0_14] : memref<1x32x32xbf16, #tpu.memory_space<vmem>>, vector<1x32x32xbf16>
    %32 = vector.shape_cast %31 : vector<1x32x32xbf16> to vector<32x32xbf16>
    %cst_15 = arith.constant dense<0.000000e+00> : vector<16x32xf32>
    %33 = tpu.matmul %30, %32, %cst_15 {dimension_numbers = #tpu.dot_dimension_numbers<[1], [0], [0], [1], [0, 0, 1, 1], [], []>} : vector<16x32xbf16>, vector<32x32xbf16>, vector<16x32xf32> -> vector<16x32xf32>
    %c0_16 = arith.constant 0 : index
    %c0_17 = arith.constant 0 : index
    %c0_18 = arith.constant 0 : index
    %34 = vector.load %arg8[%c0_16, %c0_17, %c0_18] : memref<1x1x32xf32, #tpu.memory_space<vmem>>, vector<1x1x32xf32>
    %35 = vector.shape_cast %34 : vector<1x1x32xf32> to vector<1x32xf32>
    %36 = vector.broadcast %35 : vector<1x32xf32> to vector<16x32xf32>
    %37 = arith.addf %33, %36 : vector<16x32xf32>
    %38 = arith.truncf %37 : vector<16x32xf32> to vector<16x32xbf16>
    %c0_19 = arith.constant 0 : index
    %c0_20 = arith.constant 0 : index
    %c0_21 = arith.constant 0 : index
    %39 = vector.load %arg9[%c0_19, %c0_20, %c0_21] : memref<1x32x32xbf16, #tpu.memory_space<vmem>>, vector<1x32x32xbf16>
    %40 = vector.shape_cast %39 : vector<1x32x32xbf16> to vector<32x32xbf16>
    %cst_22 = arith.constant dense<0.000000e+00> : vector<16x32xf32>
    %41 = tpu.matmul %30, %40, %cst_22 {dimension_numbers = #tpu.dot_dimension_numbers<[1], [0], [0], [1], [0, 0, 1, 1], [], []>} : vector<16x32xbf16>, vector<32x32xbf16>, vector<16x32xf32> -> vector<16x32xf32>
    %c0_23 = arith.constant 0 : index
    %c0_24 = arith.constant 0 : index
    %c0_25 = arith.constant 0 : index
    %42 = vector.load %arg10[%c0_23, %c0_24, %c0_25] : memref<1x1x32xf32, #tpu.memory_space<vmem>>, vector<1x1x32xf32>
    %43 = vector.shape_cast %42 : vector<1x1x32xf32> to vector<1x32xf32>
    %44 = vector.broadcast %43 : vector<1x32xf32> to vector<16x32xf32>
    %45 = arith.addf %41, %44 : vector<16x32xf32>
    %46 = arith.truncf %45 : vector<16x32xf32> to vector<16x32xbf16>
    %c0_26 = arith.constant 0 : index
    %c0_27 = arith.constant 0 : index
    %c0_28 = arith.constant 0 : index
    %47 = vector.load %arg11[%c0_26, %c0_27, %c0_28] : memref<1x32x32xbf16, #tpu.memory_space<vmem>>, vector<1x32x32xbf16>
    %48 = vector.shape_cast %47 : vector<1x32x32xbf16> to vector<32x32xbf16>
    %cst_29 = arith.constant dense<0.000000e+00> : vector<16x32xf32>
    %49 = tpu.matmul %30, %48, %cst_29 {dimension_numbers = #tpu.dot_dimension_numbers<[1], [0], [0], [1], [0, 0, 1, 1], [], []>} : vector<16x32xbf16>, vector<32x32xbf16>, vector<16x32xf32> -> vector<16x32xf32>
    %c0_30 = arith.constant 0 : index
    %c0_31 = arith.constant 0 : index
    %c0_32 = arith.constant 0 : index
    %50 = vector.load %arg12[%c0_30, %c0_31, %c0_32] : memref<1x1x32xf32, #tpu.memory_space<vmem>>, vector<1x1x32xf32>
    %51 = vector.shape_cast %50 : vector<1x1x32xf32> to vector<1x32xf32>
    %52 = vector.broadcast %51 : vector<1x32xf32> to vector<16x32xf32>
    %53 = arith.addf %49, %52 : vector<16x32xf32>
    %54 = arith.truncf %53 : vector<16x32xf32> to vector<16x32xbf16>
    %55 = vector.extract_strided_slice %38 {offsets = [0, 0], sizes = [8, 8], strides = [1, 1]} : vector<16x32xbf16> to vector<8x8xbf16>
    %56 = vector.extract_strided_slice %38 {offsets = [0, 8], sizes = [8, 8], strides = [1, 1]} : vector<16x32xbf16> to vector<8x8xbf16>
    %57 = vector.extract_strided_slice %38 {offsets = [0, 16], sizes = [8, 8], strides = [1, 1]} : vector<16x32xbf16> to vector<8x8xbf16>
    %58 = vector.extract_strided_slice %38 {offsets = [0, 24], sizes = [8, 8], strides = [1, 1]} : vector<16x32xbf16> to vector<8x8xbf16>
    %59 = vector.extract_strided_slice %38 {offsets = [8, 0], sizes = [8, 8], strides = [1, 1]} : vector<16x32xbf16> to vector<8x8xbf16>
    %60 = vector.extract_strided_slice %38 {offsets = [8, 8], sizes = [8, 8], strides = [1, 1]} : vector<16x32xbf16> to vector<8x8xbf16>
    %61 = vector.extract_strided_slice %38 {offsets = [8, 16], sizes = [8, 8], strides = [1, 1]} : vector<16x32xbf16> to vector<8x8xbf16>
    %62 = vector.extract_strided_slice %38 {offsets = [8, 24], sizes = [8, 8], strides = [1, 1]} : vector<16x32xbf16> to vector<8x8xbf16>
    %63 = vector.shape_cast %55 : vector<8x8xbf16> to vector<1x8x8xbf16>
    %64 = vector.shape_cast %56 : vector<8x8xbf16> to vector<1x8x8xbf16>
    %65 = vector.shape_cast %57 : vector<8x8xbf16> to vector<1x8x8xbf16>
    %66 = vector.shape_cast %58 : vector<8x8xbf16> to vector<1x8x8xbf16>
    %67 = vector.shape_cast %59 : vector<8x8xbf16> to vector<1x8x8xbf16>
    %68 = vector.shape_cast %60 : vector<8x8xbf16> to vector<1x8x8xbf16>
    %69 = vector.shape_cast %61 : vector<8x8xbf16> to vector<1x8x8xbf16>
    %70 = vector.shape_cast %62 : vector<8x8xbf16> to vector<1x8x8xbf16>
    %71 = tpu.concatenate %63, %64, %65, %66, %67, %68, %69, %70 in 0 : vector<1x8x8xbf16>, vector<1x8x8xbf16>, vector<1x8x8xbf16>, vector<1x8x8xbf16>, vector<1x8x8xbf16>, vector<1x8x8xbf16>, vector<1x8x8xbf16>, vector<1x8x8xbf16> -> vector<8x8x8xbf16>
    %72 = vector.extract_strided_slice %46 {offsets = [0, 0], sizes = [8, 8], strides = [1, 1]} : vector<16x32xbf16> to vector<8x8xbf16>
    %73 = vector.extract_strided_slice %46 {offsets = [0, 8], sizes = [8, 8], strides = [1, 1]} : vector<16x32xbf16> to vector<8x8xbf16>
    %74 = vector.extract_strided_slice %46 {offsets = [0, 16], sizes = [8, 8], strides = [1, 1]} : vector<16x32xbf16> to vector<8x8xbf16>
    %75 = vector.extract_strided_slice %46 {offsets = [0, 24], sizes = [8, 8], strides = [1, 1]} : vector<16x32xbf16> to vector<8x8xbf16>
    %76 = vector.extract_strided_slice %46 {offsets = [8, 0], sizes = [8, 8], strides = [1, 1]} : vector<16x32xbf16> to vector<8x8xbf16>
    %77 = vector.extract_strided_slice %46 {offsets = [8, 8], sizes = [8, 8], strides = [1, 1]} : vector<16x32xbf16> to vector<8x8xbf16>
    %78 = vector.extract_strided_slice %46 {offsets = [8, 16], sizes = [8, 8], strides = [1, 1]} : vector<16x32xbf16> to vector<8x8xbf16>
    %79 = vector.extract_strided_slice %46 {offsets = [8, 24], sizes = [8, 8], strides = [1, 1]} : vector<16x32xbf16> to vector<8x8xbf16>
    %80 = vector.shape_cast %72 : vector<8x8xbf16> to vector<1x8x8xbf16>
    %81 = vector.shape_cast %73 : vector<8x8xbf16> to vector<1x8x8xbf16>
    %82 = vector.shape_cast %74 : vector<8x8xbf16> to vector<1x8x8xbf16>
    %83 = vector.shape_cast %75 : vector<8x8xbf16> to vector<1x8x8xbf16>
    %84 = vector.shape_cast %76 : vector<8x8xbf16> to vector<1x8x8xbf16>
    %85 = vector.shape_cast %77 : vector<8x8xbf16> to vector<1x8x8xbf16>
    %86 = vector.shape_cast %78 : vector<8x8xbf16> to vector<1x8x8xbf16>
    %87 = vector.shape_cast %79 : vector<8x8xbf16> to vector<1x8x8xbf16>
    %88 = tpu.concatenate %80, %81, %82, %83, %84, %85, %86, %87 in 0 : vector<1x8x8xbf16>, vector<1x8x8xbf16>, vector<1x8x8xbf16>, vector<1x8x8xbf16>, vector<1x8x8xbf16>, vector<1x8x8xbf16>, vector<1x8x8xbf16>, vector<1x8x8xbf16> -> vector<8x8x8xbf16>
    %89 = vector.extract_strided_slice %54 {offsets = [0, 0], sizes = [8, 8], strides = [1, 1]} : vector<16x32xbf16> to vector<8x8xbf16>
    %90 = vector.extract_strided_slice %54 {offsets = [0, 8], sizes = [8, 8], strides = [1, 1]} : vector<16x32xbf16> to vector<8x8xbf16>
    %91 = vector.extract_strided_slice %54 {offsets = [0, 16], sizes = [8, 8], strides = [1, 1]} : vector<16x32xbf16> to vector<8x8xbf16>
    %92 = vector.extract_strided_slice %54 {offsets = [0, 24], sizes = [8, 8], strides = [1, 1]} : vector<16x32xbf16> to vector<8x8xbf16>
    %93 = vector.extract_strided_slice %54 {offsets = [8, 0], sizes = [8, 8], strides = [1, 1]} : vector<16x32xbf16> to vector<8x8xbf16>
    %94 = vector.extract_strided_slice %54 {offsets = [8, 8], sizes = [8, 8], strides = [1, 1]} : vector<16x32xbf16> to vector<8x8xbf16>
    %95 = vector.extract_strided_slice %54 {offsets = [8, 16], sizes = [8, 8], strides = [1, 1]} : vector<16x32xbf16> to vector<8x8xbf16>
    %96 = vector.extract_strided_slice %54 {offsets = [8, 24], sizes = [8, 8], strides = [1, 1]} : vector<16x32xbf16> to vector<8x8xbf16>
    %97 = vector.shape_cast %89 : vector<8x8xbf16> to vector<1x8x8xbf16>
    %98 = vector.shape_cast %90 : vector<8x8xbf16> to vector<1x8x8xbf16>
    %99 = vector.shape_cast %91 : vector<8x8xbf16> to vector<1x8x8xbf16>
    %100 = vector.shape_cast %92 : vector<8x8xbf16> to vector<1x8x8xbf16>
    %101 = vector.shape_cast %93 : vector<8x8xbf16> to vector<1x8x8xbf16>
    %102 = vector.shape_cast %94 : vector<8x8xbf16> to vector<1x8x8xbf16>
    %103 = vector.shape_cast %95 : vector<8x8xbf16> to vector<1x8x8xbf16>
    %104 = vector.shape_cast %96 : vector<8x8xbf16> to vector<1x8x8xbf16>
    %105 = tpu.concatenate %97, %98, %99, %100, %101, %102, %103, %104 in 0 : vector<1x8x8xbf16>, vector<1x8x8xbf16>, vector<1x8x8xbf16>, vector<1x8x8xbf16>, vector<1x8x8xbf16>, vector<1x8x8xbf16>, vector<1x8x8xbf16>, vector<1x8x8xbf16> -> vector<8x8x8xbf16>
    "tpu.trace_start"() <{level = 10 : i32, message = "bqd,bkd->bqk"}> : () -> ()
    %cst_33 = arith.constant dense<0.000000e+00> : vector<8x8x8xf32>
    %106 = tpu.matmul %71, %88, %cst_33 {dimension_numbers = #tpu.dot_dimension_numbers<[2], [2], [1], [1], [0, 0, 0, 1, 1, 1], [0], [0]>} : vector<8x8x8xbf16>, vector<8x8x8xbf16>, vector<8x8x8xf32> -> vector<8x8x8xf32>
    "tpu.trace_stop"() : () -> ()
    %cst_34 = arith.constant 0.353553385 : f32
    %107 = vector.broadcast %cst_34 : f32 to vector<8x8x8xf32>
    %108 = arith.mulf %106, %107 : vector<8x8x8xf32>
    %cst_35 = arith.constant dense<0xFF800000> : vector<8x8xf32>
    %109 = vector.multi_reduction <maximumf>, %108, %cst_35 [2] : vector<8x8x8xf32> to vector<8x8xf32>
    %110 = vector.shape_cast %109 : vector<8x8xf32> to vector<8x8x1xf32>
    %111 = vector.broadcast %110 : vector<8x8x1xf32> to vector<8x8x8xf32>
    %112 = arith.subf %108, %111 : vector<8x8x8xf32>
    %113 = math.exp %112 : vector<8x8x8xf32>
    %cst_36 = arith.constant dense<0.000000e+00> : vector<8x8xf32>
    %114 = vector.multi_reduction <add>, %113, %cst_36 [2] : vector<8x8x8xf32> to vector<8x8xf32>
    %115 = vector.shape_cast %114 : vector<8x8xf32> to vector<8x8x1xf32>
    %116 = tpu.reciprocal %115 {approx = true} : vector<8x8x1xf32> -> vector<8x8x1xf32>
    %117 = vector.broadcast %116 : vector<8x8x1xf32> to vector<8x8x8xf32>
    %118 = arith.mulf %113, %117 : vector<8x8x8xf32>
    %119 = arith.truncf %118 : vector<8x8x8xf32> to vector<8x8x8xbf16>
    "tpu.trace_start"() <{level = 10 : i32, message = "bqk,bkd->bqd"}> : () -> ()
    %cst_37 = arith.constant dense<0.000000e+00> : vector<8x8x8xf32>
    %120 = tpu.matmul %119, %105, %cst_37 {dimension_numbers = #tpu.dot_dimension_numbers<[2], [1], [1], [2], [0, 0, 0, 1, 1, 2], [0], [0]>} : vector<8x8x8xbf16>, vector<8x8x8xbf16>, vector<8x8x8xf32> -> vector<8x8x8xf32>
    "tpu.trace_stop"() : () -> ()
    %121 = vector.extract_strided_slice %120 {offsets = [0, 0, 0], sizes = [1, 8, 8], strides = [1, 1, 1]} : vector<8x8x8xf32> to vector<1x8x8xf32>
    %122 = vector.shape_cast %121 : vector<1x8x8xf32> to vector<8x8xf32>
    %123 = vector.extract_strided_slice %120 {offsets = [1, 0, 0], sizes = [1, 8, 8], strides = [1, 1, 1]} : vector<8x8x8xf32> to vector<1x8x8xf32>
    %124 = vector.shape_cast %123 : vector<1x8x8xf32> to vector<8x8xf32>
    %125 = vector.extract_strided_slice %120 {offsets = [2, 0, 0], sizes = [1, 8, 8], strides = [1, 1, 1]} : vector<8x8x8xf32> to vector<1x8x8xf32>
    %126 = vector.shape_cast %125 : vector<1x8x8xf32> to vector<8x8xf32>
    %127 = vector.extract_strided_slice %120 {offsets = [3, 0, 0], sizes = [1, 8, 8], strides = [1, 1, 1]} : vector<8x8x8xf32> to vector<1x8x8xf32>
    %128 = vector.shape_cast %127 : vector<1x8x8xf32> to vector<8x8xf32>
    %129 = tpu.concatenate %122, %124, %126, %128 in 1 : vector<8x8xf32>, vector<8x8xf32>, vector<8x8xf32>, vector<8x8xf32> -> vector<8x32xf32>
    %130 = vector.extract_strided_slice %120 {offsets = [4, 0, 0], sizes = [1, 8, 8], strides = [1, 1, 1]} : vector<8x8x8xf32> to vector<1x8x8xf32>
    %131 = vector.shape_cast %130 : vector<1x8x8xf32> to vector<8x8xf32>
    %132 = vector.extract_strided_slice %120 {offsets = [5, 0, 0], sizes = [1, 8, 8], strides = [1, 1, 1]} : vector<8x8x8xf32> to vector<1x8x8xf32>
    %133 = vector.shape_cast %132 : vector<1x8x8xf32> to vector<8x8xf32>
    %134 = vector.extract_strided_slice %120 {offsets = [6, 0, 0], sizes = [1, 8, 8], strides = [1, 1, 1]} : vector<8x8x8xf32> to vector<1x8x8xf32>
    %135 = vector.shape_cast %134 : vector<1x8x8xf32> to vector<8x8xf32>
    %136 = vector.extract_strided_slice %120 {offsets = [7, 0, 0], sizes = [1, 8, 8], strides = [1, 1, 1]} : vector<8x8x8xf32> to vector<1x8x8xf32>
    %137 = vector.shape_cast %136 : vector<1x8x8xf32> to vector<8x8xf32>
    %138 = tpu.concatenate %131, %133, %135, %137 in 1 : vector<8x8xf32>, vector<8x8xf32>, vector<8x8xf32>, vector<8x8xf32> -> vector<8x32xf32>
    %139 = tpu.concatenate %129, %138 in 0 : vector<8x32xf32>, vector<8x32xf32> -> vector<16x32xf32>
    %140 = arith.truncf %139 : vector<16x32xf32> to vector<16x32xbf16>
    %c0_38 = arith.constant 0 : index
    %c0_39 = arith.constant 0 : index
    %c0_40 = arith.constant 0 : index
    %141 = vector.load %arg13[%c0_38, %c0_39, %c0_40] : memref<1x32x32xbf16, #tpu.memory_space<vmem>>, vector<1x32x32xbf16>
    %142 = vector.shape_cast %141 : vector<1x32x32xbf16> to vector<32x32xbf16>
    %cst_41 = arith.constant dense<0.000000e+00> : vector<16x32xf32>
    %143 = tpu.matmul %140, %142, %cst_41 {dimension_numbers = #tpu.dot_dimension_numbers<[1], [0], [0], [1], [0, 0, 1, 1], [], []>} : vector<16x32xbf16>, vector<32x32xbf16>, vector<16x32xf32> -> vector<16x32xf32>
    %144 = arith.addf %3, %143 : vector<16x32xf32>
    %c0_42 = arith.constant 0 : index
    %c0_43 = arith.constant 0 : index
    %c0_44 = arith.constant 0 : index
    %145 = vector.load %arg14[%c0_42, %c0_43, %c0_44] : memref<1x1x32xf32, #tpu.memory_space<vmem>>, vector<1x1x32xf32>
    %146 = vector.shape_cast %145 : vector<1x1x32xf32> to vector<1x32xf32>
    %147 = vector.broadcast %146 : vector<1x32xf32> to vector<16x32xf32>
    %148 = arith.addf %144, %147 : vector<16x32xf32>
    %cst_45 = arith.constant dense<0.000000e+00> : vector<16xf32>
    %149 = vector.multi_reduction <add>, %148, %cst_45 [1] : vector<16x32xf32> to vector<16xf32>
    %150 = vector.shape_cast %149 : vector<16xf32> to vector<16x1xf32>
    %cst_46 = arith.constant 3.200000e+01 : f32
    %151 = vector.broadcast %cst_46 : f32 to vector<16x1xf32>
    %152 = arith.divf %150, %151 : vector<16x1xf32>
    %153 = vector.broadcast %152 : vector<16x1xf32> to vector<16x32xf32>
    %154 = arith.subf %148, %153 : vector<16x32xf32>
    %155 = arith.mulf %154, %154 : vector<16x32xf32>
    %cst_47 = arith.constant dense<0.000000e+00> : vector<16xf32>
    %156 = vector.multi_reduction <add>, %155, %cst_47 [1] : vector<16x32xf32> to vector<16xf32>
    %157 = vector.shape_cast %156 : vector<16xf32> to vector<16x1xf32>
    %cst_48 = arith.constant 3.200000e+01 : f32
    %158 = vector.broadcast %cst_48 : f32 to vector<16x1xf32>
    %159 = arith.divf %157, %158 : vector<16x1xf32>
    %160 = vector.broadcast %152 : vector<16x1xf32> to vector<16x32xf32>
    %161 = arith.subf %148, %160 : vector<16x32xf32>
    %cst_49 = arith.constant 9.99999974E-6 : f32
    %162 = vector.broadcast %cst_49 : f32 to vector<16x1xf32>
    %163 = arith.addf %159, %162 : vector<16x1xf32>
    %164 = math.rsqrt %163 : vector<16x1xf32>
    %165 = vector.broadcast %164 : vector<16x1xf32> to vector<16x32xf32>
    %166 = arith.mulf %161, %165 : vector<16x32xf32>
    %c0_50 = arith.constant 0 : index
    %c0_51 = arith.constant 0 : index
    %c0_52 = arith.constant 0 : index
    %167 = vector.load %arg15[%c0_50, %c0_51, %c0_52] : memref<1x1x32xf32, #tpu.memory_space<vmem>>, vector<1x1x32xf32>
    %168 = vector.shape_cast %167 : vector<1x1x32xf32> to vector<1x32xf32>
    %169 = vector.broadcast %168 : vector<1x32xf32> to vector<16x32xf32>
    %170 = arith.mulf %166, %169 : vector<16x32xf32>
    %c0_53 = arith.constant 0 : index
    %c0_54 = arith.constant 0 : index
    %c0_55 = arith.constant 0 : index
    %171 = vector.load %arg16[%c0_53, %c0_54, %c0_55] : memref<1x1x32xf32, #tpu.memory_space<vmem>>, vector<1x1x32xf32>
    %172 = vector.shape_cast %171 : vector<1x1x32xf32> to vector<1x32xf32>
    %173 = vector.broadcast %172 : vector<1x32xf32> to vector<16x32xf32>
    %174 = arith.addf %170, %173 : vector<16x32xf32>
    %c0_56 = arith.constant 0 : index
    %c0_57 = arith.constant 0 : index
    %c0_58 = arith.constant 0 : index
    %175 = vector.load %arg17[%c0_56, %c0_57, %c0_58] : memref<1x3x32xf32, #tpu.memory_space<vmem>>, vector<1x3x32xf32>
    %176 = vector.shape_cast %175 : vector<1x3x32xf32> to vector<3x32xf32>
    %177 = tpu.iota {dimensions = array<i32: 0>} : vector<8x1xi32>
    %178 = tpu.concatenate %177, %177 in 0 : vector<8x1xi32>, vector<8x1xi32> -> vector<16x1xi32>
    %c0_i32_59 = arith.constant 0 : i32
    %179 = vector.broadcast %c0_i32_59 : i32 to vector<16x1xi32>
    %180 = arith.cmpi sgt, %178, %179 : vector<16x1xi32>
    %c1_i32 = arith.constant 1 : i32
    %181 = tpu.dynamic_rotate %174 by %c1_i32 dim 0 : vector<16x32xf32>, i32 -> vector<16x32xf32>
    %cst_60 = arith.constant 0.000000e+00 : f32
    %182 = vector.shape_cast %180 : vector<16x1xi1> to vector<16x1xi1>
    %183 = vector.broadcast %182 : vector<16x1xi1> to vector<16x32xi1>
    %184 = vector.broadcast %cst_60 : f32 to vector<16x32xf32>
    %185 = arith.select %183, %181, %184 : vector<16x32xi1>, vector<16x32xf32>
    %c7_i32 = arith.constant 7 : i32
    %186 = vector.broadcast %c7_i32 : i32 to vector<16x1xi32>
    %187 = arith.cmpi slt, %178, %186 : vector<16x1xi32>
    %c15_i32 = arith.constant 15 : i32
    %188 = tpu.dynamic_rotate %174 by %c15_i32 dim 0 : vector<16x32xf32>, i32 -> vector<16x32xf32>
    %cst_61 = arith.constant 0.000000e+00 : f32
    %189 = vector.shape_cast %187 : vector<16x1xi1> to vector<16x1xi1>
    %190 = vector.broadcast %189 : vector<16x1xi1> to vector<16x32xi1>
    %191 = vector.broadcast %cst_61 : f32 to vector<16x32xf32>
    %192 = arith.select %190, %188, %191 : vector<16x32xi1>, vector<16x32xf32>
    %193 = vector.extract_strided_slice %176 {offsets = [0, 0], sizes = [1, 32], strides = [1, 1]} : vector<3x32xf32> to vector<1x32xf32>
    %194 = vector.broadcast %193 : vector<1x32xf32> to vector<16x32xf32>
    %195 = arith.mulf %185, %194 : vector<16x32xf32>
    %196 = vector.extract_strided_slice %176 {offsets = [1, 0], sizes = [1, 32], strides = [1, 1]} : vector<3x32xf32> to vector<1x32xf32>
    %197 = vector.broadcast %196 : vector<1x32xf32> to vector<16x32xf32>
    %198 = arith.mulf %174, %197 : vector<16x32xf32>
    %199 = arith.addf %195, %198 : vector<16x32xf32>
    %200 = vector.extract_strided_slice %176 {offsets = [2, 0], sizes = [1, 32], strides = [1, 1]} : vector<3x32xf32> to vector<1x32xf32>
    %201 = vector.broadcast %200 : vector<1x32xf32> to vector<16x32xf32>
    %202 = arith.mulf %192, %201 : vector<16x32xf32>
    %203 = arith.addf %199, %202 : vector<16x32xf32>
    %c0_62 = arith.constant 0 : index
    %c0_63 = arith.constant 0 : index
    %c0_64 = arith.constant 0 : index
    %204 = vector.load %arg18[%c0_62, %c0_63, %c0_64] : memref<1x1x32xf32, #tpu.memory_space<vmem>>, vector<1x1x32xf32>
    %205 = vector.shape_cast %204 : vector<1x1x32xf32> to vector<1x32xf32>
    %206 = vector.broadcast %205 : vector<1x32xf32> to vector<16x32xf32>
    %207 = arith.addf %203, %206 : vector<16x32xf32>
    %208 = arith.mulf %207, %207 : vector<16x32xf32>
    %209 = arith.mulf %207, %208 : vector<16x32xf32>
    %cst_65 = arith.constant 4.471500e-02 : f32
    %210 = vector.broadcast %cst_65 : f32 to vector<16x32xf32>
    %211 = arith.mulf %210, %209 : vector<16x32xf32>
    %212 = arith.addf %207, %211 : vector<16x32xf32>
    %cst_66 = arith.constant 0.797884583 : f32
    %213 = vector.broadcast %cst_66 : f32 to vector<16x32xf32>
    %214 = arith.mulf %213, %212 : vector<16x32xf32>
    %215 = math.tanh %214 : vector<16x32xf32>
    %cst_67 = arith.constant 1.000000e+00 : f32
    %216 = vector.broadcast %cst_67 : f32 to vector<16x32xf32>
    %217 = arith.addf %216, %215 : vector<16x32xf32>
    %cst_68 = arith.constant 5.000000e-01 : f32
    %218 = vector.broadcast %cst_68 : f32 to vector<16x32xf32>
    %219 = arith.mulf %218, %217 : vector<16x32xf32>
    %220 = arith.mulf %207, %219 : vector<16x32xf32>
    %221 = arith.addf %148, %220 : vector<16x32xf32>
    %cst_69 = arith.constant dense<0.000000e+00> : vector<16xf32>
    %222 = vector.multi_reduction <add>, %221, %cst_69 [1] : vector<16x32xf32> to vector<16xf32>
    %223 = vector.shape_cast %222 : vector<16xf32> to vector<16x1xf32>
    %cst_70 = arith.constant 3.200000e+01 : f32
    %224 = vector.broadcast %cst_70 : f32 to vector<16x1xf32>
    %225 = arith.divf %223, %224 : vector<16x1xf32>
    %226 = vector.broadcast %225 : vector<16x1xf32> to vector<16x32xf32>
    %227 = arith.subf %221, %226 : vector<16x32xf32>
    %228 = arith.mulf %227, %227 : vector<16x32xf32>
    %cst_71 = arith.constant dense<0.000000e+00> : vector<16xf32>
    %229 = vector.multi_reduction <add>, %228, %cst_71 [1] : vector<16x32xf32> to vector<16xf32>
    %230 = vector.shape_cast %229 : vector<16xf32> to vector<16x1xf32>
    %cst_72 = arith.constant 3.200000e+01 : f32
    %231 = vector.broadcast %cst_72 : f32 to vector<16x1xf32>
    %232 = arith.divf %230, %231 : vector<16x1xf32>
    %233 = vector.broadcast %225 : vector<16x1xf32> to vector<16x32xf32>
    %234 = arith.subf %221, %233 : vector<16x32xf32>
    %cst_73 = arith.constant 9.99999974E-6 : f32
    %235 = vector.broadcast %cst_73 : f32 to vector<16x1xf32>
    %236 = arith.addf %232, %235 : vector<16x1xf32>
    %237 = math.rsqrt %236 : vector<16x1xf32>
    %238 = vector.broadcast %237 : vector<16x1xf32> to vector<16x32xf32>
    %239 = arith.mulf %234, %238 : vector<16x32xf32>
    %c0_74 = arith.constant 0 : index
    %c0_75 = arith.constant 0 : index
    %c0_76 = arith.constant 0 : index
    %240 = vector.load %arg19[%c0_74, %c0_75, %c0_76] : memref<1x1x32xf32, #tpu.memory_space<vmem>>, vector<1x1x32xf32>
    %241 = vector.shape_cast %240 : vector<1x1x32xf32> to vector<1x32xf32>
    %242 = vector.broadcast %241 : vector<1x32xf32> to vector<16x32xf32>
    %243 = arith.mulf %239, %242 : vector<16x32xf32>
    %c0_77 = arith.constant 0 : index
    %c0_78 = arith.constant 0 : index
    %c0_79 = arith.constant 0 : index
    %244 = vector.load %arg20[%c0_77, %c0_78, %c0_79] : memref<1x1x32xf32, #tpu.memory_space<vmem>>, vector<1x1x32xf32>
    %245 = vector.shape_cast %244 : vector<1x1x32xf32> to vector<1x32xf32>
    %246 = vector.broadcast %245 : vector<1x32xf32> to vector<16x32xf32>
    %247 = arith.addf %243, %246 : vector<16x32xf32>
    %248 = arith.truncf %247 : vector<16x32xf32> to vector<16x32xbf16>
    %c0_80 = arith.constant 0 : index
    %c0_81 = arith.constant 0 : index
    %c0_82 = arith.constant 0 : index
    %249 = vector.load %arg21[%c0_80, %c0_81, %c0_82] : memref<1x32x128xbf16, #tpu.memory_space<vmem>>, vector<1x32x128xbf16>
    %250 = vector.shape_cast %249 : vector<1x32x128xbf16> to vector<32x128xbf16>
    %cst_83 = arith.constant dense<0.000000e+00> : vector<16x128xf32>
    %251 = tpu.matmul %248, %250, %cst_83 {dimension_numbers = #tpu.dot_dimension_numbers<[1], [0], [0], [1], [0, 0, 1, 1], [], []>} : vector<16x32xbf16>, vector<32x128xbf16>, vector<16x128xf32> -> vector<16x128xf32>
    %c0_84 = arith.constant 0 : index
    %c0_85 = arith.constant 0 : index
    %c0_86 = arith.constant 0 : index
    %252 = vector.load %arg22[%c0_84, %c0_85, %c0_86] : memref<1x1x128xf32, #tpu.memory_space<vmem>>, vector<1x1x128xf32>
    %253 = vector.shape_cast %252 : vector<1x1x128xf32> to vector<1x128xf32>
    %254 = vector.broadcast %253 : vector<1x128xf32> to vector<16x128xf32>
    %255 = arith.addf %251, %254 : vector<16x128xf32>
    %256 = arith.mulf %255, %255 : vector<16x128xf32>
    %257 = arith.mulf %255, %256 : vector<16x128xf32>
    %cst_87 = arith.constant 4.471500e-02 : f32
    %258 = vector.broadcast %cst_87 : f32 to vector<16x128xf32>
    %259 = arith.mulf %258, %257 : vector<16x128xf32>
    %260 = arith.addf %255, %259 : vector<16x128xf32>
    %cst_88 = arith.constant 0.797884583 : f32
    %261 = vector.broadcast %cst_88 : f32 to vector<16x128xf32>
    %262 = arith.mulf %261, %260 : vector<16x128xf32>
    %263 = math.tanh %262 : vector<16x128xf32>
    %cst_89 = arith.constant 1.000000e+00 : f32
    %264 = vector.broadcast %cst_89 : f32 to vector<16x128xf32>
    %265 = arith.addf %264, %263 : vector<16x128xf32>
    %cst_90 = arith.constant 5.000000e-01 : f32
    %266 = vector.broadcast %cst_90 : f32 to vector<16x128xf32>
    %267 = arith.mulf %266, %265 : vector<16x128xf32>
    %268 = arith.mulf %255, %267 : vector<16x128xf32>
    %269 = arith.truncf %268 : vector<16x128xf32> to vector<16x128xbf16>
    %c0_91 = arith.constant 0 : index
    %c0_92 = arith.constant 0 : index
    %c0_93 = arith.constant 0 : index
    %270 = vector.load %arg23[%c0_91, %c0_92, %c0_93] : memref<1x128x32xbf16, #tpu.memory_space<vmem>>, vector<1x128x32xbf16>
    %271 = vector.shape_cast %270 : vector<1x128x32xbf16> to vector<128x32xbf16>
    %cst_94 = arith.constant dense<0.000000e+00> : vector<16x32xf32>
    %272 = tpu.matmul %269, %271, %cst_94 {dimension_numbers = #tpu.dot_dimension_numbers<[1], [0], [0], [1], [0, 0, 1, 1], [], []>} : vector<16x128xbf16>, vector<128x32xbf16>, vector<16x32xf32> -> vector<16x32xf32>
    %273 = arith.addf %221, %272 : vector<16x32xf32>
    %c0_95 = arith.constant 0 : index
    %c0_96 = arith.constant 0 : index
    %c0_97 = arith.constant 0 : index
    %274 = vector.load %arg24[%c0_95, %c0_96, %c0_97] : memref<1x1x32xf32, #tpu.memory_space<vmem>>, vector<1x1x32xf32>
    %275 = vector.shape_cast %274 : vector<1x1x32xf32> to vector<1x32xf32>
    %276 = vector.broadcast %275 : vector<1x32xf32> to vector<16x32xf32>
    %277 = arith.addf %273, %276 : vector<16x32xf32>
    %c0_98 = arith.constant 0 : index
    %c0_99 = arith.constant 0 : index
    %278 = vector.load %arg32[%c0_98, %c0_99] : memref<16x32xf32, #tpu.memory_space<vmem>>, vector<16x32xf32>
    tpu.vector_store %arg32[%c0_98, %c0_99], %277 {strides = array<i32>} : memref<16x32xf32, #tpu.memory_space<vmem>>, vector<16x32xf32>,
    %c1_i32_100 = arith.constant 1 : i32
    %279 = arith.cmpi eq, %arg1, %c1_i32_100 : i32
    %280 = arith.extui %279 : i1 to i32
    %c0_i32_101 = arith.constant 0 : i32
    %281 = arith.cmpi ne, %280, %c0_i32_101 : i32
    scf.if %281 {
      %cst_102 = arith.constant dense<0.000000e+00> : vector<16xf32>
      %282 = vector.multi_reduction <add>, %277, %cst_102 [1] : vector<16x32xf32> to vector<16xf32>
      %283 = vector.shape_cast %282 : vector<16xf32> to vector<16x1xf32>
      %cst_103 = arith.constant 3.200000e+01 : f32
      %284 = vector.broadcast %cst_103 : f32 to vector<16x1xf32>
      %285 = arith.divf %283, %284 : vector<16x1xf32>
      %286 = vector.broadcast %285 : vector<16x1xf32> to vector<16x32xf32>
      %287 = arith.subf %277, %286 : vector<16x32xf32>
      %288 = arith.mulf %287, %287 : vector<16x32xf32>
      %cst_104 = arith.constant dense<0.000000e+00> : vector<16xf32>
      %289 = vector.multi_reduction <add>, %288, %cst_104 [1] : vector<16x32xf32> to vector<16xf32>
      %290 = vector.shape_cast %289 : vector<16xf32> to vector<16x1xf32>
      %cst_105 = arith.constant 3.200000e+01 : f32
      %291 = vector.broadcast %cst_105 : f32 to vector<16x1xf32>
      %292 = arith.divf %290, %291 : vector<16x1xf32>
      %293 = vector.broadcast %285 : vector<16x1xf32> to vector<16x32xf32>
      %294 = arith.subf %277, %293 : vector<16x32xf32>
      %cst_106 = arith.constant 9.99999974E-6 : f32
      %295 = vector.broadcast %cst_106 : f32 to vector<16x1xf32>
      %296 = arith.addf %292, %295 : vector<16x1xf32>
      %297 = math.rsqrt %296 : vector<16x1xf32>
      %298 = vector.broadcast %297 : vector<16x1xf32> to vector<16x32xf32>
      %299 = arith.mulf %294, %298 : vector<16x32xf32>
      %c0_107 = arith.constant 0 : index
      %c0_108 = arith.constant 0 : index
      %300 = vector.load %arg25[%c0_107, %c0_108] : memref<1x32xf32, #tpu.memory_space<vmem>>, vector<1x32xf32>
      %301 = vector.broadcast %300 : vector<1x32xf32> to vector<16x32xf32>
      %302 = arith.mulf %299, %301 : vector<16x32xf32>
      %c0_109 = arith.constant 0 : index
      %c0_110 = arith.constant 0 : index
      %303 = vector.load %arg26[%c0_109, %c0_110] : memref<1x32xf32, #tpu.memory_space<vmem>>, vector<1x32xf32>
      %304 = vector.broadcast %303 : vector<1x32xf32> to vector<16x32xf32>
      %305 = arith.addf %302, %304 : vector<16x32xf32>
      %306 = vector.extract_strided_slice %305 {offsets = [0, 0], sizes = [8, 32], strides = [1, 1]} : vector<16x32xf32> to vector<8x32xf32>
      %cst_111 = arith.constant dense<0.000000e+00> : vector<32xf32>
      %307 = vector.multi_reduction <add>, %306, %cst_111 [0] : vector<8x32xf32> to vector<32xf32>
      %308 = vector.shape_cast %307 : vector<32xf32> to vector<1x32xf32>
      %cst_112 = arith.constant 1.250000e-01 : f32
      %309 = vector.broadcast %cst_112 : f32 to vector<1x32xf32>
      %310 = arith.mulf %308, %309 : vector<1x32xf32>
      %311 = vector.extract_strided_slice %305 {offsets = [8, 0], sizes = [8, 32], strides = [1, 1]} : vector<16x32xf32> to vector<8x32xf32>
      %cst_113 = arith.constant dense<0.000000e+00> : vector<32xf32>
      %312 = vector.multi_reduction <add>, %311, %cst_113 [0] : vector<8x32xf32> to vector<32xf32>
      %313 = vector.shape_cast %312 : vector<32xf32> to vector<1x32xf32>
      %cst_114 = arith.constant 1.250000e-01 : f32
      %314 = vector.broadcast %cst_114 : f32 to vector<1x32xf32>
      %315 = arith.mulf %313, %314 : vector<1x32xf32>
      %316 = tpu.concatenate %310, %315 in 0 : vector<1x32xf32>, vector<1x32xf32> -> vector<2x32xf32>
      %317 = arith.truncf %316 : vector<2x32xf32> to vector<2x32xbf16>
      %c0_115 = arith.constant 0 : index
      %c0_116 = arith.constant 0 : index
      %318 = vector.load %arg27[%c0_115, %c0_116] : memref<32x4xbf16, #tpu.memory_space<vmem>>, vector<32x4xbf16>
      %cst_117 = arith.constant dense<0.000000e+00> : vector<2x4xf32>
      %319 = tpu.matmul %317, %318, %cst_117 {dimension_numbers = #tpu.dot_dimension_numbers<[1], [0], [0], [1], [0, 0, 1, 1], [], []>} : vector<2x32xbf16>, vector<32x4xbf16>, vector<2x4xf32> -> vector<2x4xf32>
      %c0_118 = arith.constant 0 : index
      %c0_119 = arith.constant 0 : index
      %320 = vector.load %arg28[%c0_118, %c0_119] : memref<1x4xf32, #tpu.memory_space<vmem>>, vector<1x4xf32>
      %321 = vector.broadcast %320 : vector<1x4xf32> to vector<2x4xf32>
      %322 = arith.addf %319, %321 : vector<2x4xf32>
      %c0_120 = arith.constant 0 : index
      %c0_121 = arith.constant 0 : index
      %323 = vector.load %arg29[%c0_120, %c0_121] : memref<2x4xf32, #tpu.memory_space<vmem>>, vector<2x4xf32>
      tpu.vector_store %arg29[%c0_120, %c0_121], %322 {strides = array<i32>} : memref<2x4xf32, #tpu.memory_space<vmem>>, vector<2x4xf32>,
      %cst_122 = arith.constant 0.000000e+00 : f32
      %324 = vector.broadcast %cst_122 : f32 to vector<2x4xf32>
      %325 = arith.subf %324, %322 : vector<2x4xf32>
      %326 = math.exp %325 : vector<2x4xf32>
      %cst_123 = arith.constant 1.000000e+00 : f32
      %327 = vector.broadcast %cst_123 : f32 to vector<2x4xf32>
      %328 = arith.addf %327, %326 : vector<2x4xf32>
      %cst_124 = arith.constant 1.000000e+00 : f32
      %329 = vector.broadcast %cst_124 : f32 to vector<2x4xf32>
      %330 = arith.divf %329, %328 : vector<2x4xf32>
      %c0_125 = arith.constant 0 : index
      %c0_126 = arith.constant 0 : index
      %331 = vector.load %arg30[%c0_125, %c0_126] : memref<2x4xf32, #tpu.memory_space<vmem>>, vector<2x4xf32>
      tpu.vector_store %arg30[%c0_125, %c0_126], %330 {strides = array<i32>} : memref<2x4xf32, #tpu.memory_space<vmem>>, vector<2x4xf32>,
      %cst_127 = arith.constant 0.000000e+00 : f32
      %332 = vector.broadcast %cst_127 : f32 to vector<2x4xf32>
      %333 = arith.maximumf %322, %332 : vector<2x4xf32>
      %334 = math.absf %322 : vector<2x4xf32>
      %cst_128 = arith.constant 0.000000e+00 : f32
      %335 = vector.broadcast %cst_128 : f32 to vector<2x4xf32>
      %336 = arith.subf %335, %334 : vector<2x4xf32>
      %337 = math.exp %336 : vector<2x4xf32>
      %cst_129 = arith.constant 1.000000e+00 : f32
      %338 = vector.broadcast %cst_129 : f32 to vector<2x4xf32>
      %339 = arith.addf %338, %337 : vector<2x4xf32>
      %340 = math.log %339 : vector<2x4xf32>
      %341 = arith.addf %333, %340 : vector<2x4xf32>
      %cst_130 = arith.constant 0.000000e+00 : f32
      %342 = vector.broadcast %cst_130 : f32 to vector<2x4xf32>
      %343 = arith.subf %342, %341 : vector<2x4xf32>
      %cst_131 = arith.constant 0.000000e+00 : f32
      %344 = vector.broadcast %cst_131 : f32 to vector<2x1xf32>
      %345 = vector.extract_strided_slice %343 {offsets = [0, 0], sizes = [2, 3], strides = [1, 1]} : vector<2x4xf32> to vector<2x3xf32>
      %346 = tpu.concatenate %344, %345 in 1 : vector<2x1xf32>, vector<2x3xf32> -> vector<2x4xf32>
      %347 = arith.addf %343, %346 : vector<2x4xf32>
      %cst_132 = arith.constant 0.000000e+00 : f32
      %348 = vector.broadcast %cst_132 : f32 to vector<2x2xf32>
      %349 = vector.extract_strided_slice %347 {offsets = [0, 0], sizes = [2, 2], strides = [1, 1]} : vector<2x4xf32> to vector<2x2xf32>
      %350 = tpu.concatenate %348, %349 in 1 : vector<2x2xf32>, vector<2x2xf32> -> vector<2x4xf32>
      %351 = arith.addf %347, %350 : vector<2x4xf32>
      %352 = math.exp %351 : vector<2x4xf32>
      %c0_133 = arith.constant 0 : index
      %c0_134 = arith.constant 0 : index
      %353 = vector.load %arg31[%c0_133, %c0_134] : memref<2x4xf32, #tpu.memory_space<vmem>>, vector<2x4xf32>
      tpu.vector_store %arg31[%c0_133, %c0_134], %352 {strides = array<i32>} : memref<2x4xf32, #tpu.memory_space<vmem>>, vector<2x4xf32>,
    } else {
    }
    return
  }
  func.func @transform_0(%arg0: i32, %arg1: i32) -> (i32, i32, i32) {
    %c0_i32 = arith.constant 0 : i32
    %c0_i32_0 = arith.constant 0 : i32
    %c0_i32_1 = arith.constant 0 : i32
    return %arg0, %c0_i32, %c0_i32_0 : i32, i32, i32
  }
  func.func @transform_1(%arg0: i32, %arg1: i32) -> (i32, i32) {
    %c0_i32 = arith.constant 0 : i32
    %c0_i32_0 = arith.constant 0 : i32
    %c0_i32_1 = arith.constant 0 : i32
    return %c0_i32, %c0_i32_0 : i32, i32
  }
  func.func @transform_2(%arg0: i32, %arg1: i32) -> (i32, i32) {
    %c0_i32 = arith.constant 0 : i32
    %c0_i32_0 = arith.constant 0 : i32
    %c0_i32_1 = arith.constant 0 : i32
    return %c0_i32, %c0_i32_0 : i32, i32
  }
  func.func @transform_3(%arg0: i32, %arg1: i32) -> (i32, i32, i32) {
    %c0_i32 = arith.constant 0 : i32
    %c0_i32_0 = arith.constant 0 : i32
    %c0_i32_1 = arith.constant 0 : i32
    return %arg1, %c0_i32, %c0_i32_0 : i32, i32, i32
  }
  func.func @transform_4(%arg0: i32, %arg1: i32) -> (i32, i32, i32) {
    %c0_i32 = arith.constant 0 : i32
    %c0_i32_0 = arith.constant 0 : i32
    %c0_i32_1 = arith.constant 0 : i32
    return %arg1, %c0_i32, %c0_i32_0 : i32, i32, i32
  }
  func.func @transform_5(%arg0: i32, %arg1: i32) -> (i32, i32, i32) {
    %c0_i32 = arith.constant 0 : i32
    %c0_i32_0 = arith.constant 0 : i32
    %c0_i32_1 = arith.constant 0 : i32
    return %arg1, %c0_i32, %c0_i32_0 : i32, i32, i32
  }
  func.func @transform_6(%arg0: i32, %arg1: i32) -> (i32, i32, i32) {
    %c0_i32 = arith.constant 0 : i32
    %c0_i32_0 = arith.constant 0 : i32
    %c0_i32_1 = arith.constant 0 : i32
    return %arg1, %c0_i32, %c0_i32_0 : i32, i32, i32
  }
  func.func @transform_7(%arg0: i32, %arg1: i32) -> (i32, i32, i32) {
    %c0_i32 = arith.constant 0 : i32
    %c0_i32_0 = arith.constant 0 : i32
    %c0_i32_1 = arith.constant 0 : i32
    return %arg1, %c0_i32, %c0_i32_0 : i32, i32, i32
  }
  func.func @transform_8(%arg0: i32, %arg1: i32) -> (i32, i32, i32) {
    %c0_i32 = arith.constant 0 : i32
    %c0_i32_0 = arith.constant 0 : i32
    %c0_i32_1 = arith.constant 0 : i32
    return %arg1, %c0_i32, %c0_i32_0 : i32, i32, i32
  }
  func.func @transform_9(%arg0: i32, %arg1: i32) -> (i32, i32, i32) {
    %c0_i32 = arith.constant 0 : i32
    %c0_i32_0 = arith.constant 0 : i32
    %c0_i32_1 = arith.constant 0 : i32
    return %arg1, %c0_i32, %c0_i32_0 : i32, i32, i32
  }
  func.func @transform_10(%arg0: i32, %arg1: i32) -> (i32, i32, i32) {
    %c0_i32 = arith.constant 0 : i32
    %c0_i32_0 = arith.constant 0 : i32
    %c0_i32_1 = arith.constant 0 : i32
    return %arg1, %c0_i32, %c0_i32_0 : i32, i32, i32
  }
  func.func @transform_11(%arg0: i32, %arg1: i32) -> (i32, i32, i32) {
    %c0_i32 = arith.constant 0 : i32
    %c0_i32_0 = arith.constant 0 : i32
    %c0_i32_1 = arith.constant 0 : i32
    return %arg1, %c0_i32, %c0_i32_0 : i32, i32, i32
  }
  func.func @transform_12(%arg0: i32, %arg1: i32) -> (i32, i32, i32) {
    %c0_i32 = arith.constant 0 : i32
    %c0_i32_0 = arith.constant 0 : i32
    %c0_i32_1 = arith.constant 0 : i32
    return %arg1, %c0_i32, %c0_i32_0 : i32, i32, i32
  }
  func.func @transform_13(%arg0: i32, %arg1: i32) -> (i32, i32, i32) {
    %c0_i32 = arith.constant 0 : i32
    %c0_i32_0 = arith.constant 0 : i32
    %c0_i32_1 = arith.constant 0 : i32
    return %arg1, %c0_i32, %c0_i32_0 : i32, i32, i32
  }
  func.func @transform_14(%arg0: i32, %arg1: i32) -> (i32, i32, i32) {
    %c0_i32 = arith.constant 0 : i32
    %c0_i32_0 = arith.constant 0 : i32
    %c0_i32_1 = arith.constant 0 : i32
    return %arg1, %c0_i32, %c0_i32_0 : i32, i32, i32
  }
  func.func @transform_15(%arg0: i32, %arg1: i32) -> (i32, i32, i32) {
    %c0_i32 = arith.constant 0 : i32
    %c0_i32_0 = arith.constant 0 : i32
    %c0_i32_1 = arith.constant 0 : i32
    return %arg1, %c0_i32, %c0_i32_0 : i32, i32, i32
  }
  func.func @transform_16(%arg0: i32, %arg1: i32) -> (i32, i32, i32) {
    %c0_i32 = arith.constant 0 : i32
    %c0_i32_0 = arith.constant 0 : i32
    %c0_i32_1 = arith.constant 0 : i32
    return %arg1, %c0_i32, %c0_i32_0 : i32, i32, i32
  }
  func.func @transform_17(%arg0: i32, %arg1: i32) -> (i32, i32, i32) {
    %c0_i32 = arith.constant 0 : i32
    %c0_i32_0 = arith.constant 0 : i32
    %c0_i32_1 = arith.constant 0 : i32
    return %arg1, %c0_i32, %c0_i32_0 : i32, i32, i32
  }
  func.func @transform_18(%arg0: i32, %arg1: i32) -> (i32, i32, i32) {
    %c0_i32 = arith.constant 0 : i32
    %c0_i32_0 = arith.constant 0 : i32
    %c0_i32_1 = arith.constant 0 : i32
    return %arg1, %c0_i32, %c0_i32_0 : i32, i32, i32
  }
  func.func @transform_19(%arg0: i32, %arg1: i32) -> (i32, i32, i32) {
    %c0_i32 = arith.constant 0 : i32
    %c0_i32_0 = arith.constant 0 : i32
    %c0_i32_1 = arith.constant 0 : i32
    return %arg1, %c0_i32, %c0_i32_0 : i32, i32, i32
  }
  func.func @transform_20(%arg0: i32, %arg1: i32) -> (i32, i32, i32) {
    %c0_i32 = arith.constant 0 : i32
    %c0_i32_0 = arith.constant 0 : i32
    %c0_i32_1 = arith.constant 0 : i32
    return %arg1, %c0_i32, %c0_i32_0 : i32, i32, i32
  }
  func.func @transform_21(%arg0: i32, %arg1: i32) -> (i32, i32, i32) {
    %c0_i32 = arith.constant 0 : i32
    %c0_i32_0 = arith.constant 0 : i32
    %c0_i32_1 = arith.constant 0 : i32
    return %arg1, %c0_i32, %c0_i32_0 : i32, i32, i32
  }
  func.func @transform_22(%arg0: i32, %arg1: i32) -> (i32, i32, i32) {
    %c0_i32 = arith.constant 0 : i32
    %c0_i32_0 = arith.constant 0 : i32
    %c0_i32_1 = arith.constant 0 : i32
    return %arg1, %c0_i32, %c0_i32_0 : i32, i32, i32
  }
  func.func @transform_23(%arg0: i32, %arg1: i32) -> (i32, i32) {
    %c0_i32 = arith.constant 0 : i32
    %c0_i32_0 = arith.constant 0 : i32
    %c0_i32_1 = arith.constant 0 : i32
    return %c0_i32, %c0_i32_0 : i32, i32
  }
  func.func @transform_24(%arg0: i32, %arg1: i32) -> (i32, i32) {
    %c0_i32 = arith.constant 0 : i32
    %c0_i32_0 = arith.constant 0 : i32
    %c0_i32_1 = arith.constant 0 : i32
    return %c0_i32, %c0_i32_0 : i32, i32
  }
  func.func @transform_25(%arg0: i32, %arg1: i32) -> (i32, i32) {
    %c0_i32 = arith.constant 0 : i32
    %c0_i32_0 = arith.constant 0 : i32
    %c0_i32_1 = arith.constant 0 : i32
    return %c0_i32, %c0_i32_0 : i32, i32
  }
  func.func @transform_26(%arg0: i32, %arg1: i32) -> (i32, i32) {
    %c0_i32 = arith.constant 0 : i32
    %c0_i32_0 = arith.constant 0 : i32
    %c0_i32_1 = arith.constant 0 : i32
    return %c0_i32, %c0_i32_0 : i32, i32
  }
  func.func @transform_27(%arg0: i32, %arg1: i32) -> (i32, i32) {
    %c0_i32 = arith.constant 0 : i32
    %c0_i32_0 = arith.constant 0 : i32
    return %arg0, %c0_i32 : i32, i32
  }
  func.func @transform_28(%arg0: i32, %arg1: i32) -> (i32, i32) {
    %c0_i32 = arith.constant 0 : i32
    %c0_i32_0 = arith.constant 0 : i32
    return %arg0, %c0_i32 : i32, i32
  }
  func.func @transform_29(%arg0: i32, %arg1: i32) -> (i32, i32) {
    %c0_i32 = arith.constant 0 : i32
    %c0_i32_0 = arith.constant 0 : i32
    return %arg0, %c0_i32 : i32, i32
  }
}

</mosaic_0001>

<bundles_post_ra>
// kernel: tpu_custom_call.1
= control target key start
LH: loop header
LB: loop body
LE: loop exit
PB: predicated region body
PF: predicated region fallthrough
CT: control target
= control target key end

     0   :  { %s4283_s6 = smov 1   ;;  %s4284_s10 = smov 2   ;;  %s5063_s0 = inlined_call_operand.smem [shape: u32[30], index: -1, kind: input, shape index: {}] }
   0x1   :  { %s4338_s5 = sld [smem:[%s5063_s0]]   ;;  %s4285_s14 = smov 3  }
   0x2   :  { %s4343_s9 = sld [smem:[%s5063_s0 + %s4283_s6]]   ;;  %s4286_s18 = smov 4  }
   0x3   :  { %s4348_s13 = sld [smem:[%s5063_s0 + %s4284_s10]]   ;;  %s4287_s22 = smov 5  }
   0x4   :  { %s4353_s17 = sld [smem:[%s5063_s0 + %s4285_s14]]   ;;  %s4288_s26 = smov 6  }
   0x5   :  { %s4358_s21 = sld [smem:[%s5063_s0 + %s4286_s18]]   ;;  %s4289_s30 = smov 7  }
   0x6   :  { %s4363_s25 = sld [smem:[%s5063_s0 + %s4287_s22]]   ;;  %s4290_s4 = smov 8  }
   0x7   :  { %5085 = sst [smem:[#allocation31_spill]] %s4338_s5  ;;  %s4291_s10 = smov 9  }
   0x8   :  { %5086 = sst [smem:[#allocation32_spill]] %s4343_s9  ;;  %s4292_s15 = smov 10  }
   0x9   :  { %5087 = sst [smem:[#allocation33_spill]] %s4348_s13  ;;  %s4293_s20 = smov 11  }
   0xa   :  { %5088 = sst [smem:[#allocation34_spill]] %s4353_s17  ;;  %s4295_s1 = smov 13  }
   0xb   :  { %s4368_s29 = sld [smem:[%s5063_s0 + %s4288_s26]]   ;;  %s4294_s26 = smov 12  }
   0xc   :  { %5089 = sst [smem:[#allocation35_spill]] %s4363_s25  ;;  %s4296_s7 = smov 14  }
   0xd   :  { %s4373_s3 = sld [smem:[%s5063_s0 + %s4289_s30]]   ;;  %s4298_s22 = smov 16  }
   0xe   :  { %s4378_s8 = sld [smem:[%s5063_s0 + %s4290_s4]]   ;;  %s4299_s28 = smov 17  }
   0xf   :  { %s4383_s14 = sld [smem:[%s5063_s0 + %s4291_s10]]  }
  0x10   :  { %s4388_s19 = sld [smem:[%s5063_s0 + %s4292_s15]]   ;;  %s4297_s15 = smov 15  }
  0x11   :  { %s4393_s24 = sld [smem:[%s5063_s0 + %s4293_s20]]  }
  0x12   :  { %s4398_s30 = sld [smem:[%s5063_s0 + %s4294_s26]]  }
  0x13   :  { %5090 = sst [smem:[#allocation36_spill]] %s4373_s3 }
  0x14   :  { %5091 = sst [smem:[#allocation37_spill]] %s4378_s8 }
  0x15   :  { %5092 = sst [smem:[#allocation38_spill]] %s4383_s14 }
  0x16   :  { %5093 = sst [smem:[#allocation39_spill]] %s4388_s19 }
  0x17   :  { %5094 = sst [smem:[#allocation40_spill]] %s4393_s24 }
  0x18   :  { %s4403_s6 = sld [smem:[%s5063_s0 + %s4295_s1]]  }
  0x19   :  { %s4408_s12 = sld [smem:[%s5063_s0 + %s4296_s7]]   ;;  %s4300_s7 = smov 18  }
  0x1a   :  { %s4413_s20 = sld [smem:[%s5063_s0 + %s4297_s15]]   ;;  %s4301_s15 = smov 19  }
  0x1b   :  { %s4418_s27 = sld [smem:[%s5063_s0 + %s4298_s22]]   ;;  %s4302_s22 = smov 20  }
  0x1c   :  { %s4423_s4 = sld [smem:[%s5063_s0 + %s4299_s28]]   ;;  %s4303_s28 = smov 21  }
  0x1d   :  { %s4428_s5 = sld [smem:[%s5063_s0 + %s4300_s7]]   ;;  %s4304_s7 = smov 22  }
  0x1e   :  { %5095 = sst [smem:[#allocation41_spill]] %s4403_s6 }
  0x1f   :  { %5096 = sst [smem:[#allocation42_spill]] %s4408_s12 }
  0x20   :  { %5097 = sst [smem:[#allocation43_spill]] %s4413_s20 }
  0x21   :  { %s4433_s20 = sld [smem:[%s5063_s0 + %s4301_s15]]   ;;  %s4305_s15 = smov 23  }
  0x22   :  { %5098 = sst [smem:[#allocation44_spill]] %s4423_s4 }
  0x23   :  { %5099 = sst [smem:[#allocation45_spill]] %s4428_s5 }
  0x24   :  { %s4438_s24 = sld [smem:[%s5063_s0 + %s4302_s22]]   ;;  %s4306_s22 = smov 24  }
  0x25   :  { %s4443_s14 = sld [smem:[%s5063_s0 + %s4303_s28]]   ;;  %s4307_s28 = smov 25  }
  0x26   :  { %s4448_s3 = sld [smem:[%s5063_s0 + %s4304_s7]]   ;;  %s4308_s7 = smov 26  }
  0x27   :  { %5100 = sst [smem:[#allocation46_spill]] %s4433_s20 }
  0x28   :  { %s4453_s20 = sld [smem:[%s5063_s0 + %s4305_s15]]   ;;  %s4309_s15 = smov 27  }
  0x29   :  { %s4458_s25 = sld [smem:[%s5063_s0 + %s4306_s22]]   ;;  %s4310_s22 = smov 28  }
  0x2a   :  { %s4468_s17 = sld [smem:[%s5063_s0 + %s4308_s7]]  }
  0x2b   :  { %5101 = sst [smem:[#allocation47_spill]] %s4443_s14 }
  0x2c   :  { %5102 = sst [smem:[#allocation48_spill]] %s4448_s3 }
  0x2d   :  { %s4463_s14 = sld [smem:[%s5063_s0 + %s4307_s28]]   ;;  %s4311_s28 = smov 29  }
  0x2e   :  { %s4473_s3 = sld [smem:[%s5063_s0 + %s4309_s15]]  }
  0x2f   :  { %5103 = sst [smem:[#allocation49_spill]] %s4458_s25 }
  0x30   :  { %5105 = sst [smem:[#allocation51_spill]] %s4468_s17 }
  0x31   :  { %s4478_s25 = sld [smem:[%s5063_s0 + %s4310_s22]]  }
  0x33   :  { %5104 = sst [smem:[#allocation50_spill]] %s4463_s14 }
  0x34   :  { %5106 = sst [smem:[#allocation52_spill]] %s4473_s3 }
  0x35   :  { %s4483_s14 = sld [smem:[%s5063_s0 + %s4311_s28]]  }
  0x37   :  { %5107 = sst [smem:[#allocation53_spill]] %s4478_s25 }
  0x3b   :  { %5108 = sst [smem:[#allocation54_spill]] %s4483_s14 }
  0x3c   :  { %65 = vsyncpa [#allocation4], 0 }
  0x3d   :  { %66 = vsyncpa [#allocation7], 0 }
  0x3e   :  { %67 = vsyncpa [#allocation5], 0 }
  0x3f   :  { %68 = vsyncpa [#allocation23], 0  ;;  %s4485_s7 = smov 0   ;;  %s4487_s10 = smov 0  }
  0x40   :  { %s4489_s11 = smov 0   ;;  %s4491_s15 = smov 0  }
  0x41   :  { %s4493_s16 = smov 0   ;;  %s4495_s18 = smov 0  }
  0x42 LB: > { %s5109_s19 = sld [smem:[#allocation39_spill]]  ;;  %s4514_s0 = sadd.s32 4294967295, %s4281_s18   ;;  %s4265_s10 = sphi %s4487_s10, %s5164_s10   ;;  %s4261_s7 = sphi %s4485_s7, %s5163_s7   ;;  %s4281_s18 = sphi %s4495_s18, %s74_s18   ;;  %s4277_s16 = sphi %s4493_s16, %s5168_s16   ;;  %s4273_s15 = sphi %s4491_s15, %s5167_s15   ;;  %s4269_s11 = sphi %s4489_s11, %s5165_s11  }
  0x43   : > { %s5110_s13 = sld [smem:[#allocation33_spill]]  ;;  %s83_s22 = sadd.s32 1, %s4277_s16 }
  0x44   : > { %s5111_s12 = sld [smem:[#allocation42_spill]]  ;;  %p84_p0 = scmp.ge.s32.totalorder %s83_s22, 2 }
  0x45   : > { %s5112_s8 = sld [smem:[#allocation37_spill]]  ;;  %s187_s23 = sadd.s32 1, %s4269_s11 }
  0x46   : > { %s5113_s6 = sld [smem:[#allocation41_spill]]  ;;  %p194_p1 = scmp.ne.s32.totalorder %s4269_s11, %s4265_s10 }
  0x47   : > { %s5114_s5 = sld [smem:[#allocation45_spill]]  ;;  %p195_p2 = scmp.eq.s32.totalorder %s4281_s18, 0 }
  0x48   : > { %s5115_s4 = sld [smem:[#allocation44_spill]]  ;;  %s5170_s22 = smov (%p84_p0, %s83_s22), 0 }
  0x49   : > { %s5116_s9 = sld [smem:[#allocation32_spill]]  ;;  %p4523_p3 = por %p195_p2, %p194_p1 }
  0x4a   : > { %5117 = sst [smem:[#allocation55_spill]] %s4265_s10  ;;  %p200_p4 = scmp.ne.s32.totalorder %s4265_s10, %s4261_s7 }
  0x4b   : > { %5118 = sst [smem:[#allocation56_spill]] %s4269_s11  ;;  %s184_s28 = ssub.s32 %s4277_s16, %s5170_s22 }
  0x4c   : > { %5119 = sst [smem:[#allocation57_spill]] %s4273_s15  ;;  %p201_p5 = scmp.eq.s32.totalorder %s4514_s0, 0 }
  0x4d   : > { %5120 = sst [smem:[#allocation58_spill]] %s5170_s22  ;;  %p185_p6 = scmp.eq.s32.totalorder %s184_s28, 0 }
  0x4e   : > { %p3200_p7 = scmp.ge.s32.totalorder %s4281_s18, 1  ;;  %p4534_p8 = por %p201_p5, %p200_p4 }
  0x4f   : > { %p841_p9 = scmp.lt.s32.totalorder %s4281_s18, 3  ;;  %s861_s7 = sshll.u32 %s5116_s9, 4  ;;  %s862_s7 = int_to_ptr.hbm [resolvable:$true] %s861_s7 }
  0x50   : > { %s5122_s1 = scalar_select %p4534_p8, 1, 0 }
  0x51   : > { %s4540_s2 = scalar_select %p185_p6, %s4269_s11, %s187_s23  }
  0x52   : > { %5123 = sst [smem:[#allocation59_spill]] %s5122_s1  ;;  %p4542_p10 = pnand %p3200_p7, %p841_p9 }
  0x53   : > { %5124 = sst [smem:[#allocation60_spill]] %s4540_s2  ;;  %s4312_s28 = smov [#allocation3]  }
  0x54   : > { %p3420_p11 = pneg %p4542_p10  ;;  %s863_s22 = sshll.u32 %s4312_s28, 4  ;;  %s864_s22 = int_to_ptr.vmem [resolvable:$true] %s863_s22 }
  0x55   : > { %p3470_p13 = scmp.lt.s32.totalorder %s4281_s18, 2  ;;  %s3677_s23 = sshra.s32 %s862_s7, 4  ;;  %s3678_s23 = int_to_ptr.hbm [resolvable:$true] %s3677_s23 }
  0x56   : > { %p4551_p12 = pnand %p3420_p11, %p201_p5  ;;  %s3679_s2 = scalar_lea.hbm %s3678_s23, 16 }
  0x57   : > { %p3680_p0 = scmp.ne.s32.totalorder %s3678_s23, %s3679_s2  ;;  %s3684_s28 = scalar_lea.hbm %s5116_s9, 16 }
  0x58   : > { %p3681_p1 = pneg %p4551_p12  ;;  %p3685_p6 = scmp.lt.s32.totalorder %s3678_s23, %s5116_s9 }
  0x59   : > { %p3686_p7 = scmp.lt.s32.totalorder %s3684_s28, %s3679_s2 }
  0x5a   : > { %p3682_p2 = pnand %p3681_p1, %p3680_p0 }
  0x5b   : > { %p3687_p9 = por %p3686_p7, %p3685_p6 }
  0x5c   : > { %p3683_p4 = pneg %p3682_p2 }
  0x5e   : > { %p3688_p11 = pnand %p3687_p9, %p3683_p4 }
  0x60   : > { %3691 = shalt.err (!%p3688_p11)
}
  0x61   : > { %s4313_s25 = smov 64   ;;  %s4314_s17 = smov 4  }
  0x62   : > { %3423 = dma.hbm_to_vmem [thread:$0]  (!%p4551_p12), %s862_s7, 256, %s864_s22, [#allocation4], %s4313_s25, %s4313_s25, %s4314_s17  }
  0x63   : > { %s4566_s15 = sand.u32 1, %s4269_s11   ;;  %p4572_p0 = pnand %p3470_p13, %p4523_p3 }
  0x64   : > { %s916_s23 = sand.u32 1, %s4281_s18   ;;  %s922_s28 = scalar_lea.hbm %s4358_s21, %s4277_s16 }
  0x65   : > { %s919_s9 = scalar_lea.vmem [#allocation8], %s4566_s15  ;;  %s924_s10 = sshll.u32 %s922_s28, 4  ;;  %s925_s10 = int_to_ptr.hbm [resolvable:$true] %s924_s10 }
  0x66   : > { %s926_s1 = sshll.u32 %s919_s9, 4  ;;  %s4580_s17 = scalar_lea.sflag [#allocation4], %s916_s23  ;;  %s927_s1 = int_to_ptr.vmem [resolvable:$true] %s926_s1 }
  0x67   : > { %s3707_s25 = sshra.s32 %s925_s10, 4  ;;  %p4584_p3 = pneg %p4572_p0  ;;  %s3708_s25 = int_to_ptr.hbm [resolvable:$true] %s3707_s25 }
  0x68   : > { %s3709_s22 = scalar_lea.hbm %s3708_s25, 1  ;;  %s3714_s7 = scalar_lea.hbm %s4358_s21, 2 }
  0x69   : > { %p3710_p2 = scmp.ne.s32.totalorder %s3708_s25, %s3709_s22  ;;  %p3715_p6 = scmp.lt.s32.totalorder %s3708_s25, %s4358_s21 }
  0x6a   : > { %p3716_p7 = scmp.lt.s32.totalorder %s3714_s7, %s3709_s22 }
  0x6b   : > { %p3712_p13 = pnand %p4584_p3, %p3710_p2 }
  0x6c   : > { %p3717_p9 = por %p3716_p7, %p3715_p6 }
  0x6d   : > { %p3713_p4 = pneg %p3712_p13 }
  0x6f   : > { %p3718_p11 = pnand %p3717_p9, %p3713_p4 }
  0x71   : > { %3721 = shalt.err (!%p3718_p11)
}
  0x72   : > { %3433 = dma.hbm_to_vmem [thread:$0]  (!%p4572_p0), %s925_s10, 16, %s927_s1, %s4580_s17  }
  0x73   : > { %s947_s9 = scalar_lea.hbm %s4368_s29, %s4277_s16  ;;  %s944_s23 = scalar_lea.vmem [#allocation9], %s4566_s15 }
  0x74   : > { %s951_s28 = sshll.u32 %s944_s23, 4  ;;  %s949_s11 = sshll.u32 %s947_s9, 4  ;;  %s952_s28 = int_to_ptr.vmem [resolvable:$true] %s951_s28  ;;  %s950_s11 = int_to_ptr.hbm [resolvable:$true] %s949_s11 }
  0x75   : > { %s3737_s25 = sshra.s32 %s950_s11, 4  ;;  %s3744_s7 = scalar_lea.hbm %s4368_s29, 2  ;;  %s3738_s25 = int_to_ptr.hbm [resolvable:$true] %s3737_s25 }
  0x76   : > { %s3739_s22 = scalar_lea.hbm %s3738_s25, 1  ;;  %p3745_p6 = scmp.lt.s32.totalorder %s3738_s25, %s4368_s29 }
  0x77   : > { %p3740_p2 = scmp.ne.s32.totalorder %s3738_s25, %s3739_s22  ;;  %p3746_p7 = scmp.lt.s32.totalorder %s3744_s7, %s3739_s22 }
  0x79   : > { %p3742_p13 = pnand %p3740_p2, %p4584_p3  ;;  %p3747_p9 = por %p3746_p7, %p3745_p6 }
  0x7b   : > { %p3743_p4 = pneg %p3742_p13 }
  0x7d   : > { %p3748_p11 = pnand %p3747_p9, %p3743_p4 }
  0x7f   : > { %3751 = shalt.err (!%p3748_p11)
}
  0x80   : > { %3436 = dma.hbm_to_vmem [thread:$0]  (!%p4572_p0), %s950_s11, 16, %s952_s28, %s4580_s17  }
  0x81   : > { %s972_s10 = scalar_lea.hbm %s5112_s8, %s4277_s16  ;;  %s969_s1 = scalar_lea.vmem [#allocation10], %s4566_s15 }
  0x82   : > { %s976_s9 = sshll.u32 %s969_s1, 4  ;;  %s974_s23 = sshll.u32 %s972_s10, 4  ;;  %s977_s9 = int_to_ptr.vmem [resolvable:$true] %s976_s9  ;;  %s975_s23 = int_to_ptr.hbm [resolvable:$true] %s974_s23 }
  0x83   : > { %s3767_s25 = sshra.s32 %s975_s23, 4  ;;  %s3774_s7 = scalar_lea.hbm %s5112_s8, 2  ;;  %s3768_s25 = int_to_ptr.hbm [resolvable:$true] %s3767_s25 }
  0x84   : > { %s3769_s22 = scalar_lea.hbm %s3768_s25, 1  ;;  %p3775_p6 = scmp.lt.s32.totalorder %s3768_s25, %s5112_s8 }
  0x85   : > { %p3770_p2 = scmp.ne.s32.totalorder %s3768_s25, %s3769_s22  ;;  %p3776_p7 = scmp.lt.s32.totalorder %s3774_s7, %s3769_s22 }
  0x87   : > { %p3772_p13 = pnand %p3770_p2, %p4584_p3  ;;  %p3777_p9 = por %p3776_p7, %p3775_p6 }
  0x89   : > { %p3773_p4 = pneg %p3772_p13 }
  0x8b   : > { %p3778_p11 = pnand %p3777_p9, %p3773_p4 }
  0x8d   : > { %3781 = shalt.err (!%p3778_p11)
}
  0x8e   : > { %3439 = dma.hbm_to_vmem [thread:$0]  (!%p4572_p0), %s975_s23, 16, %s977_s9, %s4580_s17  }
  0x8f   : > { %s997_s11 = scalar_lea.hbm %s5109_s19, %s4277_s16  ;;  %s994_s28 = scalar_lea.vmem [#allocation11], %s4566_s15 }
  0x90   : > { %s1001_s10 = sshll.u32 %s994_s28, 4  ;;  %s999_s1 = sshll.u32 %s997_s11, 4  ;;  %s1002_s10 = int_to_ptr.vmem [resolvable:$true] %s1001_s10  ;;  %s1000_s1 = int_to_ptr.hbm [resolvable:$true] %s999_s1 }
  0x91   : > { %s3797_s25 = sshra.s32 %s1000_s1, 4  ;;  %s3804_s7 = scalar_lea.hbm %s5109_s19, 2  ;;  %s3798_s25 = int_to_ptr.hbm [resolvable:$true] %s3797_s25 }
  0x92   : > { %s3799_s22 = scalar_lea.hbm %s3798_s25, 1  ;;  %p3805_p6 = scmp.lt.s32.totalorder %s3798_s25, %s5109_s19 }
  0x93   : > { %p3800_p2 = scmp.ne.s32.totalorder %s3798_s25, %s3799_s22  ;;  %p3806_p7 = scmp.lt.s32.totalorder %s3804_s7, %s3799_s22 }
  0x95   : > { %p3802_p13 = pnand %p3800_p2, %p4584_p3  ;;  %p3807_p9 = por %p3806_p7, %p3805_p6 }
  0x97   : > { %p3803_p4 = pneg %p3802_p13 }
  0x99   : > { %p3808_p11 = pnand %p3807_p9, %p3803_p4 }
  0x9b   : > { %3811 = shalt.err (!%p3808_p11)
}
  0x9c   : > { %3442 = dma.hbm_to_vmem [thread:$0]  (!%p4572_p0), %s1000_s1, 16, %s1002_s10, %s4580_s17  }
  0x9d   : > { %s1022_s9 = scalar_lea.hbm %s4398_s30, %s4277_s16  ;;  %s1019_s23 = scalar_lea.vmem [#allocation12], %s4566_s15 }
  0x9e   : > { %s1026_s11 = sshll.u32 %s1019_s23, 4  ;;  %s1024_s28 = sshll.u32 %s1022_s9, 4  ;;  %s1027_s11 = int_to_ptr.vmem [resolvable:$true] %s1026_s11  ;;  %s1025_s28 = int_to_ptr.hbm [resolvable:$true] %s1024_s28 }
  0x9f   : > { %s3827_s25 = sshra.s32 %s1025_s28, 4  ;;  %s3834_s7 = scalar_lea.hbm %s4398_s30, 2  ;;  %s3828_s25 = int_to_ptr.hbm [resolvable:$true] %s3827_s25 }
  0xa0   : > { %s3829_s22 = scalar_lea.hbm %s3828_s25, 1  ;;  %p3835_p6 = scmp.lt.s32.totalorder %s3828_s25, %s4398_s30 }
  0xa1   : > { %p3830_p2 = scmp.ne.s32.totalorder %s3828_s25, %s3829_s22  ;;  %p3836_p7 = scmp.lt.s32.totalorder %s3834_s7, %s3829_s22 }
  0xa3   : > { %p3832_p13 = pnand %p3830_p2, %p4584_p3  ;;  %p3837_p9 = por %p3836_p7, %p3835_p6 }
  0xa5   : > { %p3833_p4 = pneg %p3832_p13 }
  0xa7   : > { %p3838_p11 = pnand %p3837_p9, %p3833_p4 }
  0xa9   : > { %3841 = shalt.err (!%p3838_p11)
}
  0xaa   : > { %3445 = dma.hbm_to_vmem [thread:$0]  (!%p4572_p0), %s1025_s28, 16, %s1027_s11, %s4580_s17  }
  0xab   : > { %s1039_s10 = scalar_lea.hbm %s5113_s6, %s4277_s16  ;;  %s1036_s1 = scalar_lea.vmem [#allocation13], %s4566_s15 }
  0xac   : > { %s1043_s9 = sshll.u32 %s1036_s1, 4  ;;  %s1041_s23 = sshll.u32 %s1039_s10, 4  ;;  %s1044_s9 = int_to_ptr.vmem [resolvable:$true] %s1043_s9  ;;  %s1042_s23 = int_to_ptr.hbm [resolvable:$true] %s1041_s23 }
  0xad   : > { %s3857_s25 = sshra.s32 %s1042_s23, 4  ;;  %s3864_s7 = scalar_lea.hbm %s5113_s6, 2  ;;  %s3858_s25 = int_to_ptr.hbm [resolvable:$true] %s3857_s25 }
  0xae   : > { %s3859_s22 = scalar_lea.hbm %s3858_s25, 1  ;;  %p3865_p6 = scmp.lt.s32.totalorder %s3858_s25, %s5113_s6 }
  0xaf   : > { %p3860_p2 = scmp.ne.s32.totalorder %s3858_s25, %s3859_s22  ;;  %p3866_p7 = scmp.lt.s32.totalorder %s3864_s7, %s3859_s22 }
  0xb1   : > { %p3862_p13 = pnand %p3860_p2, %p4584_p3  ;;  %p3867_p9 = por %p3866_p7, %p3865_p6 }
  0xb3   : > { %p3863_p4 = pneg %p3862_p13 }
  0xb5   : > { %p3868_p11 = pnand %p3867_p9, %p3863_p4 }
  0xb7   : > { %3871 = shalt.err (!%p3868_p11)
}
  0xb8   : > { %3448 = dma.hbm_to_vmem [thread:$0]  (!%p4572_p0), %s1042_s23, 16, %s1044_s9, %s4580_s17  }
  0xb9   : > { %s1056_s11 = scalar_lea.hbm %s5111_s12, %s4277_s16  ;;  %s1053_s28 = scalar_lea.vmem [#allocation14], %s4566_s15 }
  0xba   : > { %s1060_s10 = sshll.u32 %s1053_s28, 4  ;;  %s1058_s1 = sshll.u32 %s1056_s11, 4  ;;  %s1061_s10 = int_to_ptr.vmem [resolvable:$true] %s1060_s10  ;;  %s1059_s1 = int_to_ptr.hbm [resolvable:$true] %s1058_s1 }
  0xbb   : > { %s3887_s25 = sshra.s32 %s1059_s1, 4  ;;  %s3894_s7 = scalar_lea.hbm %s5111_s12, 2  ;;  %s3888_s25 = int_to_ptr.hbm [resolvable:$true] %s3887_s25 }
  0xbc   : > { %s3889_s22 = scalar_lea.hbm %s3888_s25, 1  ;;  %p3895_p6 = scmp.lt.s32.totalorder %s3888_s25, %s5111_s12 }
  0xbd   : > { %p3890_p2 = scmp.ne.s32.totalorder %s3888_s25, %s3889_s22  ;;  %p3896_p7 = scmp.lt.s32.totalorder %s3894_s7, %s3889_s22 }
  0xbf   : > { %p3892_p13 = pnand %p3890_p2, %p4584_p3  ;;  %p3897_p9 = por %p3896_p7, %p3895_p6 }
  0xc1   : > { %p3893_p4 = pneg %p3892_p13 }
  0xc3   : > { %p3898_p11 = pnand %p3897_p9, %p3893_p4 }
  0xc5   : > { %3901 = shalt.err (!%p3898_p11)
}
  0xc6   : > { %3451 = dma.hbm_to_vmem [thread:$0]  (!%p4572_p0), %s1059_s1, 16, %s1061_s10, %s4580_s17  }
  0xc7   : > { %s1080_s9 = scalar_lea.hbm %s4418_s27, %s4277_s16  ;;  %s1077_s23 = scalar_lea.vmem [#allocation15], %s4566_s15 }
  0xc8   : > { %s1084_s11 = sshll.u32 %s1077_s23, 4  ;;  %s1082_s28 = sshll.u32 %s1080_s9, 4  ;;  %s1085_s11 = int_to_ptr.vmem [resolvable:$true] %s1084_s11  ;;  %s1083_s28 = int_to_ptr.hbm [resolvable:$true] %s1082_s28 }
  0xc9   : > { %s3917_s25 = sshra.s32 %s1083_s28, 4  ;;  %s3924_s7 = scalar_lea.hbm %s4418_s27, 2  ;;  %s3918_s25 = int_to_ptr.hbm [resolvable:$true] %s3917_s25 }
  0xca   : > { %s3919_s22 = scalar_lea.hbm %s3918_s25, 1  ;;  %p3925_p6 = scmp.lt.s32.totalorder %s3918_s25, %s4418_s27 }
  0xcb   : > { %p3920_p2 = scmp.ne.s32.totalorder %s3918_s25, %s3919_s22  ;;  %p3926_p7 = scmp.lt.s32.totalorder %s3924_s7, %s3919_s22 }
  0xcd   : > { %p3922_p13 = pnand %p3920_p2, %p4584_p3  ;;  %p3927_p9 = por %p3926_p7, %p3925_p6 }
  0xcf   : > { %p3923_p4 = pneg %p3922_p13 }
  0xd1   : > { %p3928_p11 = pnand %p3927_p9, %p3923_p4 }
  0xd3   : > { %3931 = shalt.err (!%p3928_p11)
}
  0xd4   : > { %3454 = dma.hbm_to_vmem [thread:$0]  (!%p4572_p0), %s1083_s28, 16, %s1085_s11, %s4580_s17  }
  0xd5   : > { %s1097_s10 = scalar_lea.hbm %s5115_s4, %s4277_s16  ;;  %s1094_s1 = scalar_lea.vmem [#allocation16], %s4566_s15 }
  0xd6   : > { %s1101_s9 = sshll.u32 %s1094_s1, 4  ;;  %s1099_s23 = sshll.u32 %s1097_s10, 4  ;;  %s1102_s9 = int_to_ptr.vmem [resolvable:$true] %s1101_s9  ;;  %s1100_s23 = int_to_ptr.hbm [resolvable:$true] %s1099_s23 }
  0xd7   : > { %s3947_s25 = sshra.s32 %s1100_s23, 4  ;;  %s3954_s7 = scalar_lea.hbm %s5115_s4, 2  ;;  %s3948_s25 = int_to_ptr.hbm [resolvable:$true] %s3947_s25 }
  0xd8   : > { %s3949_s22 = scalar_lea.hbm %s3948_s25, 1  ;;  %p3955_p6 = scmp.lt.s32.totalorder %s3948_s25, %s5115_s4 }
  0xd9   : > { %p3950_p2 = scmp.ne.s32.totalorder %s3948_s25, %s3949_s22  ;;  %p3956_p7 = scmp.lt.s32.totalorder %s3954_s7, %s3949_s22 }
  0xdb   : > { %p3952_p13 = pnand %p3950_p2, %p4584_p3  ;;  %p3957_p9 = por %p3956_p7, %p3955_p6 }
  0xdd   : > { %p3953_p4 = pneg %p3952_p13 }
  0xdf   : > { %p3958_p11 = pnand %p3957_p9, %p3953_p4 }
  0xe1   : > { %3961 = shalt.err (!%p3958_p11)
}
  0xe2   : > { %3457 = dma.hbm_to_vmem [thread:$0]  (!%p4572_p0), %s1100_s23, 16, %s1102_s9, %s4580_s17  }
  0xe3   : > { %s1114_s11 = scalar_lea.hbm %s5114_s5, %s4277_s16  ;;  %s1111_s28 = scalar_lea.vmem [#allocation17], %s4566_s15 }
  0xe4   : > { %s1118_s10 = sshll.u32 %s1111_s28, 4  ;;  %s1116_s1 = sshll.u32 %s1114_s11, 4  ;;  %s1119_s10 = int_to_ptr.vmem [resolvable:$true] %s1118_s10  ;;  %s1117_s1 = int_to_ptr.hbm [resolvable:$true] %s1116_s1 }
  0xe5   : > { %s876_s25 = sshll.u32 %s5110_s13, 4  ;;  %s3977_s22 = sshra.s32 %s1117_s1, 4  ;;  %s3978_s22 = int_to_ptr.hbm [resolvable:$true] %s3977_s22  ;;  %s877_s25 = int_to_ptr.hbm [resolvable:$true] %s876_s25 }
  0xe6   : > { %s3979_s7 = scalar_lea.hbm %s3978_s22, 1  ;;  %s3984_s4 = scalar_lea.hbm %s5114_s5, 2 }
  0xe7   : > { %p3980_p2 = scmp.ne.s32.totalorder %s3978_s22, %s3979_s7  ;;  %p3985_p6 = scmp.lt.s32.totalorder %s3978_s22, %s5114_s5 }
  0xe8   : > { %p3986_p7 = scmp.lt.s32.totalorder %s3984_s4, %s3979_s7 }
  0xe9   : > { %p3982_p13 = pnand %p3980_p2, %p4584_p3 }
  0xea   : > { %p3987_p9 = por %p3986_p7, %p3985_p6 }
  0xeb   : > { %p3983_p4 = pneg %p3982_p13 }
  0xed   : > { %p3988_p11 = pnand %p3987_p9, %p3983_p4 }
  0xef   : > { %3991 = shalt.err (!%p3988_p11)
}
  0xf0   : > { %3460 = dma.hbm_to_vmem [thread:$0]  (!%p4572_p0), %s1117_s1, 16, %s1119_s10, %s4580_s17  }
  0xf1   : > { %s4315_s9 = smov [#allocation6]   ;;  %s1139_s11 = scalar_lea.hbm %s4438_s24, %s4277_s16 }
  0xf2   : > { %s878_s23 = sshll.u32 %s4315_s9, 4  ;;  %s4007_s28 = sshra.s32 %s877_s25, 4  ;;  %s879_s23 = int_to_ptr.vmem [resolvable:$true] %s878_s23  ;;  %s4008_s28 = int_to_ptr.hbm [resolvable:$true] %s4007_s28 }
  0xf3   : > { %s4009_s4 = scalar_lea.hbm %s4008_s28, 1  ;;  %s4014_s22 = scalar_lea.hbm %s5110_s13, 1 }
  0xf4   : > { %p4010_p2 = scmp.ne.s32.totalorder %s4008_s28, %s4009_s4  ;;  %p4015_p6 = scmp.lt.s32.totalorder %s4008_s28, %s5110_s13 }
  0xf5   : > { %p4016_p7 = scmp.lt.s32.totalorder %s4014_s22, %s4009_s4 }
  0xf6   : > { %p4012_p13 = pnand %p4010_p2, %p3681_p1 }
  0xf7   : > { %p4017_p9 = por %p4016_p7, %p4015_p6 }
  0xf8   : > { %p4013_p4 = pneg %p4012_p13 }
  0xfa   : > { %p4018_p11 = pnand %p4017_p9, %p4013_p4 }
  0xfc   : > { %4021 = shalt.err (!%p4018_p11)
}
  0xfd   : > { %3426 = dma.hbm_to_vmem [thread:$0]  (!%p4551_p12), %s877_s25, 16, %s879_s23, [#allocation7]  }
  0xfe   : > { %s1141_s10 = sshll.u32 %s1139_s11, 4  ;;  %s1136_s1 = scalar_lea.vmem [#allocation18], %s4566_s15  ;;  %s1142_s10 = int_to_ptr.hbm [resolvable:$true] %s1141_s10 }
  0xff   : > { %s1143_s7 = sshll.u32 %s1136_s1, 4  ;;  %s4037_s9 = sshra.s32 %s1142_s10, 4  ;;  %s1144_s7 = int_to_ptr.vmem [resolvable:$true] %s1143_s7  ;;  %s4038_s9 = int_to_ptr.hbm [resolvable:$true] %s4037_s9 }
 0x100   : > { %s4039_s5 = scalar_lea.hbm %s4038_s9, 1  ;;  %s4044_s28 = scalar_lea.hbm %s4438_s24, 2 }
 0x101   : > { %p4040_p2 = scmp.ne.s32.totalorder %s4038_s9, %s4039_s5  ;;  %p4045_p6 = scmp.lt.s32.totalorder %s4038_s9, %s4438_s24 }
 0x102   : > { %p4046_p7 = scmp.lt.s32.totalorder %s4044_s28, %s4039_s5 }
 0x103   : > { %p4042_p13 = pnand %p4040_p2, %p4584_p3 }
 0x104   : > { %p4047_p9 = por %p4046_p7, %p4045_p6 }
 0x105   : > { %p4043_p4 = pneg %p4042_p13 }
 0x107   : > { %p4048_p11 = pnand %p4047_p9, %p4043_p4 }
 0x109   : > { %4051 = shalt.err (!%p4048_p11)
}
 0x10a   : > { %3463 = dma.hbm_to_vmem [thread:$0]  (!%p4572_p0), %s1142_s10, 16, %s1144_s7, %s4580_s17  }
 0x10b   : > { %s888_s25 = sshll.u32 %s4453_s20, 4  ;;  %s4316_s23 = smov [#allocation20]   ;;  %s889_s25 = int_to_ptr.hbm [resolvable:$true] %s888_s25 }
 0x10c   : > { %s890_s11 = sshll.u32 %s4316_s23, 4  ;;  %s4067_s4 = sshra.s32 %s889_s25, 4  ;;  %s891_s11 = int_to_ptr.vmem [resolvable:$true] %s890_s11  ;;  %s4068_s4 = int_to_ptr.hbm [resolvable:$true] %s4067_s4 }
 0x10d   : > { %s4069_s22 = scalar_lea.hbm %s4068_s4, 1  ;;  %s4074_s5 = scalar_lea.hbm %s4453_s20, 1 }
 0x10e   : > { %p4070_p2 = scmp.ne.s32.totalorder %s4068_s4, %s4069_s22  ;;  %p4075_p6 = scmp.lt.s32.totalorder %s4068_s4, %s4453_s20 }
 0x10f   : > { %p4076_p7 = scmp.lt.s32.totalorder %s4074_s5, %s4069_s22 }
 0x110   : > { %p4072_p13 = pnand %p4070_p2, %p3681_p1 }
 0x111   : > { %p4077_p9 = por %p4076_p7, %p4075_p6 }
 0x112   : > { %p4073_p4 = pneg %p4072_p13 }
 0x114   : > { %p4078_p11 = pnand %p4077_p9, %p4073_p4 }
 0x116   : > { %4081 = shalt.err (!%p4078_p11)
}
 0x117   : > { %s5129_s10 = sld [smem:[#allocation48_spill]]  ;;  %s1161_s9 = scalar_lea.vmem [#allocation19], %s4566_s15 }
 0x118   : > { %3429 = dma.hbm_to_vmem [thread:$0]  (!%p4551_p12), %s889_s25, 16, %s891_s11, [#allocation7]  }
 0x119   : > { %s1168_s28 = sshll.u32 %s1161_s9, 4  ;;  %s1169_s28 = int_to_ptr.vmem [resolvable:$true] %s1168_s28 }
 0x11d   : > { %s5130_s1 = smov %s5129_s10  ;;  %s1164_s7 = scalar_lea.hbm %s5129_s10, %s4277_s16 }
 0x11e   : > { %s1166_s23 = sshll.u32 %s1164_s7, 4  ;;  %s4104_s3 = scalar_lea.hbm %s5130_s1, 2  ;;  %s1167_s23 = int_to_ptr.hbm [resolvable:$true] %s1166_s23 }
 0x11f   : > { %s4097_s4 = sshra.s32 %s1167_s23, 4  ;;  %s4098_s4 = int_to_ptr.hbm [resolvable:$true] %s4097_s4 }
 0x120   : > { %s4099_s22 = scalar_lea.hbm %s4098_s4, 1  ;;  %p4105_p4 = scmp.lt.s32.totalorder %s4098_s4, %s5130_s1 }
 0x121   : > { %p4100_p1 = scmp.ne.s32.totalorder %s4098_s4, %s4099_s22  ;;  %p4106_p6 = scmp.lt.s32.totalorder %s4104_s3, %s4099_s22 }
 0x123   : > { %p4102_p2 = pnand %p4100_p1, %p4584_p3  ;;  %p4107_p7 = por %p4106_p6, %p4105_p4 }
 0x125   : > { %p4103_p13 = pneg %p4102_p2 }
 0x127   : > { %p4108_p9 = pnand %p4107_p7, %p4103_p13 }
 0x129   : > { %4111 = shalt.err (!%p4108_p9)
}
 0x12a   : > { %3466 = dma.hbm_to_vmem [thread:$0]  (!%p4572_p0), %s1167_s23, 16, %s1169_s28, %s4580_s17  }
 0x12b   : > { %1177 = sbr.rel (%p4542_p10) target bundleno = 3433 (0xd69), region = 128 }
 0x130   : > { %4236 = dma.done.wait (%p201_p5), [#allocation4], 256  }
 0x131   : > { %4238 = vsyncadd (%p201_p5), [#allocation4], 4294967040 }
 0x132   : > { %4240 = dma.done.wait (%p201_p5), [#allocation7], 16  }
 0x133   : > { %4242 = vsyncadd (%p201_p5), [#allocation7], 4294967280  ;;  %s5131_s15 = sld [smem:[#allocation55_spill]]  ;;  %s1189_s26 = sand.u32 1, %s4514_s0  }
 0x134   : > { %s1190_s14 = scalar_lea.sflag [#allocation4], %s1189_s26 }
 0x139   : > { %s4733_s17 = sand.u32 1, %s5131_s15  }
 0x13a   : > { %4244 = dma.done.wait (%p4534_p8), %s1190_s14, 192  }
 0x13b   : > { %4246 = vsyncadd (%p4534_p8), %s1190_s14, 4294967104 }
 0x13c   : > { %4248 = dma.done.wait (%p201_p5), [#allocation7], 16  }
 0x13d   : > { %4250 = vsyncadd (%p201_p5), [#allocation7], 4294967280  ;;  %s5133_s2 = sld [smem:[#allocation57_spill]] }
 0x13e   : > { %s5134_s26 = sld [smem:[#allocation34_spill]] }
 0x13f   : > { %s5135_s14 = sld [smem:[#allocation35_spill]] }
 0x140   : > { %s5136_s11 = sld [smem:[#allocation36_spill]] }
 0x141   : > { %s5137_s5 = sld [smem:[#allocation38_spill]] }
 0x142   : > { %s5138_s10 = sld [smem:[#allocation40_spill]] }
 0x143   : > { %s5139_s7 = sld [smem:[#allocation46_spill]]  ;;  %p1458_p8 = scmp.lt.s32.totalorder %s5133_s2, 1 }
 0x144   : > { %s5140_s9 = sld [smem:[#allocation43_spill]]  ;;  %p3223_p5 = scmp.ne.s32.totalorder %s5133_s2, 0 }
 0x145   : > { %s5141_s28 = sld [smem:[#allocation47_spill]] }
 0x146   : > { %s4757_s4 = scalar_select %p1458_p8, %s5133_s2, 1 }
 0x148   : > { %s1460_s15 = scalar_lea.vmem %s5134_s26, %s4757_s4  ;;  %s3344_s3 = sshll.u32 %s4757_s4, 4 }
 0x149   : > { %s4763_s22 = scalar_lea.vmem %s5135_s14, %s3344_s3  ;;  %s4766_s23 = scalar_lea.vmem %s5136_s11, %s3344_s3 }
 0x14a   : > { %s4769_s25 = scalar_lea.vmem %s5137_s5, %s3344_s3  ;;  %s4772_s1 = scalar_lea.vmem %s5138_s10, %s3344_s3 }
 0x14b   : > { %s3218_s6 = sshll.u32 %s4757_s4, 2  ;;  %s4776_s8 = scalar_lea.vmem %s5139_s7, %s3344_s3 }
 0x14c   : > { %s4779_s12 = scalar_lea.vmem %s5140_s9, %s3218_s6  ;;  %s3349_s13 = sshll.u32 %s4757_s4, 6 }
 0x14d   : > { %s4783_s19 = scalar_lea.vmem %s5141_s28, %s3349_s13  ;;  %1499 = sbr.rel (%p3223_p5) target bundleno = 483 (0x1e3), region = 192 }
 0x14e   : > { %s5142_s26 = sld [smem:[#allocation31_spill]] (!%p3223_p5) }
 0x152   : > { %v3351_v0 = vld [vmem:[#allocation3 + $0x8] sm:$0xff]  ;;  %v3350_v1 = vld [vmem:[#allocation3] sm:$0xff]  ;;  %vm1523_vm0 = vcmask 261120   ;;  %v3575_v5 = vld [vmem:[#allocation6] ss:$0 sm:$0xff] }
 0x153   : > { %1533 = vmatpush.bf16.msra.mxu0 %v3351_v0 }
 0x154   : > { %v1500_v2 = vld [vmem:[%s5142_s26] sm:$0xff]  ;;  %v1501_v3 = vld [vmem:[%s5142_s26 + $0x8] sm:$0xff] }
 0x155   : > { %v1502_v4 = vpack.c.bf16 %v1501_v3, %v1500_v2 }
 0x157   : > { %1534 = vmatpush.bf16.msra.mxu0 %v3350_v1 }
 0x15a   : > { %3232 = vmatmul.msk.bf16.vlgmr.msra.gmra.mxu0 %vm1523_vm0, %v1502_v4 }
 0x1d7   : > { %v1536_v6 = vpop.f32.mrf.mxu0 }
 0x1d8   : > { %v1537_v7 = vadd.f32 %v3575_v5, %v1536_v6 }
 0x1da   : > { %1541 = vst.msk [vmem:[#allocation2] sm:$0xff] %vm1523_vm0, %v1537_v7 }
 0x1df   : > { %v1538_v8 = vpop.f32.mrf.mxu0 }
 0x1e0   : > { %v1539_v9 = vadd.f32 %v3575_v5, %v1538_v8 }
 0x1e2   : > { %1542 = vst.msk [vmem:[#allocation2 + $0x8] sm:$0xff] %vm1523_vm0, %v1539_v9 }
 0x1e3 PF: > { %v4788_v10 = vld [vmem:[#allocation2] sm:$0xff]  ;;  %vm1545_vm1 = vcmask 261120   ;;  %v4317_v14 = vmov 32.0   ;;  %v3353_v31 = vld [vmem:[%s4763_s22 + $0x8] sm:$0xff]  ;;  %s5144_s6 = scalar_lea.vmem [#allocation8], %s4733_s17  ;;  %s5146_s11 = scalar_lea.vmem [#allocation10], %s4733_s17 }
 0x1e4   : > { %v1546_v11 = vsel %vm1545_vm1, %v4788_v10, 0.0  ;;  %3606 = vrcp.f32 %v4317_v14  ;;  %v3355_v32 = vld [vmem:[%s4766_s23 + $0x8] sm:$0xff]  ;;  %1639 = vmatpush.bf16.msra.mxu0 %v3353_v31  ;;  %v3352_v34 = vld [vmem:[%s4763_s22] sm:$0xff]  ;;  %s4318_s5 = smov 104   ;;  %vm1763_vm9 = vcmask 64512   ;;  %s4319_s10 = smov 112  }
 0x1e5   : > { %1547 = vadd.xlane.f32.xlu0 %v1546_v11  ;;  %1675 = vmatpush.bf16.msra.mxu2 %v3355_v32  ;;  %v3354_v35 = vld [vmem:[%s4766_s23] sm:$0xff]  ;;  %v3357_v38 = vld [vmem:[%s4769_s25 + $0x8] sm:$0xff]  ;;  %s4320_s7 = smov 120   ;;  %s5147_s9 = scalar_lea.vmem [#allocation11], %s4733_s17  ;;  %vm2023_vm10 = vcmask 1043456   ;;  %vm2186_vm11 = vcmask 130048  }
 0x1e6   : > { %v3356_v41 = vld [vmem:[%s4769_s25] sm:$0xff]  ;;  %s5145_s25 = scalar_lea.vmem [#allocation9], %s4733_s17  ;;  %s4321_s28 = smov 8   ;;  %vm2188_vm12 = vcmask 195584  }
 0x1e7   : > { %v3593_v56 = vld [vmem:[%s1460_s15] ss:$0 sm:$0xff]  ;;  %s4322_s23 = smov 16   ;;  %s4323_s4 = smov 24  }
 0x1e8   : > { %1640 = vmatpush.bf16.msra.mxu0 %v3352_v34  ;;  %v3594_v61 = vld [vmem:[%s5144_s6] ss:$0 sm:$0xff]  ;;  %s5149_s22 = scalar_lea.vmem [#allocation13], %s4733_s17  ;;  %s5150_s3 = scalar_lea.vmem [#allocation14], %s4733_s17 }
 0x1e9   : > { %v4792_v12 = vld [vmem:[#allocation2 + $0x8] sm:$0xff]  ;;  %1676 = vmatpush.bf16.msra.mxu2 %v3354_v35  ;;  %v3595_v2 = vld [vmem:[%s5145_s25] ss:$0 sm:$0xff]  ;;  %s5153_s15 = scalar_lea.vmem [#allocation17], %s4733_s17  ;;  %s5154_s2 = scalar_lea.vmem [#allocation18], %s4733_s17 }
 0x1ea   : > { %v1549_v13 = vsel %vm1545_vm1, %v4792_v12, 0.0  ;;  %v3607_v15 = vpop.eup %3606  ;;  %v3596_v6 = vld [vmem:[%s5146_s11] ss:$0 sm:$0xff]  ;;  %s5156_s14 = sld [smem:[#allocation57_spill]] }
 0x1eb   : > { %v1553_v16 = vmul.f32 32.0, %v3607_v15  ;;  %vm1557_vm2 = vweird.f32 %v3607_v15 }
 0x1ed   : > { %1550 = vadd.xlane.f32.xlu0 %v1549_v13  ;;  %v1554_v17 = vsub.f32 1.0, %v1553_v16  ;;  %1711 = vmatpush.bf16.msrb.mxu2 %v3357_v38 }
 0x1ef   : > { %v1555_v18 = vmul.f32 %v3607_v15, %v1554_v17 }
 0x1f0   : > { %p3326_p10 = scmp.ne.s32.totalorder %s5156_s14, 1 }
 0x1f1   : > { %v1556_v19 = vadd.f32 %v3607_v15, %v1555_v18  ;;  %1712 = vmatpush.bf16.msrb.mxu2 %v3356_v41  ;;  %s5158_s13 = sld [smem:[#allocation49_spill]] (!%p3326_p10)  ;;  %s4325_s25 = smov (!%p3326_p10), 1  }
 0x1f2   : > { %s5159_s6 = sld [smem:[#allocation51_spill]] (!%p3326_p10)  ;;  %s4326_s11 = smov (!%p3326_p10), 2  }
 0x1f3   : > { %v4796_v20 = vsel %vm1557_vm2, %v3607_v15, %v1556_v19 }
 0x258   : > { %v1548_v21 = vpop.xlane.xlu0 %1547 }
 0x259   : > { %v1559_v22 = vmul.f32 %v4796_v20, %v1548_v21  ;;  %v3597_v21 = vld [vmem:[%s5147_s9] ss:$0 sm:$0xff] }
 0x25b   : > { %v1561_v23 = vsub.f32 %v4788_v10, %v1559_v22 }
 0x25d   : > { %v1563_v24 = vmul.f32 %v1561_v23, %v1561_v23 }
 0x25f   : > { %v1565_v25 = vsel %vm1545_vm1, %v1563_v24, 0.0 }
 0x260   : > { %1566 = vadd.xlane.f32.xlu1 %v1565_v25  ;;  %v1551_v26 = vpop.xlane.xlu0 %1550 }
 0x261   : > { %v1560_v27 = vmul.f32 %v4796_v20, %v1551_v26 }
 0x263   : > { %v1562_v28 = vsub.f32 %v4792_v12, %v1560_v27 }
 0x265   : > { %v1564_v29 = vmul.f32 %v1562_v28, %v1562_v28 }
 0x267   : > { %v1568_v30 = vsel %vm1545_vm1, %v1564_v29, 0.0 }
 0x268   : > { %1569 = vadd.xlane.f32.xlu1 %v1568_v30 }
 0x2d3   : > { %v1567_v33 = vpop.xlane.xlu1 %1566 }
 0x2d4   : > { %v1571_v36 = vmul.f32 %v1567_v33, %v4796_v20 }
 0x2d6   : > { %v1573_v37 = vadd.f32 1e-05, %v1571_v36 }
 0x2d8   : > { %3608 = vrsqrt.f32 %v1573_v37  ;;  %vm1581_vm4 = vweird.f32 %v1573_v37 }
 0x2db   : > { %v1570_v39 = vpop.xlane.xlu1 %1569 }
 0x2dc   : > { %v1572_v40 = vmul.f32 %v1570_v39, %v4796_v20 }
 0x2de   : > { %v3609_v42 = vpop.eup %3608  ;;  %v1574_v43 = vadd.f32 1e-05, %v1572_v40 }
 0x2df   : > { %v1576_v44 = vmul.f32 %v3609_v42, %v1573_v37  ;;  %vm1582_vm3 = vweird.f32 %v3609_v42 }
 0x2e0   : > { %3610 = vrsqrt.f32 %v1574_v43  ;;  %vm1583_vm5 = vmor %vm1581_vm4, %vm1582_vm3  ;;  %vm1591_vm7 = vweird.f32 %v1574_v43 }
 0x2e1   : > { %v1577_v45 = vmul.f32 %v3609_v42, %v1576_v44 }
 0x2e3   : > { %v1578_v46 = vmul.f32 0.5, %v1577_v45 }
 0x2e5   : > { %v1579_v47 = vsub.f32 1.5, %v1578_v46 }
 0x2e6   : > { %v3611_v48 = vpop.eup %3610 }
 0x2e7   : > { %v1580_v49 = vmul.f32 %v3609_v42, %v1579_v47  ;;  %v1586_v50 = vmul.f32 %v3611_v48, %v1574_v43  ;;  %vm1592_vm6 = vweird.f32 %v3611_v48 }
 0x2e8   : > { %vm1593_vm8 = vmor %vm1591_vm7, %vm1592_vm6 }
 0x2e9   : > { %v1587_v51 = vmul.f32 %v3611_v48, %v1586_v50  ;;  %v1584_v52 = vsel %vm1583_vm5, %v3609_v42, %v1580_v49 }
 0x2ea   : > { %v1595_v55 = vmul.f32 %v1584_v52, %v1561_v23 }
 0x2eb   : > { %v1588_v53 = vmul.f32 0.5, %v1587_v51 }
 0x2ec   : > { %v1601_v60 = vmul.f32 %v3593_v56, %v1595_v55 }
 0x2ed   : > { %v1589_v54 = vsub.f32 1.5, %v1588_v53 }
 0x2ee   : > { %v1607_v63 = vadd.f32 %v3594_v61, %v1601_v60 }
 0x2ef   : > { %v1590_v57 = vmul.f32 %v3611_v48, %v1589_v54 }
 0x2f1   : > { %v1594_v58 = vsel %vm1593_vm8, %v3611_v48, %v1590_v57 }
 0x2f2   : > { %v1596_v59 = vmul.f32 %v1594_v58, %v1562_v28 }
 0x2f4   : > { %v1602_v62 = vmul.f32 %v3593_v56, %v1596_v59 }
 0x2f6   : > { %v1608_v0 = vadd.f32 %v3594_v61, %v1602_v62 }
 0x2f8   : > { %v1609_v1 = vpack.c.bf16 %v1608_v0, %v1607_v63 }
 0x2fa   : > { %3241 = vmatmul.msk.bf16.vlgmr.msra.gmra.mxu0 %vm1545_vm1, %v1609_v1  ;;  %3250 = vmatmul.msk.bf16.vlgmr.msra.gmra.mxu2 %vm1545_vm1, %v1609_v1 }
 0x30a   : > { %3259 = vmatmul.msk.bf16.vlgmr.msrb.gmra.mxu2 %vm1545_vm1, %v1609_v1 }
 0x377   : > { %v1642_v3 = vpop.f32.mrf.mxu0 }
 0x378   : > { %v1643_v4 = vadd.f32 %v3595_v2, %v1642_v3 }
 0x37a   : > { %v1647_v5 = vpack.c.bf16 %v1643_v4, %v1643_v4 }
 0x37c   : > { %1726 = vrot.lane.b32.xlu2 %v1647_v5, %s4318_s5 }
 0x37d   : > { %v1678_v7 = vpop.f32.mrf.mxu2 }
 0x37e   : > { %v1679_v8 = vadd.f32 %v3596_v6, %v1678_v7 }
 0x37f   : > { %v1644_v11 = vpop.f32.mrf.mxu0 }
 0x380   : > { %v1683_v9 = vpack.c.bf16 %v1679_v8, %v1679_v8  ;;  %v1645_v14 = vadd.f32 %v3595_v2, %v1644_v11 }
 0x382   : > { %1738 = vrot.lane.b32.xlu1 %v1683_v9, %s4319_s10  ;;  %1736 = vrot.lane.b32.xlu0 %v1683_v9, %s4320_s7  ;;  %v1768_v13 = vsel %vm1763_vm9, %v1683_v9, 0  ;;  %v1648_v17 = vpack.c.bf16 %v1645_v14, %v1645_v14 }
 0x383   : > { %1777 = vmatpush.bf16.xpose.msra.mxu3 %v1768_v13 }
 0x384   : > { %1740 = vrot.lane.b32.xlu2 %v1683_v9, %s4318_s5 }
 0x385   : > { %v1680_v15 = vpop.f32.mrf.mxu2 }
 0x386   : > { %v1681_v16 = vadd.f32 %v3596_v6, %v1680_v15 }
 0x388   : > { %v1684_v18 = vpack.c.bf16 %v1681_v16, %v1681_v16 }
 0x38a   : > { %1745 = vrot.lane.b32.xlu1 %v1684_v18, %s4319_s10  ;;  %1733 = vrot.lane.b32.xlu0 %v1648_v17, %s4318_s5  ;;  %v1844_v19 = vsel %vm1763_vm9, %v1684_v18, 0 }
 0x38b   : > { %3260 = vmatmul.msk.bf16.vlgmr.msra.gmra.mxu3 %vm1763_vm9, %v1647_v5 }
 0x38c   : > { %1853 = vmatpush.bf16.xpose.msrb.mxu3 %v1844_v19  ;;  %1722 = vrot.lane.b32.xlu2 %v1647_v5, %s4320_s7 }
 0x38d   : > { %v1714_v22 = vpop.f32.mrf.mxu2 }
 0x38e   : > { %v1715_v23 = vadd.f32 %v3597_v21, %v1714_v22 }
 0x390   : > { %v4836_v24 = vpack.c.bf16 %v1715_v23, %v1715_v23 }
 0x392   : > { %1729 = vrot.lane.b32.xlu0 %v1648_v17, %s4320_s7  ;;  %v2025_v25 = vsel %vm2023_vm10, %v4836_v24, 0 }
 0x394   : > { %2034 = vmatpush.bf16.msra.mxu3 %v2025_v25  ;;  %1747 = vrot.lane.b32.xlu2 %v1684_v18, %s4318_s5 }
 0x395   : > { %v1716_v26 = vpop.f32.mrf.mxu2 }
 0x396   : > { %v1717_v27 = vadd.f32 %v3597_v21, %v1716_v26 }
 0x398   : > { %v4842_v28 = vpack.c.bf16 %v1717_v27, %v1717_v27 }
 0x39a   : > { %v2101_v29 = vsel %vm2023_vm10, %v4842_v28, 0 }
 0x39b   : > { %3264 = vmatmul.msk.bf16.vlgmr.msrb.gmra.mxu3 %vm1763_vm9, %v1648_v17 }
 0x39c   : > { %2110 = vmatpush.bf16.msrb.mxu3 %v2101_v29  ;;  %1724 = vrot.lane.b32.xlu2 %v1647_v5, %s4319_s10 }
 0x3a4   : > { %1743 = vrot.lane.b32.xlu2 %v1684_v18, %s4320_s7 }
 0x3ac   : > { %1731 = vrot.lane.b32.xlu2 %v1648_v17, %s4319_s10 }
 0x3d6   : > { %v1727_v30 = vpop.permute.xlu2 %1726 }
 0x3de   : > { %v1741_v31 = vpop.permute.xlu2 %1740 }
 0x3df   : > { %v1825_v32 = vsel %vm1763_vm9, %v1741_v31, 0 }
 0x3e0   : > { %1834 = vmatpush.bf16.xpose.msra.mxu2 %v1825_v32 }
 0x3e6   : > { %v1723_v33 = vpop.permute.xlu2 %1722 }
 0x3e7   : > { %3263 = vmatmul.msk.bf16.vlgmr.msra.gmra.mxu2 %vm1763_vm9, %v1727_v30 }
 0x3ee   : > { %v1748_v34 = vpop.permute.xlu2 %1747 }
 0x3ef   : > { %v1901_v35 = vsel %vm1763_vm9, %v1748_v34, 0 }
 0x3f0   : > { %1910 = vmatpush.bf16.xpose.msrb.mxu2 %v1901_v35 }
 0x3f4   : > { %v1739_v36 = vpop.permute.xlu1 %1738  ;;  %v1737_v37 = vpop.permute.xlu0 %1736 }
 0x3f5   : > { %v1787_v38 = vsel %vm1763_vm9, %v1737_v37, 0  ;;  %v1806_v39 = vsel %vm1763_vm9, %v1739_v36, 0 }
 0x3f6   : > { %1796 = vmatpush.bf16.xpose.msrb.mxu0 %v1787_v38  ;;  %1815 = vmatpush.bf16.xpose.msra.mxu1 %v1806_v39  ;;  %v1725_v40 = vpop.permute.xlu2 %1724 }
 0x3fc   : > { %v1746_v41 = vpop.permute.xlu1 %1745  ;;  %v1734_v42 = vpop.permute.xlu0 %1733 }
 0x3fd   : > { %3261 = vmatmul.msk.bf16.vlgmr.msrb.gmra.mxu0 %vm1763_vm9, %v1723_v33  ;;  %3262 = vmatmul.msk.bf16.vlgmr.msra.gmra.mxu1 %vm1763_vm9, %v1725_v40  ;;  %v1882_v43 = vsel %vm1763_vm9, %v1746_v41, 0 }
 0x3fe   : > { %3267 = vmatmul.msk.bf16.vlgmr.msrb.gmra.mxu2 %vm1763_vm9, %v1734_v42  ;;  %1891 = vmatpush.bf16.xpose.msrb.mxu1 %v1882_v43  ;;  %v1744_v44 = vpop.permute.xlu2 %1743 }
 0x3ff   : > { %v1863_v45 = vsel %vm1763_vm9, %v1744_v44, 0 }
 0x400   : > { %1872 = vmatpush.bf16.xpose.msra.mxu0 %v1863_v45 }
 0x404   : > { %v1730_v46 = vpop.permute.xlu0 %1729 }
 0x406   : > { %v1732_v47 = vpop.permute.xlu2 %1731 }
 0x40d   : > { %3265 = vmatmul.msk.bf16.vlgmr.msra.gmra.mxu0 %vm1763_vm9, %v1730_v46  ;;  %3266 = vmatmul.msk.bf16.vlgmr.msrb.gmra.mxu1 %vm1763_vm9, %v1732_v47 }
 0x40e   : > { %v1779_v48 = vpop.f32.mrf.mxu3 }
 0x40f   : > { %v4862_v49 = vmul.f32 0.35355338, %v1779_v48 }
 0x411   : > { %v1924_v50 = vsel %vm1763_vm9, %v4862_v49, -inf }
 0x412   : > { %1925 = vmax.xlane.f32.xlu1 %v1924_v50 }
 0x416   : > { %v1781_v51 = vpop.f32.mrf.mxu3 }
 0x41e   : > { %v1855_v52 = vpop.f32.mrf.mxu3 }
 0x41f   : > { %v4866_v53 = vmul.f32 0.35355338, %v1855_v52 }
 0x421   : > { %v1936_v54 = vsel %vm1763_vm9, %v4866_v53, -inf }
 0x422   : > { %1937 = vmax.xlane.f32.xlu2 %v1936_v54 }
 0x426   : > { %v1857_v55 = vpop.f32.mrf.mxu3 }
 0x46a   : > { %v1836_v56 = vpop.f32.mrf.mxu2 }
 0x46b   : > { %v1919_v57 = vmul.f32 0.35355338, %v1836_v56 }
 0x46d   : > { %v1933_v58 = vsel %vm1763_vm9, %v1919_v57, -inf }
 0x46e   : > { %1934 = vmax.xlane.f32.xlu1 %v1933_v58 }
 0x472   : > { %v1838_v59 = vpop.f32.mrf.mxu2 }
 0x47a   : > { %v1798_v60 = vpop.f32.mrf.mxu0  ;;  %v1817_v61 = vpop.f32.mrf.mxu1 }
 0x47b   : > { %v1917_v62 = vmul.f32 0.35355338, %v1798_v60  ;;  %v1918_v63 = vmul.f32 0.35355338, %v1817_v61 }
 0x47d   : > { %v1927_v0 = vsel %vm1763_vm9, %v1917_v62, -inf  ;;  %v1930_v1 = vsel %vm1763_vm9, %v1918_v63, -inf }
 0x47e   : > { %1928 = vmax.xlane.f32.xlu0 %v1927_v0  ;;  %1931 = vmax.xlane.f32.xlu2 %v1930_v1 }
 0x481   : > { %v1912_v2 = vpop.f32.mrf.mxu2 }
 0x482   : > { %v1923_v3 = vmul.f32 0.35355338, %v1912_v2  ;;  %v1800_v4 = vpop.f32.mrf.mxu0  ;;  %v1819_v5 = vpop.f32.mrf.mxu1 }
 0x484   : > { %v1945_v6 = vsel %vm1763_vm9, %v1923_v3, -inf }
 0x485   : > { %1946 = vmax.xlane.f32.xlu1 %v1945_v6  ;;  %v1926_v18 = vpop.xlane.xlu1 %1925 }
 0x489   : > { %v1914_v7 = vpop.f32.mrf.mxu2 }
 0x48a   : > { %v1874_v8 = vpop.f32.mrf.mxu0  ;;  %v1893_v9 = vpop.f32.mrf.mxu1 }
 0x48b   : > { %v1921_v11 = vmul.f32 0.35355338, %v1874_v8  ;;  %v1922_v13 = vmul.f32 0.35355338, %v1893_v9 }
 0x48d   : > { %v1939_v14 = vsel %vm1763_vm9, %v1921_v11, -inf  ;;  %v1942_v15 = vsel %vm1763_vm9, %v1922_v13, -inf }
 0x48e   : > { %1940 = vmax.xlane.f32.xlu0 %v1939_v14  ;;  %1943 = vmax.xlane.f32.xlu2 %v1942_v15 }
 0x492   : > { %v1876_v16 = vpop.f32.mrf.mxu0  ;;  %v1895_v17 = vpop.f32.mrf.mxu1 }
 0x495   : > { %v1938_v19 = vpop.xlane.xlu2 %1937 }
 0x496   : > { %v1952_v60 = vsub.f32 %v4866_v53, %v1938_v19 }
 0x498   : > { %v1964_v61 = vmul.f32 1.442695, %v1952_v60 }
 0x49e   : > { %1750 = vrot.lane.b32.xlu1 %v4836_v24, %s4320_s7 }
 0x4a2   : > { %1752 = vrot.lane.b32.xlu0 %v4836_v24, %s4319_s10 }
 0x4a6   : > { %1754 = vrot.lane.b32.xlu2 %v4836_v24, %s4318_s5 }
 0x4e1   : > { %v1935_v21 = vpop.xlane.xlu1 %1934 }
 0x4e2   : > { %v1951_v27 = vsub.f32 %v1919_v57, %v1935_v21 }
 0x4e4   : > { %v1962_v31 = vmul.f32 1.442695, %v1951_v27 }
 0x4f1   : > { %v1929_v22 = vpop.xlane.xlu0 %1928  ;;  %v1932_v23 = vpop.xlane.xlu2 %1931 }
 0x4f2   : > { %v1949_v25 = vsub.f32 %v1917_v62, %v1929_v22  ;;  %v1950_v26 = vsub.f32 %v1918_v63, %v1932_v23  ;;  %v1948_v62 = vsub.f32 %v4862_v49, %v1926_v18 }
 0x4f4   : > { %v1958_v29 = vmul.f32 1.442695, %v1949_v25  ;;  %v1960_v30 = vmul.f32 1.442695, %v1950_v26  ;;  %v1956_v63 = vmul.f32 1.442695, %v1948_v62 }
 0x4f6   : > { %3612 = vpow2.f32 %v1958_v29 }
 0x4f7   : > { %3614 = vpow2.f32 %v1960_v30 }
 0x4f8   : > { %v1947_v32 = vpop.xlane.xlu1 %1946  ;;  %3616 = vpow2.f32 %v1962_v31 }
 0x4f9   : > { %v1955_v33 = vsub.f32 %v1923_v3, %v1947_v32 }
 0x4fb   : > { %v1970_v34 = vmul.f32 1.442695, %v1955_v33 }
 0x4fc   : > { %v3613_v35 = vpop.eup %3612 }
 0x4fd   : > { %v3615_v36 = vpop.eup %3614  ;;  %3618 = vpow2.f32 %v1970_v34  ;;  %v1975_v24 = vsel %vm1763_vm9, %v3613_v35, 0.0 }
 0x4fe   : > { %1976 = vadd.xlane.f32.xlu1 %v1975_v24  ;;  %v1978_v37 = vsel %vm1763_vm9, %v3615_v36, 0.0  ;;  %v3617_v40 = vpop.eup %3616 }
 0x4ff   : > { %1979 = vadd.xlane.f32.xlu0 %v1978_v37  ;;  %v1981_v47 = vsel %vm1763_vm9, %v3617_v40, 0.0 }
 0x501   : > { %v1941_v38 = vpop.xlane.xlu0 %1940  ;;  %v1944_v39 = vpop.xlane.xlu2 %1943 }
 0x502   : > { %v1953_v41 = vsub.f32 %v1921_v11, %v1941_v38  ;;  %v1954_v42 = vsub.f32 %v1922_v13, %v1944_v39 }
 0x503   : > { %v4884_v43 = vpop.eup %3618 }
 0x504   : > { %v1966_v44 = vmul.f32 1.442695, %v1953_v41  ;;  %v1968_v45 = vmul.f32 1.442695, %v1954_v42  ;;  %v1993_v46 = vsel %vm1763_vm9, %v4884_v43, 0.0 }
 0x505   : > { %1994 = vadd.xlane.f32.xlu2 %v1993_v46 }
 0x506   : > { %3620 = vpow2.f32 %v1966_v44 }
 0x507   : > { %3622 = vpow2.f32 %v1968_v45  ;;  %1982 = vadd.xlane.f32.xlu0 %v1981_v47 }
 0x508   : > { %3624 = vpow2.f32 %v1964_v61 }
 0x509   : > { %v1755_v48 = vpop.permute.xlu2 %1754  ;;  %3626 = vpow2.f32 %v1956_v63 }
 0x50a   : > { %v2082_v50 = vsel %vm2023_vm10, %v1755_v48, 0 }
 0x50b   : > { %2091 = vmatpush.bf16.msra.mxu2 %v2082_v50 }
 0x50c   : > { %v3621_v51 = vpop.eup %3620 }
 0x50d   : > { %v4890_v52 = vpop.eup %3622  ;;  %v1987_v54 = vsel %vm1763_vm9, %v3621_v51, 0.0 }
 0x50e   : > { %v1990_v55 = vsel %vm1763_vm9, %v4890_v52, 0.0  ;;  %v3625_v0 = vpop.eup %3624 }
 0x50f   : > { %1988 = vadd.xlane.f32.xlu0 %v1987_v54  ;;  %1991 = vadd.xlane.f32.xlu1 %v1990_v55  ;;  %v1984_v1 = vsel %vm1763_vm9, %v3625_v0, 0.0  ;;  %v3627_v2 = vpop.eup %3626 }
 0x510   : > { %v1751_v56 = vpop.permute.xlu1 %1750  ;;  %v1972_v3 = vsel %vm1763_vm9, %v3627_v2, 0.0 }
 0x511   : > { %v2044_v57 = vsel %vm2023_vm10, %v1751_v56, 0 }
 0x512   : > { %2053 = vmatpush.bf16.msrb.mxu0 %v2044_v57 }
 0x514   : > { %v1753_v58 = vpop.permute.xlu0 %1752 }
 0x515   : > { %v2063_v59 = vsel %vm2023_vm10, %v1753_v58, 0 }
 0x516   : > { %2072 = vmatpush.bf16.msra.mxu1 %v2063_v59 }
 0x51d   : > { %1761 = vrot.lane.b32.xlu2 %v4842_v28, %s4318_s5 }
 0x523   : > { %1757 = vrot.lane.b32.xlu0 %v4842_v28, %s4320_s7 }
 0x528   : > { %1759 = vrot.lane.b32.xlu1 %v4842_v28, %s4319_s10 }
 0x546   : > { %1985 = vadd.xlane.f32.xlu2 %v1984_v1  ;;  %v3358_v1 = vld [vmem:[%s4772_s1] sm:$0xff] }
 0x54d   : > { %1973 = vadd.xlane.f32.xlu0 %v1972_v3 }
 0x571   : > { %v1977_v4 = vpop.xlane.xlu1 %1976 }
 0x572   : > { %3628 = vrcp.f32 %v1977_v4  ;;  %v1980_v5 = vpop.xlane.xlu0 %1979 }
 0x573   : > { %3630 = vrcp.f32 %v1980_v5 }
 0x578   : > { %v3629_v28 = vpop.eup %3628  ;;  %v1995_v53 = vpop.xlane.xlu2 %1994 }
 0x579   : > { %v3631_v6 = vpop.eup %3630  ;;  %v2005_v7 = vmul.f32 %v3629_v28, %v3613_v35 }
 0x57a   : > { %v2006_v49 = vmul.f32 %v3631_v6, %v3615_v36  ;;  %v1983_v8 = vpop.xlane.xlu0 %1982 }
 0x57b   : > { %v2013_v9 = vpack.c.bf16 %v2005_v7, %v2005_v7  ;;  %3632 = vrcp.f32 %v1983_v8 }
 0x57c   : > { %v2014_v11 = vpack.c.bf16 %v2006_v49, %v2006_v49  ;;  %3634 = vrcp.f32 %v1995_v53 }
 0x57d   : > { %3269 = vmatmul.msk.bf16.vlgmr.msrb.gmra.mxu0 %vm1763_vm9, %v2013_v9 }
 0x57e   : > { %3270 = vmatmul.msk.bf16.vlgmr.msra.gmra.mxu1 %vm1763_vm9, %v2014_v11 }
 0x580   : > { %v1762_v13 = vpop.permute.xlu2 %1761 }
 0x581   : > { %v3633_v14 = vpop.eup %3632  ;;  %v2158_v15 = vsel %vm2023_vm10, %v1762_v13, 0 }
 0x582   : > { %v2007_v16 = vmul.f32 %v3633_v14, %v3617_v40  ;;  %2167 = vmatpush.bf16.msrb.mxu2 %v2158_v15  ;;  %v1989_v18 = vpop.xlane.xlu0 %1988  ;;  %v3635_v19 = vpop.eup %3634 }
 0x583   : > { %3636 = vrcp.f32 %v1989_v18  ;;  %v1992_v21 = vpop.xlane.xlu1 %1991  ;;  %v2011_v22 = vmul.f32 %v3635_v19, %v4884_v43 }
 0x584   : > { %v2015_v17 = vpack.c.bf16 %v2007_v16, %v2007_v16  ;;  %3638 = vrcp.f32 %v1992_v21 }
 0x585   : > { %v2019_v25 = vpack.c.bf16 %v2011_v22, %v2011_v22 }
 0x586   : > { %3271 = vmatmul.msk.bf16.vlgmr.msra.gmra.mxu2 %vm1763_vm9, %v2015_v17 }
 0x589   : > { %v3637_v23 = vpop.eup %3636 }
 0x58a   : > { %v2009_v26 = vmul.f32 %v3637_v23, %v3621_v51  ;;  %v3639_v29 = vpop.eup %3638 }
 0x58b   : > { %v2010_v32 = vmul.f32 %v3639_v29, %v4890_v52  ;;  %v4324_v29 = vmov 0  }
 0x58c   : > { %v2017_v31 = vpack.c.bf16 %v2009_v26, %v2009_v26  ;;  %3592 = vset.pattern.permute.xlu0 %v4324_v29  ;;  %3591 = vset.pattern.permute.xlu2 %v4324_v29 }
 0x58d   : > { %v2018_v35 = vpack.c.bf16 %v2010_v32, %v2010_v32 }
 0x595   : > { %v1758_v27 = vpop.permute.xlu0 %1757 }
 0x596   : > { %v2120_v30 = vsel %vm2023_vm10, %v1758_v27, 0  ;;  %3275 = vmatmul.msk.bf16.vlgmr.msrb.gmra.mxu2 %vm1763_vm9, %v2019_v25 }
 0x597   : > { %2129 = vmatpush.bf16.msra.mxu0 %v2120_v30 }
 0x59a   : > { %3273 = vmatmul.msk.bf16.vlgmr.msra.gmra.mxu0 %vm1763_vm9, %v2017_v31  ;;  %v1760_v33 = vpop.permute.xlu1 %1759 }
 0x59b   : > { %v2139_v34 = vsel %vm2023_vm10, %v1760_v33, 0 }
 0x59c   : > { %2148 = vmatpush.bf16.msrb.mxu1 %v2139_v34 }
 0x59f   : > { %3274 = vmatmul.msk.bf16.vlgmr.msrb.gmra.mxu1 %vm1763_vm9, %v2018_v35 }
 0x5b9   : > { %v1986_v38 = vpop.xlane.xlu2 %1985 }
 0x5c0   : > { %v1974_v36 = vpop.xlane.xlu0 %1973 }
 0x5c1   : > { %3640 = vrcp.f32 %v1974_v36 }
 0x5c2   : > { %3642 = vrcp.f32 %v1986_v38 }
 0x5c7   : > { %v3641_v24 = vpop.eup %3640 }
 0x5c8   : > { %v2004_v37 = vmul.f32 %v3641_v24, %v3627_v2  ;;  %v3643_v40 = vpop.eup %3642 }
 0x5c9   : > { %v2008_v41 = vmul.f32 %v3643_v40, %v3625_v0  ;;  %v3359_v0 = vld [vmem:[%s4772_s1 + $0x8] sm:$0xff]  ;;  %s5148_s1 = scalar_lea.vmem [#allocation12], %s4733_s17 }
 0x5ca   : > { %v2012_v39 = vpack.c.bf16 %v2004_v37, %v2004_v37  ;;  %v3598_v17 = vld [vmem:[%s5148_s1] ss:$0 sm:$0xff]  ;;  %v2304_v37 = vlaneseq }
 0x5cb   : > { %v2016_v42 = vpack.c.bf16 %v2008_v41, %v2008_v41 }
 0x5cc   : > { %3268 = vmatmul.msk.bf16.vlgmr.msra.gmra.mxu3 %vm1763_vm9, %v2012_v39  ;;  %v2305_v38 = vshrl.u32 %v2304_v37, 7 }
 0x5cd   : > { %2231 = vmatpush.bf16.msra.mxu3 %v3359_v0 }
 0x5ce   : > { %vm2306_vm13 = vcmp.gt.s32.totalorder %v2305_v38, 0  ;;  %vm2319_vm14 = vcmp.lt.s32.totalorder %v2305_v38, 7  ;;  %vm2309_vm6 = vcmp.lt.s32.totalorder %v2305_v38, 1 }
 0x5cf   : > { %v2312_v39 = vsel %vm2306_vm13, 1, %v4324_v29  ;;  %v2324_v40 = vsel %vm2319_vm14, 1, %v4324_v29 }
 0x5d1   : > { %2232 = vmatpush.bf16.msra.mxu3 %v3358_v1  ;;  %v3600_v1 = vld [vmem:[%s5150_s3] ss:$0 sm:$0xff] }
 0x5dc   : > { %3272 = vmatmul.msk.bf16.vlgmr.msrb.gmra.mxu3 %vm1763_vm9, %v2016_v42 }
 0x5fa   : > { %v2055_v43 = vpop.f32.mrf.mxu0 }
 0x5fb   : > { %v2074_v44 = vpop.f32.mrf.mxu1 }
 0x602   : > { %v2057_v45 = vpop.f32.mrf.mxu0 }
 0x603   : > { %v2076_v46 = vpop.f32.mrf.mxu1 }
 0x609   : > { %v2093_v47 = vpop.f32.mrf.mxu2 }
 0x611   : > { %v2095_v48 = vpop.f32.mrf.mxu2 }
 0x617   : > { %v2131_v50 = vpop.f32.mrf.mxu0 }
 0x618   : > { %v3576_v51 = vpack.i.bf16 %v2131_v50, %v2055_v43 }
 0x619   : > { %v2169_v52 = vpop.f32.mrf.mxu2 }
 0x61a   : > { %3577 = vrot.lane.b32.xlu1 %v3576_v51, %s4321_s28  ;;  %v3586_v59 = vpack.i.bf16 %v2169_v52, %v2093_v47 }
 0x61c   : > { %v2150_v54 = vpop.f32.mrf.mxu1 }
 0x61d   : > { %v3581_v56 = vpack.i.bf16 %v2150_v54, %v2074_v44 }
 0x61f   : > { %v2133_v55 = vpop.f32.mrf.mxu0 }
 0x621   : > { %v2171_v57 = vpop.f32.mrf.mxu2 }
 0x622   : > { %3582 = vrot.lane.b32.xlu1 %v3581_v56, %s4322_s23 }
 0x624   : > { %v2152_v58 = vpop.f32.mrf.mxu1 }
 0x62a   : > { %3587 = vrot.lane.b32.xlu1 %v3586_v59, %s4323_s4 }
 0x64f   : > { %v2036_v60 = vpop.f32.mrf.mxu3 }
 0x657   : > { %v2038_v61 = vpop.f32.mrf.mxu3 }
 0x65f   : > { %v2112_v62 = vpop.f32.mrf.mxu3 }
 0x667   : > { %v2114_v63 = vpop.f32.mrf.mxu3 }
 0x68c   : > { %v3578_v2 = vpop.permute.xlu1 %3577 }
 0x68d   : > { %v3580_v4 = vunpack.i.h.bf16 %v3578_v2  ;;  %v3579_v5 = vunpack.i.l.bf16 %v3578_v2 }
 0x68f   : > { %v2185_v7 = vsel %vm1763_vm9, %v2036_v60, %v3579_v5  ;;  %v2202_v49 = vsel %vm1763_vm9, %v2112_v62, %v3580_v4  ;;  %v3599_v60 = vld [vmem:[%s5149_s22] ss:$0 sm:$0xff] }
 0x690   : > { %v2303_v4 = vld [vmem:[%s4779_s12] sm:$0x7]  ;;  %s5151_s12 = scalar_lea.vmem [#allocation15], %s4733_s17 }
 0x694   : > { %v3583_v3 = vpop.permute.xlu1 %3582 }
 0x695   : > { %v3585_v28 = vunpack.i.h.bf16 %v3583_v3  ;;  %v3584_v53 = vunpack.i.l.bf16 %v3583_v3 }
 0x697   : > { %v2187_v11 = vsel %vm2186_vm11, %v2185_v7, %v3584_v53  ;;  %v2203_v13 = vsel %vm2186_vm11, %v2202_v49, %v3585_v28  ;;  %v2334_v7 = vperm.slane %v2303_v4, 1 }
 0x69c   : > { %v3588_v6 = vpop.permute.xlu1 %3587 }
 0x69d   : > { %v3590_v8 = vunpack.i.h.bf16 %v3588_v6  ;;  %v3589_v9 = vunpack.i.l.bf16 %v3588_v6 }
 0x69f   : > { %v2189_v14 = vsel %vm2188_vm12, %v2187_v11, %v3589_v9  ;;  %v2204_v15 = vsel %vm2188_vm12, %v2203_v13, %v3590_v8  ;;  %v2331_v8 = vperm.slane %v2303_v4, 0 }
 0x6a0   : > { %v2205_v16 = vpack.c.bf16 %v2204_v15, %v2189_v14  ;;  %v2339_v15 = vperm.slane %v2303_v4, 2 }
 0x6a2   : > { %3284 = vmatmul.msk.bf16.vlgmr.msra.gmra.mxu3 %vm1545_vm1, %v2205_v16 }
 0x725   : > { %v2234_v18 = vpop.f32.mrf.mxu3 }
 0x726   : > { %v2239_v19 = vadd.f32 %v2234_v18, %v4788_v10 }
 0x728   : > { %v4928_v21 = vadd.f32 %v3598_v17, %v2239_v19 }
 0x72a   : > { %v2247_v22 = vsel %vm1545_vm1, %v4928_v21, 0.0 }
 0x72b   : > { %2248 = vadd.xlane.f32.xlu1 %v2247_v22 }
 0x72d   : > { %v2236_v23 = vpop.f32.mrf.mxu3 }
 0x72e   : > { %v2240_v25 = vadd.f32 %v2236_v23, %v4792_v12 }
 0x730   : > { %v4933_v26 = vadd.f32 %v3598_v17, %v2240_v25 }
 0x732   : > { %v2250_v27 = vsel %vm1545_vm1, %v4933_v26, 0.0 }
 0x733   : > { %2251 = vadd.xlane.f32.xlu0 %v2250_v27 }
 0x79e   : > { %v2249_v30 = vpop.xlane.xlu1 %2248 }
 0x79f   : > { %v2253_v10 = vmul.f32 %v2249_v30, %v4796_v20 }
 0x7a1   : > { %v2255_v31 = vsub.f32 %v4928_v21, %v2253_v10 }
 0x7a3   : > { %v2257_v32 = vmul.f32 %v2255_v31, %v2255_v31 }
 0x7a5   : > { %v2259_v33 = vsel %vm1545_vm1, %v2257_v32, 0.0 }
 0x7a6   : > { %2260 = vadd.xlane.f32.xlu2 %v2259_v33  ;;  %v2252_v34 = vpop.xlane.xlu0 %2251 }
 0x7a7   : > { %v2254_v12 = vmul.f32 %v2252_v34, %v4796_v20  ;;  %v3601_v34 = vld [vmem:[%s5151_s12] ss:$0 sm:$0xff] }
 0x7a9   : > { %v2256_v35 = vsub.f32 %v4933_v26, %v2254_v12 }
 0x7ab   : > { %v2258_v36 = vmul.f32 %v2256_v35, %v2256_v35 }
 0x7ad   : > { %v2262_v24 = vsel %vm1545_vm1, %v2258_v36, 0.0 }
 0x7ae   : > { %2263 = vadd.xlane.f32.xlu0 %v2262_v24 }
 0x7be   : > { %2314 = vperm.xlu2 %3591, %v2312_v39  }
 0x7c2   : > { %2326 = vperm.xlu0 %3592, %v2324_v40  }
 0x819   : > { %v2261_v41 = vpop.xlane.xlu2 %2260 }
 0x81a   : > { %v2265_v42 = vmul.f32 %v2261_v41, %v4796_v20 }
 0x81c   : > { %v2267_v43 = vadd.f32 1e-05, %v2265_v42 }
 0x81e   : > { %3644 = vrsqrt.f32 %v2267_v43  ;;  %vm2275_vm0 = vweird.f32 %v2267_v43 }
 0x821   : > { %v2264_v44 = vpop.xlane.xlu0 %2263  ;;  %v2315_v53 = vpop.permute.xlu2 %2314 }
 0x822   : > { %v2266_v45 = vmul.f32 %v2264_v44, %v4796_v20  ;;  %vm2316_vm7 = vcmp.eq.s32.totalorder %v2315_v53, 1  ;;  %v3361_v53 = vld [vmem:[%s4776_s8 + $0x8] sm:$0xff] }
 0x823   : > { %2456 = vmatpush.bf16.msrb.mxu0 %v3361_v53 }
 0x824   : > { %v3645_v46 = vpop.eup %3644  ;;  %v2268_v47 = vadd.f32 1e-05, %v2266_v45 }
 0x825   : > { %v2270_v48 = vmul.f32 %v3645_v46, %v2267_v43  ;;  %vm2276_vm15 = vweird.f32 %v3645_v46 }
 0x826   : > { %3646 = vrsqrt.f32 %v2268_v47  ;;  %vm2277_vm2 = vmor %vm2275_vm0, %vm2276_vm15  ;;  %vm2285_vm4 = vweird.f32 %v2268_v47 }
 0x827   : > { %v2271_v50 = vmul.f32 %v3645_v46, %v2270_v48 }
 0x829   : > { %v2272_v51 = vmul.f32 0.5, %v2271_v50 }
 0x82b   : > { %v2273_v52 = vsub.f32 1.5, %v2272_v51 }
 0x82c   : > { %v3647_v54 = vpop.eup %3646 }
 0x82d   : > { %v2274_v55 = vmul.f32 %v3645_v46, %v2273_v52  ;;  %v2280_v56 = vmul.f32 %v3647_v54, %v2268_v47  ;;  %vm2286_vm3 = vweird.f32 %v3647_v54 }
 0x82e   : > { %vm2287_vm5 = vmor %vm2285_vm4, %vm2286_vm3 }
 0x82f   : > { %v2278_v57 = vsel %vm2277_vm2, %v3645_v46, %v2274_v55  ;;  %v2281_v58 = vmul.f32 %v3647_v54, %v2280_v56 }
 0x830   : > { %v2289_v61 = vmul.f32 %v2278_v57, %v2255_v31 }
 0x831   : > { %v2282_v59 = vmul.f32 0.5, %v2281_v58 }
 0x832   : > { %v2295_v0 = vmul.f32 %v3599_v60, %v2289_v61 }
 0x833   : > { %v2283_v62 = vsub.f32 1.5, %v2282_v59 }
 0x834   : > { %v2301_v28 = vadd.f32 %v3600_v1, %v2295_v0  ;;  %v2327_v6 = vpop.permute.xlu0 %2326 }
 0x835   : > { %v2284_v63 = vmul.f32 %v3647_v54, %v2283_v62  ;;  %vm2328_vm8 = vcmp.eq.s32.totalorder %v2327_v6, 1 }
 0x836   : > { %v2307_v9 = vrot.slane %v2301_v28, 7  ;;  %v2320_v13 = vrot.slane %v2301_v28, 1  ;;  %v2335_v29 = vmul.f32 %v2334_v7, %v2301_v28 }
 0x837   : > { %v2288_v2 = vsel %vm2287_vm5, %v3647_v54, %v2284_v63 }
 0x838   : > { %v2290_v3 = vmul.f32 %v2288_v2, %v2256_v35 }
 0x83a   : > { %v2296_v5 = vmul.f32 %v3599_v60, %v2290_v3 }
 0x83c   : > { %v2302_v49 = vadd.f32 %v3600_v1, %v2296_v5 }
 0x83e   : > { %v2308_v11 = vrot.slane %v2302_v49, 7  ;;  %v2321_v14 = vrot.slane %v2302_v49, 1  ;;  %v2336_v31 = vmul.f32 %v2334_v7, %v2302_v49  ;;  %v3360_v49 = vld [vmem:[%s4776_s8] sm:$0xff]  ;;  %s5152_s8 = scalar_lea.vmem [#allocation16], %s4733_s17 }
 0x83f   : > { %2457 = vmatpush.bf16.msrb.mxu0 %v3360_v49 }
 0x840   : > { %v2310_v16 = vsel %vm2309_vm6, %v2307_v9, %v2308_v11  ;;  %v2311_v17 = vsel %vm2309_vm6, %v2308_v11, %v2307_v9  ;;  %v2322_v18 = vsel %vm2319_vm14, %v2320_v13, %v2321_v14  ;;  %v2323_v19 = vsel %vm2319_vm14, %v2321_v14, %v2320_v13 }
 0x841   : > { %v2317_v22 = vsel %vm2316_vm7, %v2311_v17, 0.0  ;;  %v2318_v23 = vsel %vm2316_vm7, %v2310_v16, 0.0  ;;  %v2329_v25 = vsel %vm2328_vm8, %v2322_v18, 0.0  ;;  %v2330_v27 = vsel %vm2328_vm8, %v2323_v19, 0.0 }
 0x842   : > { %v2332_v30 = vmul.f32 %v2331_v8, %v2317_v22  ;;  %v2333_v10 = vmul.f32 %v2331_v8, %v2318_v23  ;;  %v2340_v12 = vmul.f32 %v2339_v15, %v2329_v25  ;;  %v2341_v35 = vmul.f32 %v2339_v15, %v2330_v27 }
 0x844   : > { %v2337_v32 = vadd.f32 %v2335_v29, %v2332_v30  ;;  %v2338_v33 = vadd.f32 %v2336_v31, %v2333_v10  ;;  %v3602_v10 = vld [vmem:[%s5152_s8] ss:$0 sm:$0xff] }
 0x846   : > { %v2342_v36 = vadd.f32 %v2340_v12, %v2337_v32  ;;  %v2343_v24 = vadd.f32 %v2341_v35, %v2338_v33 }
 0x848   : > { %v2348_v37 = vadd.f32 %v3601_v34, %v2342_v36  ;;  %v2349_v39 = vadd.f32 %v3601_v34, %v2343_v24  ;;  %v3603_v34 = vld [vmem:[%s5153_s15] ss:$0 sm:$0xff] }
 0x84a   : > { %v2350_v38 = vmul.f32 %v2348_v37, %v2348_v37  ;;  %v2351_v40 = vmul.f32 %v2349_v39, %v2349_v39 }
 0x84c   : > { %v2352_v41 = vmul.f32 %v2350_v38, %v2348_v37  ;;  %v2353_v42 = vmul.f32 %v2351_v40, %v2349_v39  ;;  %v3369_v38 = vld [vmem:[%s4783_s19 + $0x38] sm:$0xff]  ;;  %v3368_v40 = vld [vmem:[%s4783_s19 + $0x30] sm:$0xff] }
 0x84d   : > { %2547 = vmatpush.bf16.msra.mxu1 %v3369_v38 }
 0x84e   : > { %v2355_v43 = vmul.f32 0.044715, %v2353_v42  ;;  %v2354_v44 = vmul.f32 0.044715, %v2352_v41  ;;  %v3367_v41 = vld [vmem:[%s4783_s19 + $0x28] sm:$0xff]  ;;  %v3366_v42 = vld [vmem:[%s4783_s19 + $0x20] sm:$0xff] }
 0x850   : > { %v2357_v45 = vadd.f32 %v2355_v43, %v2349_v39  ;;  %v2356_v46 = vadd.f32 %v2354_v44, %v2348_v37  ;;  %v3365_v43 = vld [vmem:[%s4783_s19 + $0x18] sm:$0xff]  ;;  %v3364_v44 = vld [vmem:[%s4783_s19 + $0x10] sm:$0xff] }
 0x851   : > { %2548 = vmatpush.bf16.msra.mxu1 %v3368_v40 }
 0x852   : > { %v2359_v47 = vmul.f32 0.7978846, %v2357_v45  ;;  %v2358_v48 = vmul.f32 0.7978846, %v2356_v46  ;;  %v3363_v45 = vld [vmem:[%s4783_s19 + $0x8] sm:$0xff] }
 0x853   : > { %v3604_v46 = vld [vmem:[%s5154_s2] ss:$0 sm:$0xff] }
 0x854   : > { %3648 = vtanh.f32 %v2359_v47  ;;  %v3362_v47 = vld [vmem:[%s4783_s19] sm:$0xff]  ;;  %s5155_s19 = scalar_lea.vmem [#allocation19], %s4733_s17  ;;  %s5157_s17 = sld [smem:[#allocation50_spill]] (!%p3326_p10) }
 0x855   : > { %3650 = vtanh.f32 %v2358_v48  ;;  %2549 = vmatpush.bf16.msra.mxu1 %v3367_v41 }
 0x859   : > { %2550 = vmatpush.bf16.msra.mxu1 %v3366_v42 }
 0x85a   : > { %v3649_v50 = vpop.eup %3648 }
 0x85b   : > { %v3651_v51 = vpop.eup %3650  ;;  %v2363_v52 = vadd.f32 1.0, %v3649_v50 }
 0x85c   : > { %v2362_v54 = vadd.f32 1.0, %v3651_v51 }
 0x85d   : > { %v2365_v55 = vmul.f32 0.5, %v2363_v52  ;;  %2551 = vmatpush.bf16.msra.mxu1 %v3365_v43 }
 0x85e   : > { %v2364_v56 = vmul.f32 0.5, %v2362_v54 }
 0x85f   : > { %v2367_v57 = vmul.f32 %v2365_v55, %v2349_v39 }
 0x860   : > { %v2366_v58 = vmul.f32 %v2364_v56, %v2348_v37 }
 0x861   : > { %v4956_v59 = vadd.f32 %v2367_v57, %v4933_v26  ;;  %2552 = vmatpush.bf16.msra.mxu1 %v3364_v44 }
 0x862   : > { %v4959_v60 = vadd.f32 %v2366_v58, %v4928_v21 }
 0x863   : > { %v2373_v61 = vsel %vm1545_vm1, %v4956_v59, 0.0 }
 0x864   : > { %2374 = vadd.xlane.f32.xlu2 %v2373_v61  ;;  %v2370_v62 = vsel %vm1545_vm1, %v4959_v60, 0.0 }
 0x865   : > { %2371 = vadd.xlane.f32.xlu1 %v2370_v62  ;;  %2553 = vmatpush.bf16.msra.mxu1 %v3363_v45 }
 0x869   : > { %2554 = vmatpush.bf16.msra.mxu1 %v3362_v47 }
 0x8d7   : > { %v2375_v63 = vpop.xlane.xlu2 %2374 }
 0x8d8   : > { %v2372_v0 = vpop.xlane.xlu1 %2371  ;;  %v2377_v26 = vmul.f32 %v2375_v63, %v4796_v20 }
 0x8d9   : > { %v2376_v1 = vmul.f32 %v2372_v0, %v4796_v20 }
 0x8da   : > { %v2379_v3 = vsub.f32 %v4956_v59, %v2377_v26 }
 0x8db   : > { %v2378_v2 = vsub.f32 %v4959_v60, %v2376_v1 }
 0x8dc   : > { %v2381_v5 = vmul.f32 %v2379_v3, %v2379_v3 }
 0x8dd   : > { %v2380_v21 = vmul.f32 %v2378_v2, %v2378_v2 }
 0x8de   : > { %v2385_v28 = vsel %vm1545_vm1, %v2381_v5, 0.0 }
 0x8df   : > { %v2382_v4 = vsel %vm1545_vm1, %v2380_v21, 0.0 }
 0x8e0   : > { %2383 = vadd.xlane.f32.xlu1 %v2382_v4 }
 0x8e8   : > { %2386 = vadd.xlane.f32.xlu1 %v2385_v28 }
 0x953   : > { %v2384_v6 = vpop.xlane.xlu1 %2383 }
 0x954   : > { %v2388_v7 = vmul.f32 %v2384_v6, %v4796_v20 }
 0x956   : > { %v2390_v8 = vadd.f32 1e-05, %v2388_v7  ;;  %v3605_v7 = vld [vmem:[%s5155_s19] ss:$0 sm:$0xff] }
 0x958   : > { %3652 = vrsqrt.f32 %v2390_v8  ;;  %vm2398_vm10 = vweird.f32 %v2390_v8 }
 0x95b   : > { %v2387_v9 = vpop.xlane.xlu1 %2386 }
 0x95c   : > { %v2389_v11 = vmul.f32 %v2387_v9, %v4796_v20 }
 0x95e   : > { %v3653_v13 = vpop.eup %3652  ;;  %v2391_v14 = vadd.f32 1e-05, %v2389_v11 }
 0x95f   : > { %v2393_v15 = vmul.f32 %v3653_v13, %v2390_v8  ;;  %vm2399_vm9 = vweird.f32 %v3653_v13 }
 0x960   : > { %3654 = vrsqrt.f32 %v2391_v14  ;;  %vm2400_vm11 = vmor %vm2398_vm10, %vm2399_vm9  ;;  %vm2408_vm13 = vweird.f32 %v2391_v14 }
 0x961   : > { %v2394_v16 = vmul.f32 %v3653_v13, %v2393_v15 }
 0x963   : > { %v2395_v17 = vmul.f32 0.5, %v2394_v16 }
 0x965   : > { %v2396_v18 = vsub.f32 1.5, %v2395_v17 }
 0x966   : > { %v3655_v19 = vpop.eup %3654 }
 0x967   : > { %v2397_v22 = vmul.f32 %v3653_v13, %v2396_v18  ;;  %v2403_v23 = vmul.f32 %v3655_v19, %v2391_v14  ;;  %vm2409_vm12 = vweird.f32 %v3655_v19 }
 0x968   : > { %vm2410_vm14 = vmor %vm2408_vm13, %vm2409_vm12 }
 0x969   : > { %v2404_v25 = vmul.f32 %v3655_v19, %v2403_v23  ;;  %v2401_v27 = vsel %vm2400_vm11, %v3653_v13, %v2397_v22 }
 0x96a   : > { %v2412_v31 = vmul.f32 %v2401_v27, %v2378_v2 }
 0x96b   : > { %v2405_v29 = vmul.f32 0.5, %v2404_v25 }
 0x96c   : > { %v2418_v12 = vmul.f32 %v3602_v10, %v2412_v31 }
 0x96d   : > { %v2406_v30 = vsub.f32 1.5, %v2405_v29 }
 0x96e   : > { %v2424_v24 = vadd.f32 %v3603_v34, %v2418_v12 }
 0x96f   : > { %v2407_v32 = vmul.f32 %v3655_v19, %v2406_v30 }
 0x971   : > { %v2411_v33 = vsel %vm2410_vm14, %v3655_v19, %v2407_v32 }
 0x972   : > { %v2413_v35 = vmul.f32 %v2411_v33, %v2379_v3 }
 0x974   : > { %v2419_v36 = vmul.f32 %v3602_v10, %v2413_v35 }
 0x976   : > { %v2425_v37 = vadd.f32 %v3603_v34, %v2419_v36 }
 0x978   : > { %v2426_v39 = vpack.c.bf16 %v2425_v37, %v2424_v24 }
 0x97a   : > { %3293 = vmatmul.msk.bf16.vlgmr.msrb.gmra.mxu0 %vm1545_vm1, %v2426_v39 }
 0x9f7   : > { %v2459_v48 = vpop.f32.mrf.mxu0 }
 0x9f8   : > { %v2460_v50 = vadd.f32 %v3604_v46, %v2459_v48 }
 0x9fa   : > { %v2464_v51 = vmul.f32 %v2460_v50, %v2460_v50 }
 0x9fc   : > { %v2466_v52 = vmul.f32 %v2464_v51, %v2460_v50 }
 0x9fe   : > { %v2468_v54 = vmul.f32 0.044715, %v2466_v52 }
 0x9ff   : > { %v2461_v55 = vpop.f32.mrf.mxu0 }
 0xa00   : > { %v2470_v56 = vadd.f32 %v2468_v54, %v2460_v50  ;;  %v2462_v57 = vadd.f32 %v3604_v46, %v2461_v55 }
 0xa02   : > { %v2472_v58 = vmul.f32 0.7978846, %v2470_v56  ;;  %v2465_v61 = vmul.f32 %v2462_v57, %v2462_v57 }
 0xa04   : > { %v2467_v62 = vmul.f32 %v2465_v61, %v2462_v57  ;;  %3656 = vtanh.f32 %v2472_v58 }
 0xa06   : > { %v2469_v63 = vmul.f32 0.044715, %v2467_v62 }
 0xa08   : > { %v2471_v0 = vadd.f32 %v2469_v63, %v2462_v57 }
 0xa0a   : > { %v2473_v1 = vmul.f32 0.7978846, %v2471_v0  ;;  %v3657_v26 = vpop.eup %3656 }
 0xa0b   : > { %v2476_v2 = vadd.f32 1.0, %v3657_v26 }
 0xa0c   : > { %3658 = vtanh.f32 %v2473_v1 }
 0xa0d   : > { %v2478_v3 = vmul.f32 0.5, %v2476_v2 }
 0xa0f   : > { %v2480_v28 = vmul.f32 %v2478_v3, %v2460_v50 }
 0xa12   : > { %v3659_v21 = vpop.eup %3658 }
 0xa13   : > { %v2477_v4 = vadd.f32 1.0, %v3659_v21 }
 0xa15   : > { %v2479_v5 = vmul.f32 0.5, %v2477_v4 }
 0xa17   : > { %v2481_v53 = vmul.f32 %v2479_v5, %v2462_v57 }
 0xa19   : > { %v2482_v6 = vpack.c.bf16 %v2481_v53, %v2480_v28 }
 0xa1b   : > { %2555 = vmatmul.bf16.vlgmr.msra.gmra.mxu1 %v2482_v6 }
 0xa98   : > { %v2556_v49 = vpop.f32.mrf.mxu1 }
 0xa99   : > { %v2561_v8 = vadd.f32 %v2556_v49, %v4959_v60 }
 0xa9b   : > { %v2567_v9 = vadd.f32 %v3605_v7, %v2561_v8 }
 0xa9d   : > { %2569 = vst.msk [vmem:[#allocation2] sm:$0xff] %vm1545_vm1, %v2567_v9 }
 0xaa0   : > { %v2558_v11 = vpop.f32.mrf.mxu1 }
 0xaa1   : > { %v2562_v13 = vadd.f32 %v2558_v11, %v4956_v59  ;;  %2574 = sbr.rel (%p3326_p10) target bundleno = 3374 (0xd2e), region = 196 }
 0xaa3   : > { %v2568_v14 = vadd.f32 %v3605_v7, %v2562_v13 }
 0xaa5   : > { %2570 = vst.msk [vmem:[#allocation2 + $0x8] sm:$0xff] %vm1545_vm1, %v2568_v14 }
 0xaa6   : > { %v2575_v15 = vsel %vm1545_vm1, %v2567_v9, 0.0  ;;  %v2578_v16 = vsel %vm1545_vm1, %v2568_v14, 0.0  ;;  %v3371_v31 = vld [vmem:[%s5157_s17 + $0x8] sm:$0xff]  ;;  %v3370_v33 = vld [vmem:[%s5157_s17] sm:$0xff]  ;;  %v3660_v43 = vld [vmem:[#allocation20] ss:$0 sm:$0xff] }
 0xaa7   : > { %2576 = vadd.xlane.f32.xlu0 %v2575_v15  ;;  %2679 = vmatpush.bf16.msra.mxu0 %v3371_v31  ;;  %v3661_v47 = vld [vmem:[%s5158_s13] ss:$0 sm:$0xff]  ;;  %vm2647_vm6 = vcmask 1040384   ;;  %vm2686_vm7 = vcmask 25600   ;;  %vm2722_vm11 = vcmask 7168   ;;  %vm2729_vm12 = vcmask 15360  }
 0xaab   : > { %2680 = vmatpush.bf16.msra.mxu0 %v3370_v33 }
 0xaaf   : > { %2579 = vadd.xlane.f32.xlu0 %v2578_v16 }
 0xb1a   : > { %v2577_v60 = vpop.xlane.xlu0 %2576 }
 0xb1b   : > { %v2581_v17 = vmul.f32 %v2577_v60, %v4796_v20 }
 0xb1d   : > { %v2583_v18 = vsub.f32 %v2567_v9, %v2581_v17  ;;  %v3662_v9 = vld [vmem:[%s5159_s6] ss:$0 sm:$0xff] }
 0xb1f   : > { %v2585_v19 = vmul.f32 %v2583_v18, %v2583_v18 }
 0xb21   : > { %v2587_v59 = vsel %vm1545_vm1, %v2585_v19, 0.0 }
 0xb22   : > { %2588 = vadd.xlane.f32.xlu1 %v2587_v59  ;;  %v2580_v22 = vpop.xlane.xlu0 %2579 }
 0xb23   : > { %v2582_v23 = vmul.f32 %v2580_v22, %v4796_v20 }
 0xb25   : > { %v2584_v25 = vsub.f32 %v2568_v14, %v2582_v23 }
 0xb27   : > { %v2586_v27 = vmul.f32 %v2584_v25, %v2584_v25 }
 0xb29   : > { %v2590_v29 = vsel %vm1545_vm1, %v2586_v27, 0.0 }
 0xb2a   : > { %2591 = vadd.xlane.f32.xlu1 %v2590_v29 }
 0xb95   : > { %v2589_v30 = vpop.xlane.xlu1 %2588 }
 0xb96   : > { %v2593_v10 = vmul.f32 %v2589_v30, %v4796_v20 }
 0xb98   : > { %v2595_v32 = vadd.f32 1e-05, %v2593_v10 }
 0xb9a   : > { %3663 = vrsqrt.f32 %v2595_v32  ;;  %vm2603_vm0 = vweird.f32 %v2595_v32 }
 0xb9d   : > { %v2592_v34 = vpop.xlane.xlu1 %2591 }
 0xb9e   : > { %v2594_v12 = vmul.f32 %v2592_v34, %v4796_v20 }
 0xba0   : > { %v3664_v35 = vpop.eup %3663  ;;  %v2596_v36 = vadd.f32 1e-05, %v2594_v12 }
 0xba1   : > { %v2598_v24 = vmul.f32 %v3664_v35, %v2595_v32  ;;  %vm2604_vm15 = vweird.f32 %v3664_v35 }
 0xba2   : > { %3665 = vrsqrt.f32 %v2596_v36  ;;  %vm2605_vm2 = vmor %vm2603_vm0, %vm2604_vm15  ;;  %vm2613_vm4 = vweird.f32 %v2596_v36 }
 0xba3   : > { %v2599_v37 = vmul.f32 %v3664_v35, %v2598_v24 }
 0xba5   : > { %v2600_v39 = vmul.f32 0.5, %v2599_v37 }
 0xba7   : > { %v2601_v38 = vsub.f32 1.5, %v2600_v39 }
 0xba8   : > { %v3666_v40 = vpop.eup %3665 }
 0xba9   : > { %v2602_v41 = vmul.f32 %v3664_v35, %v2601_v38  ;;  %v2608_v42 = vmul.f32 %v3666_v40, %v2596_v36  ;;  %vm2614_vm3 = vweird.f32 %v3666_v40 }
 0xbaa   : > { %vm2615_vm5 = vmor %vm2613_vm4, %vm2614_vm3 }
 0xbab   : > { %v2606_v44 = vsel %vm2605_vm2, %v3664_v35, %v2602_v41  ;;  %v2609_v45 = vmul.f32 %v3666_v40, %v2608_v42 }
 0xbac   : > { %v2617_v46 = vmul.f32 %v2606_v44, %v2583_v18 }
 0xbad   : > { %v2610_v20 = vmul.f32 0.5, %v2609_v45 }
 0xbae   : > { %v2623_v48 = vmul.f32 %v3660_v43, %v2617_v46 }
 0xbaf   : > { %v2611_v50 = vsub.f32 1.5, %v2610_v20 }
 0xbb0   : > { %v2629_v51 = vadd.f32 %v3661_v47, %v2623_v48 }
 0xbb1   : > { %v2612_v52 = vmul.f32 %v3666_v40, %v2611_v50 }
 0xbb2   : > { %v2631_v54 = vsel %vm1545_vm1, %v2629_v51, 0.0 }
 0xbb3   : > { %v2616_v55 = vsel %vm2615_vm5, %v3666_v40, %v2612_v52  ;;  %v2632_v56 = vrot.slane %v2631_v54, 4 }
 0xbb4   : > { %v2618_v57 = vmul.f32 %v2616_v55, %v2584_v25 }
 0xbb5   : > { %v2633_v58 = vadd.f32 %v2632_v56, %v2631_v54 }
 0xbb6   : > { %v2624_v61 = vmul.f32 %v3660_v43, %v2618_v57 }
 0xbb7   : > { %v2634_v62 = vrot.slane %v2633_v58, 2 }
 0xbb8   : > { %v2630_v63 = vadd.f32 %v3661_v47, %v2624_v61 }
 0xbb9   : > { %v2635_v1 = vadd.f32 %v2634_v62, %v2633_v58 }
 0xbba   : > { %v2639_v0 = vsel %vm1545_vm1, %v2630_v63, 0.0 }
 0xbbb   : > { %v2640_v26 = vrot.slane %v2639_v0, 4  ;;  %v2636_v21 = vrot.slane %v2635_v1, 1 }
 0xbbd   : > { %v2641_v2 = vadd.f32 %v2640_v26, %v2639_v0  ;;  %v2637_v5 = vadd.f32 %v2636_v21, %v2635_v1 }
 0xbbf   : > { %v2642_v3 = vrot.slane %v2641_v2, 2  ;;  %v2638_v6 = vmul.f32 0.125, %v2637_v5 }
 0xbc1   : > { %v2643_v4 = vadd.f32 %v2642_v3, %v2641_v2 }
 0xbc3   : > { %v2644_v28 = vrot.slane %v2643_v4, 1 }
 0xbc5   : > { %v2645_v53 = vadd.f32 %v2644_v28, %v2643_v4 }
 0xbc7   : > { %v2646_v7 = vmul.f32 0.125, %v2645_v53 }
 0xbc9   : > { %v2648_v49 = vsel %vm2647_vm6, %v2638_v6, %v2646_v7 }
 0xbca   : > { %v2649_v8 = vpack.c.bf16 %v2648_v49, %v2648_v49 }
 0xbcc   : > { %3335 = vmatmul.msk.bf16.vlgmr.msra.gmra.mxu0 %vm1545_vm1, %v2649_v8 }
 0xc49   : > { %v2682_v11 = vpop.f32.mrf.mxu0 }
 0xc4a   : > { %v2683_v13 = vadd.f32 %v3662_v9, %v2682_v11 }
 0xc4c   : > { %2687 = vst.msk [vmem:[#allocation21] sm:$0x3] %vm2686_vm7, %v2683_v13  ;;  %v2688_v14 = vsub.f32 0.0, %v2683_v13  ;;  %v2709_v15 = vand.u32 2147483647, %v2683_v13  ;;  %v2708_v31 = vmax.f32 %v2683_v13, 0.0 }
 0xc4e   : > { %v2689_v16 = vmul.f32 1.442695, %v2688_v14  ;;  %v2710_v60 = vsub.f32 0.0, %v2709_v15 }
 0xc50   : > { %3667 = vpow2.f32 %v2689_v16  ;;  %v2711_v17 = vmul.f32 1.442695, %v2710_v60 }
 0xc51   : > { %v2684_v18 = vpop.f32.mrf.mxu0 }
 0xc52   : > { %3669 = vpow2.f32 %v2711_v17 }
 0xc56   : > { %v3668_v19 = vpop.eup %3667 }
 0xc57   : > { %v2691_v59 = vadd.f32 1.0, %v3668_v19 }
 0xc58   : > { %v3670_v22 = vpop.eup %3669 }
 0xc59   : > { %3671 = vrcp.f32 %v2691_v59  ;;  %v2713_v23 = vadd.f32 1.0, %v3670_v22  ;;  %v2703_v10 = vand.u32 2147483648, %v2691_v59  ;;  %v2701_v34 = vand.u32 2147483647, %v2691_v59 }
 0xc5a   : > { %vm2697_vm8 = vweird.f32 %v2691_v59 }
 0xc5b   : > { %3673 = vlog2.f32 %v2713_v23  ;;  %v2704_v36 = vor.u32 1.1754944e-38, %v2703_v10  ;;  %vm2702_vm10 = vcmp.eq.f32.partialorder %v2701_v34, 8.507059e+37 }
 0xc5f   : > { %v3672_v25 = vpop.eup %3671 }
 0xc60   : > { %v2693_v27 = vmul.f32 %v3672_v25, %v2691_v59  ;;  %vm2698_vm1 = vweird.f32 %v3672_v25 }
 0xc61   : > { %v3674_v29 = vpop.eup %3673  ;;  %vm2699_vm9 = vmor %vm2697_vm8, %vm2698_vm1 }
 0xc62   : > { %v2694_v30 = vsub.f32 1.0, %v2693_v27  ;;  %v2715_v32 = vmul.f32 0.6931472, %v3674_v29 }
 0xc64   : > { %v2695_v33 = vmul.f32 %v3672_v25, %v2694_v30  ;;  %v2716_v12 = vadd.f32 %v2715_v32, %v2708_v31 }
 0xc66   : > { %v2696_v35 = vadd.f32 %v3672_v25, %v2695_v33  ;;  %v2717_v24 = vsub.f32 0.0, %v2716_v12 }
 0xc68   : > { %v2700_v37 = vsel %vm2699_vm9, %v3672_v25, %v2696_v35  ;;  %2719 = vrot.lane.b32.xlu2 %v2717_v24, %s4325_s25 }
 0xc69   : > { %v2705_v39 = vsel %vm2702_vm10, %v2704_v36, %v2700_v37 }
 0xc6a   : > { %2707 = vst.msk [vmem:[#allocation22] sm:$0x3] %vm2686_vm7, %v2705_v39 }
 0xcc2   : > { %v2720_v38 = vpop.permute.xlu2 %2719 }
 0xcc3   : > { %v2723_v40 = vsel %vm2722_vm11, 0.0, %v2720_v38 }
 0xcc4   : > { %v2724_v41 = vadd.f32 %v2723_v40, %v2717_v24 }
 0xcc6   : > { %2726 = vrot.lane.b32.xlu2 %v2724_v41, %s4326_s11 }
 0xd20   : > { %v2727_v42 = vpop.permute.xlu2 %2726 }
 0xd21   : > { %v2730_v43 = vsel %vm2729_vm12, 0.0, %v2727_v42 }
 0xd22   : > { %v2731_v44 = vadd.f32 %v2730_v43, %v2724_v41 }
 0xd24   : > { %v2732_v45 = vmul.f32 1.442695, %v2731_v44 }
 0xd26   : > { %3675 = vpow2.f32 %v2732_v45 }
 0xd2c   : > { %v3676_v46 = vpop.eup %3675 }
 0xd2d   : > { %2734 = vst.msk [vmem:[#allocation24] sm:$0x3] %vm2686_vm7, %v3676_v46 }
 0xd2e PF: > { %s5160_s5 = sld [smem:[#allocation53_spill]]  ;;  %p3474_p12 = scmp.eq.s32.totalorder %s4514_s0, 1 }
 0xd2f   : > { %s4327_s10 = smov [#allocation22]  }
 0xd30   : > { %s2757_s7 = sshll.u32 %s4327_s10, 4  ;;  %s2758_s7 = int_to_ptr.vmem [resolvable:$true] %s2757_s7 }
 0xd34   : > { %s2759_s9 = sshll.u32 %s5160_s5, 4  ;;  %s4147_s4 = scalar_lea.hbm %s5160_s5, 2  ;;  %s2760_s9 = int_to_ptr.hbm [resolvable:$true] %s2759_s9 }
 0xd35   : > { %s4141_s28 = sshra.s32 %s2760_s9, 4  ;;  %s4142_s28 = int_to_ptr.hbm [resolvable:$true] %s4141_s28 }
 0xd36   : > { %s4143_s23 = scalar_lea.hbm %s4142_s28, 2  ;;  %p4148_p1 = scmp.lt.s32.totalorder %s4142_s28, %s5160_s5 }
 0xd37   : > { %p4144_p0 = scmp.ne.s32.totalorder %s4142_s28, %s4143_s23  ;;  %p4149_p2 = scmp.lt.s32.totalorder %s4147_s4, %s4143_s23 }
 0xd39   : > { %p4145_p3 = pnand %p4144_p0, %p3474_p12  ;;  %p4150_p13 = por %p4149_p2, %p4148_p1 }
 0xd3b   : > { %p4146_p11 = pneg %p4145_p3 }
 0xd3d   : > { %p4151_p4 = pnand %p4150_p13, %p4146_p11 }
 0xd3f   : > { %4154 = shalt.err (!%p4151_p4)
}
 0xd40   : > { %s5161_s1 = sld [smem:[#allocation52_spill]]  ;;  %s4328_s22 = smov [#allocation21]  }
 0xd41   : > { %3411 = dma.vmem_to_hbm [thread:$0]  (%p3474_p12), %s2758_s7, 32, %s2760_s9, [#allocation23]  }
 0xd42   : > { %s2743_s3 = sshll.u32 %s4328_s22, 4  ;;  %s2744_s3 = int_to_ptr.vmem [resolvable:$true] %s2743_s3 }
 0xd46   : > { %s2745_s12 = sshll.u32 %s5161_s1, 4  ;;  %s4175_s2 = scalar_lea.hbm %s5161_s1, 2  ;;  %s2746_s12 = int_to_ptr.hbm [resolvable:$true] %s2745_s12 }
 0xd47   : > { %s4169_s8 = sshra.s32 %s2746_s12, 4  ;;  %s4170_s8 = int_to_ptr.hbm [resolvable:$true] %s4169_s8 }
 0xd48   : > { %s4171_s15 = scalar_lea.hbm %s4170_s8, 2  ;;  %p4176_p8 = scmp.lt.s32.totalorder %s4170_s8, %s5161_s1 }
 0xd49   : > { %p4172_p6 = scmp.ne.s32.totalorder %s4170_s8, %s4171_s15  ;;  %p4177_p5 = scmp.lt.s32.totalorder %s4175_s2, %s4171_s15 }
 0xd4b   : > { %p4173_p7 = pnand %p4172_p6, %p3474_p12  ;;  %p4178_p10 = por %p4177_p5, %p4176_p8 }
 0xd4d   : > { %p4174_p9 = pneg %p4173_p7 }
 0xd4f   : > { %p4179_p0 = pnand %p4178_p10, %p4174_p9 }
 0xd51   : > { %4182 = shalt.err (!%p4179_p0)
}
 0xd52   : > { %s5162_s19 = sld [smem:[#allocation54_spill]]  ;;  %s4329_s13 = smov [#allocation24]  }
 0xd53   : > { %3409 = dma.vmem_to_hbm [thread:$0]  (%p3474_p12), %s2744_s3, 32, %s2746_s12, [#allocation5]  }
 0xd54   : > { %s2771_s6 = sshll.u32 %s4329_s13, 4  ;;  %s2772_s6 = int_to_ptr.vmem [resolvable:$true] %s2771_s6 }
 0xd58   : > { %s2773_s14 = sshll.u32 %s5162_s19, 4  ;;  %s4203_s10 = scalar_lea.hbm %s5162_s19, 2  ;;  %s2774_s14 = int_to_ptr.hbm [resolvable:$true] %s2773_s14 }
 0xd59   : > { %s4197_s25 = sshra.s32 %s2774_s14, 4  ;;  %s4198_s25 = int_to_ptr.hbm [resolvable:$true] %s4197_s25 }
 0xd5a   : > { %s4199_s11 = scalar_lea.hbm %s4198_s25, 2  ;;  %p4204_p2 = scmp.lt.s32.totalorder %s4198_s25, %s5162_s19 }
 0xd5b   : > { %p4200_p3 = scmp.ne.s32.totalorder %s4198_s25, %s4199_s11  ;;  %p4205_p13 = scmp.lt.s32.totalorder %s4203_s10, %s4199_s11 }
 0xd5d   : > { %p4201_p11 = pnand %p4200_p3, %p3474_p12  ;;  %p4206_p4 = por %p4205_p13, %p4204_p2 }
 0xd5f   : > { %p4202_p1 = pneg %p4201_p11 }
 0xd61   : > { %p4207_p6 = pnand %p4206_p4, %p4202_p1 }
 0xd63   : > { %4210 = shalt.err (!%p4207_p6)
}
 0xd64   : > { %3413 = dma.vmem_to_hbm [thread:$0]  (%p3474_p12), %s2772_s6, 32, %s2774_s14, [#allocation23]  }
 0xd65   : > { %4252 = dma.done.wait (%p3474_p12), [#allocation5], 32  }
 0xd66   : > { %4254 = vsyncadd (%p3474_p12), [#allocation5], 4294967264 }
 0xd67   : > { %4256 = dma.done.wait (%p3474_p12), [#allocation23], 64  }
 0xd68   : > { %4258 = vsyncadd (%p3474_p12), [#allocation23], 4294967232 }
 0xd69 PF: > { %s74_s18 = sadd.s32 1, %s4281_s18   ;;  %s5163_s7 = sld [smem:[#allocation55_spill]] }
 0xd6a   : > { %p71_p7 = scmp.ge.s32.totalorder %s74_s18, 4   ;;  %s5164_s10 = sld [smem:[#allocation56_spill]] }
 0xd6b   : > { %s5165_s11 = sld [smem:[#allocation60_spill]]  ;;  %s5167_s15 = smov %s4277_s16 }
 0xd6c   : > { %s5166_s9 = sld [smem:[#allocation58_spill]] }
 0xd6e   :  { %73 = sbr.rel (!%p71_p7) target bundleno = 66 (0x42), region = 380 }
 0xd72   : > { %s5168_s16 = smov %s5166_s9 }
 0xd73   :  { %2797 = vsyncpa [#allocation4], 1 }
 0xd74   :  { %2799 = vsyncpa [#allocation4 + $0x1], 1 }
 0xd75   :  { %2800 = vsyncpa [#allocation7], 1 }
 0xd76   :  { %2801 = vsyncpa [#allocation5], 1 }
 0xd77   :  { %2803 = vsyncpa [#allocation5 + $0x1], 1 }
 0xd78   :  { %2804 = vsyncpa [#allocation23], 1 }

</bundles_post_ra>
